<compile_context>
chip_gen: v6e
topology: v6e:2x2x1
jax: 0.10.0
libtpu: 0.0.40
codegen_flags: <defaults>
</compile_context>

<pallas_src>
import functools

import jax
import jax.numpy as jnp
from jax import lax
from jax.experimental import pallas as pl
from jax.experimental.pallas import tpu as pltpu


def lstm_encoder_kernel(x_ref, len_ref, wih_ref, whh_ref, b_ref,
                        hh_ref, ht_ref):
    """One batch tile: masked unidirectional LSTM over all L time steps."""
    TB, L, E = x_ref.shape
    H = whh_ref.shape[0]
    cdt = wih_ref.dtype  # MXU compute dtype (bf16); accumulation stays f32

    # --- Input projection for every time step in a single wide MXU matmul. --
    x2d = x_ref[...].reshape(TB * L, E)                             # [TB*L, E]
    xg = jnp.dot(x2d, wih_ref[...],
                 preferred_element_type=jnp.float32) + b_ref[...]   # +(b_ih+b_hh)
    xg = xg.reshape(TB, L, 4 * H)                                   # [TB, L, 4H]

    lens = len_ref[...]                                             # [TB, 1] int32
    whh = whh_ref[...]                                              # [H, 4H]

    h = jnp.zeros((TB, H), jnp.float32)
    c = jnp.zeros((TB, H), jnp.float32)
    h_steps = []

    # Static unroll over the (small) time dimension: static slices only.
    for t in range(L):
        gates = xg[:, t, :] + jnp.dot(h.astype(cdt), whh,
                                      preferred_element_type=jnp.float32)
        # Full-width activations: 2 EUP pushes over [TB, 4H] instead of 4
        # quarter-vreg pushes; slice the pre-activated results.
        sg = jax.nn.sigmoid(gates)
        tg = jnp.tanh(gates)
        i = sg[:, 0 * H:1 * H]
        f = sg[:, 1 * H:2 * H]
        g = tg[:, 2 * H:3 * H]
        o = sg[:, 3 * H:4 * H]
        c_new = f * c + i * g
        h_new = o * jnp.tanh(c_new)

        mask = lens > t                                   # [TB, 1] bool
        h = jnp.where(mask, h_new, h)                     # hold past len
        c = jnp.where(mask, c_new, c)
        h_steps.append(jnp.where(mask, h_new, 0.0))       # 0 past len

    # Lane-dense single-slab store of all per-step hidden states: [TB, L*H].
    hh_ref[...] = jnp.concatenate(h_steps, axis=-1).astype(hh_ref.dtype)
    ht_ref[...] = h.astype(ht_ref.dtype)                  # h at t = len-1


@functools.partial(jax.jit,
                   static_argnames=("batch_tile", "compute_dtype", "out_dtype"))
def encoder_rnn_forward(x, x_len, params, *, batch_tile=None,
                        compute_dtype=jnp.bfloat16, out_dtype=jnp.float32):
    """Returns (restore_hh [B,L,H], restore_packed_h_t [B,H])."""
    B, L, E = x.shape
    H = params["w_hh"].shape[0]
    # Biggest tile we allow by default; on v7x pass batch_tile=B//2 so the
    # "parallel" grid axis has >= 2 steps to shard across both TensorCores.
    TB = min(B, 256) if batch_tile is None else min(batch_tile, B)
    assert B % TB == 0, "batch must be divisible by the batch tile"

    # Layout: w_ih = torch weight_ih_l0.T  -> [E, 4H], gate order [i|f|g|o]
    #         w_hh = torch weight_hh_l0.T  -> [H, 4H]
    #         bias = b_ih + b_hh           -> [1, 4H]  (fused once)
    x_c = x.astype(compute_dtype)
    wih = params["w_ih"].astype(compute_dtype)
    whh = params["w_hh"].astype(compute_dtype)
    bias = (params["b_ih"] + params["b_hh"]).reshape(1, 4 * H).astype(jnp.float32)
    lens = x_len.astype(jnp.int32).reshape(B, 1)

    csz = jnp.dtype(compute_dtype).itemsize
    osz = jnp.dtype(out_dtype).itemsize

    # VMEM budget for one grid step (double-buffered I/O blocks + resident
    # weights + the live xg tensor), clamped to 48 MiB so it is safe on the
    # 64 MiB-physical v7x while still allowing large tiles on v5e/v6e.
    vmem_est = (2 * TB * L * E * csz                 # x block (double-buffered)
                + 2 * TB * L * H * osz               # hh block
                + 2 * TB * H * osz                   # ht block
                + (E + H) * 4 * H * csz + 4 * H * 4  # resident weights + bias
                + 2 * TB * L * 4 * H * 4)            # xg + per-step temporaries
    vmem_limit = int(min(max(2 * vmem_est, 32 * 1024 * 1024), 48 * 1024 * 1024))

    cost = pl.CostEstimate(
        flops=2 * B * L * E * 4 * H + 2 * B * L * H * 4 * H + 10 * B * L * H,
        transcendentals=9 * B * L * H,
        bytes_accessed=(B * L * E * csz + B * 4
                        + (E + H) * 4 * H * csz + 4 * H * 4
                        + B * L * H * osz + B * H * osz))

    hh, ht = pl.pallas_call(
        lstm_encoder_kernel,
        grid_spec=pltpu.PrefetchScalarGridSpec(
            num_scalar_prefetch=0,
            grid=(B // TB,),
            in_specs=[
                pl.BlockSpec((TB, L, E), lambda b: (b, 0, 0)),     # activations
                pl.BlockSpec((TB, 1), lambda b: (b, 0)),           # lengths
                pl.BlockSpec((E, 4 * H), lambda b: (0, 0)),        # resident W_ih
                pl.BlockSpec((H, 4 * H), lambda b: (0, 0)),        # resident W_hh
                pl.BlockSpec((1, 4 * H), lambda b: (0, 0)),        # resident bias
            ],
            out_specs=[
                pl.BlockSpec((TB, L * H), lambda b: (b, 0)),       # lane-dense slab
                pl.BlockSpec((TB, H), lambda b: (b, 0)),
            ],
        ),
        out_shape=(jax.ShapeDtypeStruct((B, L * H), out_dtype),
                   jax.ShapeDtypeStruct((B, H), out_dtype)),
        compiler_params=pltpu.CompilerParams(
            dimension_semantics=("parallel",),      # v7x: shard batch over 2 TCs
            vmem_limit_bytes=vmem_limit),
        cost_estimate=cost,
    )(x_c, lens, wih, whh, bias)
    return hh.reshape(B, L, H), ht


def init_params(key, embed_size, hidden_size):
    """Synthetic LSTM parameters (same shapes as nn.LSTM, transposed layout)."""
    k1, k2, k3, k4 = jax.random.split(key, 4)
    s = 0.1
    return {
        "w_ih": s * jax.random.normal(k1, (embed_size, 4 * hidden_size), jnp.float32),
        "w_hh": s * jax.random.normal(k2, (hidden_size, 4 * hidden_size), jnp.float32),
        "b_ih": s * jax.random.normal(k3, (4 * hidden_size,), jnp.float32),
        "b_hh": s * jax.random.normal(k4, (4 * hidden_size,), jnp.float32),
    }


def reference_forward(x, x_len, params):
    """Pure-JAX f32 reference mirroring the PyTorch packed-LSTM math."""
    B, L, E = x.shape
    H = params["w_hh"].shape[0]
    wih, whh = params["w_ih"], params["w_hh"]
    b = (params["b_ih"] + params["b_hh"]).reshape(1, 4 * H)

    def step(carry, inp):
        h, c = carry
        xt, t = inp
        gates = xt @ wih + h @ whh + b
        i = jax.nn.sigmoid(gates[:, 0 * H:1 * H])
        f = jax.nn.sigmoid(gates[:, 1 * H:2 * H])
        g = jnp.tanh(gates[:, 2 * H:3 * H])
        o = jax.nn.sigmoid(gates[:, 3 * H:4 * H])
        c_new = f * c + i * g
        h_new = o * jnp.tanh(c_new)
        valid = (x_len[:, None] > t).astype(jnp.float32)
        h = valid * h_new + (1.0 - valid) * h
        c = valid * c_new + (1.0 - valid) * c
        return (h, c), valid * h_new

    (h_T, _), hh = lax.scan(
        step, (jnp.zeros((B, H), jnp.float32), jnp.zeros((B, H), jnp.float32)),
        (jnp.transpose(x, (1, 0, 2)), jnp.arange(L)))
    return jnp.transpose(hh, (1, 0, 2)), h_T


if __name__ == "__main__":
    B, L, E, H = 16, 8, 32, 32   # batch, seq_len, embed_size, hidden_size

    key = jax.random.PRNGKey(0)
    k_x, k_p = jax.random.split(key)
    x = jax.random.normal(k_x, (B, L, E), dtype=jnp.float32)
    x_len = jnp.array([8, 5, 3, 8, 1, 7, 2, 6, 4, 8, 5, 3, 7, 2, 6, 8],
                      dtype=jnp.int32)          # max == L (see TODO above)
    params = init_params(k_p, E, H)

    # At the demo size, TB = B (single grid step); pass batch_tile=B//2 on
    # v7x if both TensorCores should be used.
    hh, ht = encoder_rnn_forward(x, x_len, params)
    hh, ht = jax.block_until_ready((hh, ht))
    assert hh.shape == (B, L, H), hh.shape
    assert ht.shape == (B, H), ht.shape

    ref_hh, ref_ht = reference_forward(x, x_len, params)
    # bf16 MXU operands vs f32 reference: values are tanh/sigmoid-bounded, so a
    # loose absolute tolerance is appropriate.
    assert jnp.allclose(hh, ref_hh, atol=3e-2, rtol=3e-2), \
        float(jnp.max(jnp.abs(hh - ref_hh)))
    assert jnp.allclose(ht, ref_ht, atol=3e-2, rtol=3e-2), \
        float(jnp.max(jnp.abs(ht - ref_ht)))

    print("KERNEL_OK")
</pallas_src>

<mosaic_0001>
module attributes {stable_mosaic.version = 11 : i64} {
  func.func @lstm_encoder_kernel(%arg0: i32, %arg1: memref<16x8x32xbf16, #tpu.memory_space<vmem>>, %arg2: memref<16x1xi32, #tpu.memory_space<vmem>>, %arg3: memref<32x128xbf16, #tpu.memory_space<vmem>>, %arg4: memref<32x128xbf16, #tpu.memory_space<vmem>>, %arg5: memref<1x128xf32, #tpu.memory_space<vmem>>, %arg6: memref<16x256xf32, #tpu.memory_space<vmem>>, %arg7: memref<16x32xf32, #tpu.memory_space<vmem>>) attributes {dimension_semantics = [#tpu.dimension_semantics<parallel>], iteration_bounds = array<i64: 1>, scalar_prefetch = 0 : i64, scratch_operands = 0 : i64, tpu.core_type = #tpu.core_type<tc>, window_params = [{transform_indices = @transform_0, window_bounds = array<i64: 16, 8, 32>}, {transform_indices = @transform_1, window_bounds = array<i64: 16, 1>}, {pipeline_mode = #tpu.pipeline_mode<synchronous>, transform_indices = @transform_2, window_bounds = array<i64: 32, 128>}, {pipeline_mode = #tpu.pipeline_mode<synchronous>, transform_indices = @transform_3, window_bounds = array<i64: 32, 128>}, {pipeline_mode = #tpu.pipeline_mode<synchronous>, transform_indices = @transform_4, window_bounds = array<i64: 1, 128>}, {transform_indices = @transform_5, window_bounds = array<i64: 16, 256>}, {transform_indices = @transform_6, window_bounds = array<i64: 16, 32>}]} {
    %c0 = arith.constant 0 : index
    %c0_0 = arith.constant 0 : index
    %c0_1 = arith.constant 0 : index
    %0 = vector.load %arg1[%c0, %c0_0, %c0_1] : memref<16x8x32xbf16, #tpu.memory_space<vmem>>, vector<16x8x32xbf16>
    %1 = vector.shape_cast %0 : vector<16x8x32xbf16> to vector<128x32xbf16>
    %c0_2 = arith.constant 0 : index
    %c0_3 = arith.constant 0 : index
    %2 = vector.load %arg3[%c0_2, %c0_3] : memref<32x128xbf16, #tpu.memory_space<vmem>>, vector<32x128xbf16>
    %cst = arith.constant dense<0.000000e+00> : vector<128x128xf32>
    %3 = tpu.matmul %1, %2, %cst {dimension_numbers = #tpu.dot_dimension_numbers<[1], [0], [0], [1], [0, 0, 1, 1], [], []>} : vector<128x32xbf16>, vector<32x128xbf16>, vector<128x128xf32> -> vector<128x128xf32>
    %c0_4 = arith.constant 0 : index
    %c0_5 = arith.constant 0 : index
    %4 = vector.load %arg5[%c0_4, %c0_5] : memref<1x128xf32, #tpu.memory_space<vmem>>, vector<1x128xf32>
    %5 = vector.broadcast %4 : vector<1x128xf32> to vector<128x128xf32>
    %6 = arith.addf %3, %5 : vector<128x128xf32>
    %7 = vector.shape_cast %6 : vector<128x128xf32> to vector<16x8x128xf32>
    %c0_6 = arith.constant 0 : index
    %c0_7 = arith.constant 0 : index
    %8 = vector.load %arg2[%c0_6, %c0_7] : memref<16x1xi32, #tpu.memory_space<vmem>>, vector<16x1xi32>
    %c0_8 = arith.constant 0 : index
    %c0_9 = arith.constant 0 : index
    %9 = vector.load %arg4[%c0_8, %c0_9] : memref<32x128xbf16, #tpu.memory_space<vmem>>, vector<32x128xbf16>
    %cst_10 = arith.constant 0.000000e+00 : f32
    %10 = vector.broadcast %cst_10 : f32 to vector<16x32xf32>
    %cst_11 = arith.constant 0.000000e+00 : f32
    %11 = vector.broadcast %cst_11 : f32 to vector<16x32xf32>
    %12 = vector.extract_strided_slice %7 {offsets = [0, 0, 0], sizes = [16, 1, 128], strides = [1, 1, 1]} : vector<16x8x128xf32> to vector<16x1x128xf32>
    %13 = vector.shape_cast %12 : vector<16x1x128xf32> to vector<16x128xf32>
    %14 = arith.truncf %10 : vector<16x32xf32> to vector<16x32xbf16>
    %cst_12 = arith.constant dense<0.000000e+00> : vector<16x128xf32>
    %15 = tpu.matmul %14, %9, %cst_12 {dimension_numbers = #tpu.dot_dimension_numbers<[1], [0], [0], [1], [0, 0, 1, 1], [], []>} : vector<16x32xbf16>, vector<32x128xbf16>, vector<16x128xf32> -> vector<16x128xf32>
    %16 = arith.addf %13, %15 : vector<16x128xf32>
    %17 = arith.negf %16 : vector<16x128xf32>
    %18 = math.exp %17 : vector<16x128xf32>
    %cst_13 = arith.constant 1.000000e+00 : f32
    %19 = vector.broadcast %cst_13 : f32 to vector<16x128xf32>
    %20 = arith.addf %19, %18 : vector<16x128xf32>
    %21 = arith.divf %19, %20 : vector<16x128xf32>
    %22 = math.tanh %16 : vector<16x128xf32>
    %23 = vector.extract_strided_slice %21 {offsets = [0, 0], sizes = [16, 32], strides = [1, 1]} : vector<16x128xf32> to vector<16x32xf32>
    %24 = vector.extract_strided_slice %21 {offsets = [0, 32], sizes = [16, 32], strides = [1, 1]} : vector<16x128xf32> to vector<16x32xf32>
    %25 = vector.extract_strided_slice %22 {offsets = [0, 64], sizes = [16, 32], strides = [1, 1]} : vector<16x128xf32> to vector<16x32xf32>
    %26 = vector.extract_strided_slice %21 {offsets = [0, 96], sizes = [16, 32], strides = [1, 1]} : vector<16x128xf32> to vector<16x32xf32>
    %27 = arith.mulf %24, %11 : vector<16x32xf32>
    %28 = arith.mulf %23, %25 : vector<16x32xf32>
    %29 = arith.addf %27, %28 : vector<16x32xf32>
    %30 = math.tanh %29 : vector<16x32xf32>
    %31 = arith.mulf %26, %30 : vector<16x32xf32>
    %c0_i32 = arith.constant 0 : i32
    %32 = vector.broadcast %c0_i32 : i32 to vector<16x1xi32>
    %33 = arith.cmpi sgt, %8, %32 : vector<16x1xi32>
    %34 = vector.shape_cast %33 : vector<16x1xi1> to vector<16x1xi1>
    %35 = vector.broadcast %34 : vector<16x1xi1> to vector<16x32xi1>
    %36 = arith.select %35, %31, %10 : vector<16x32xi1>, vector<16x32xf32>
    %37 = vector.shape_cast %33 : vector<16x1xi1> to vector<16x1xi1>
    %38 = vector.broadcast %37 : vector<16x1xi1> to vector<16x32xi1>
    %39 = arith.select %38, %29, %11 : vector<16x32xi1>, vector<16x32xf32>
    %cst_14 = arith.constant 0.000000e+00 : f32
    %40 = vector.shape_cast %33 : vector<16x1xi1> to vector<16x1xi1>
    %41 = vector.broadcast %40 : vector<16x1xi1> to vector<16x32xi1>
    %42 = vector.broadcast %cst_14 : f32 to vector<16x32xf32>
    %43 = arith.select %41, %31, %42 : vector<16x32xi1>, vector<16x32xf32>
    %44 = vector.extract_strided_slice %7 {offsets = [0, 1, 0], sizes = [16, 1, 128], strides = [1, 1, 1]} : vector<16x8x128xf32> to vector<16x1x128xf32>
    %45 = vector.shape_cast %44 : vector<16x1x128xf32> to vector<16x128xf32>
    %46 = arith.truncf %36 : vector<16x32xf32> to vector<16x32xbf16>
    %cst_15 = arith.constant dense<0.000000e+00> : vector<16x128xf32>
    %47 = tpu.matmul %46, %9, %cst_15 {dimension_numbers = #tpu.dot_dimension_numbers<[1], [0], [0], [1], [0, 0, 1, 1], [], []>} : vector<16x32xbf16>, vector<32x128xbf16>, vector<16x128xf32> -> vector<16x128xf32>
    %48 = arith.addf %45, %47 : vector<16x128xf32>
    %49 = arith.negf %48 : vector<16x128xf32>
    %50 = math.exp %49 : vector<16x128xf32>
    %cst_16 = arith.constant 1.000000e+00 : f32
    %51 = vector.broadcast %cst_16 : f32 to vector<16x128xf32>
    %52 = arith.addf %51, %50 : vector<16x128xf32>
    %53 = arith.divf %51, %52 : vector<16x128xf32>
    %54 = math.tanh %48 : vector<16x128xf32>
    %55 = vector.extract_strided_slice %53 {offsets = [0, 0], sizes = [16, 32], strides = [1, 1]} : vector<16x128xf32> to vector<16x32xf32>
    %56 = vector.extract_strided_slice %53 {offsets = [0, 32], sizes = [16, 32], strides = [1, 1]} : vector<16x128xf32> to vector<16x32xf32>
    %57 = vector.extract_strided_slice %54 {offsets = [0, 64], sizes = [16, 32], strides = [1, 1]} : vector<16x128xf32> to vector<16x32xf32>
    %58 = vector.extract_strided_slice %53 {offsets = [0, 96], sizes = [16, 32], strides = [1, 1]} : vector<16x128xf32> to vector<16x32xf32>
    %59 = arith.mulf %56, %39 : vector<16x32xf32>
    %60 = arith.mulf %55, %57 : vector<16x32xf32>
    %61 = arith.addf %59, %60 : vector<16x32xf32>
    %62 = math.tanh %61 : vector<16x32xf32>
    %63 = arith.mulf %58, %62 : vector<16x32xf32>
    %c1_i32 = arith.constant 1 : i32
    %64 = vector.broadcast %c1_i32 : i32 to vector<16x1xi32>
    %65 = arith.cmpi sgt, %8, %64 : vector<16x1xi32>
    %66 = vector.shape_cast %65 : vector<16x1xi1> to vector<16x1xi1>
    %67 = vector.broadcast %66 : vector<16x1xi1> to vector<16x32xi1>
    %68 = arith.select %67, %63, %36 : vector<16x32xi1>, vector<16x32xf32>
    %69 = vector.shape_cast %65 : vector<16x1xi1> to vector<16x1xi1>
    %70 = vector.broadcast %69 : vector<16x1xi1> to vector<16x32xi1>
    %71 = arith.select %70, %61, %39 : vector<16x32xi1>, vector<16x32xf32>
    %cst_17 = arith.constant 0.000000e+00 : f32
    %72 = vector.shape_cast %65 : vector<16x1xi1> to vector<16x1xi1>
    %73 = vector.broadcast %72 : vector<16x1xi1> to vector<16x32xi1>
    %74 = vector.broadcast %cst_17 : f32 to vector<16x32xf32>
    %75 = arith.select %73, %63, %74 : vector<16x32xi1>, vector<16x32xf32>
    %76 = vector.extract_strided_slice %7 {offsets = [0, 2, 0], sizes = [16, 1, 128], strides = [1, 1, 1]} : vector<16x8x128xf32> to vector<16x1x128xf32>
    %77 = vector.shape_cast %76 : vector<16x1x128xf32> to vector<16x128xf32>
    %78 = arith.truncf %68 : vector<16x32xf32> to vector<16x32xbf16>
    %cst_18 = arith.constant dense<0.000000e+00> : vector<16x128xf32>
    %79 = tpu.matmul %78, %9, %cst_18 {dimension_numbers = #tpu.dot_dimension_numbers<[1], [0], [0], [1], [0, 0, 1, 1], [], []>} : vector<16x32xbf16>, vector<32x128xbf16>, vector<16x128xf32> -> vector<16x128xf32>
    %80 = arith.addf %77, %79 : vector<16x128xf32>
    %81 = arith.negf %80 : vector<16x128xf32>
    %82 = math.exp %81 : vector<16x128xf32>
    %cst_19 = arith.constant 1.000000e+00 : f32
    %83 = vector.broadcast %cst_19 : f32 to vector<16x128xf32>
    %84 = arith.addf %83, %82 : vector<16x128xf32>
    %85 = arith.divf %83, %84 : vector<16x128xf32>
    %86 = math.tanh %80 : vector<16x128xf32>
    %87 = vector.extract_strided_slice %85 {offsets = [0, 0], sizes = [16, 32], strides = [1, 1]} : vector<16x128xf32> to vector<16x32xf32>
    %88 = vector.extract_strided_slice %85 {offsets = [0, 32], sizes = [16, 32], strides = [1, 1]} : vector<16x128xf32> to vector<16x32xf32>
    %89 = vector.extract_strided_slice %86 {offsets = [0, 64], sizes = [16, 32], strides = [1, 1]} : vector<16x128xf32> to vector<16x32xf32>
    %90 = vector.extract_strided_slice %85 {offsets = [0, 96], sizes = [16, 32], strides = [1, 1]} : vector<16x128xf32> to vector<16x32xf32>
    %91 = arith.mulf %88, %71 : vector<16x32xf32>
    %92 = arith.mulf %87, %89 : vector<16x32xf32>
    %93 = arith.addf %91, %92 : vector<16x32xf32>
    %94 = math.tanh %93 : vector<16x32xf32>
    %95 = arith.mulf %90, %94 : vector<16x32xf32>
    %c2_i32 = arith.constant 2 : i32
    %96 = vector.broadcast %c2_i32 : i32 to vector<16x1xi32>
    %97 = arith.cmpi sgt, %8, %96 : vector<16x1xi32>
    %98 = vector.shape_cast %97 : vector<16x1xi1> to vector<16x1xi1>
    %99 = vector.broadcast %98 : vector<16x1xi1> to vector<16x32xi1>
    %100 = arith.select %99, %95, %68 : vector<16x32xi1>, vector<16x32xf32>
    %101 = vector.shape_cast %97 : vector<16x1xi1> to vector<16x1xi1>
    %102 = vector.broadcast %101 : vector<16x1xi1> to vector<16x32xi1>
    %103 = arith.select %102, %93, %71 : vector<16x32xi1>, vector<16x32xf32>
    %cst_20 = arith.constant 0.000000e+00 : f32
    %104 = vector.shape_cast %97 : vector<16x1xi1> to vector<16x1xi1>
    %105 = vector.broadcast %104 : vector<16x1xi1> to vector<16x32xi1>
    %106 = vector.broadcast %cst_20 : f32 to vector<16x32xf32>
    %107 = arith.select %105, %95, %106 : vector<16x32xi1>, vector<16x32xf32>
    %108 = vector.extract_strided_slice %7 {offsets = [0, 3, 0], sizes = [16, 1, 128], strides = [1, 1, 1]} : vector<16x8x128xf32> to vector<16x1x128xf32>
    %109 = vector.shape_cast %108 : vector<16x1x128xf32> to vector<16x128xf32>
    %110 = arith.truncf %100 : vector<16x32xf32> to vector<16x32xbf16>
    %cst_21 = arith.constant dense<0.000000e+00> : vector<16x128xf32>
    %111 = tpu.matmul %110, %9, %cst_21 {dimension_numbers = #tpu.dot_dimension_numbers<[1], [0], [0], [1], [0, 0, 1, 1], [], []>} : vector<16x32xbf16>, vector<32x128xbf16>, vector<16x128xf32> -> vector<16x128xf32>
    %112 = arith.addf %109, %111 : vector<16x128xf32>
    %113 = arith.negf %112 : vector<16x128xf32>
    %114 = math.exp %113 : vector<16x128xf32>
    %cst_22 = arith.constant 1.000000e+00 : f32
    %115 = vector.broadcast %cst_22 : f32 to vector<16x128xf32>
    %116 = arith.addf %115, %114 : vector<16x128xf32>
    %117 = arith.divf %115, %116 : vector<16x128xf32>
    %118 = math.tanh %112 : vector<16x128xf32>
    %119 = vector.extract_strided_slice %117 {offsets = [0, 0], sizes = [16, 32], strides = [1, 1]} : vector<16x128xf32> to vector<16x32xf32>
    %120 = vector.extract_strided_slice %117 {offsets = [0, 32], sizes = [16, 32], strides = [1, 1]} : vector<16x128xf32> to vector<16x32xf32>
    %121 = vector.extract_strided_slice %118 {offsets = [0, 64], sizes = [16, 32], strides = [1, 1]} : vector<16x128xf32> to vector<16x32xf32>
    %122 = vector.extract_strided_slice %117 {offsets = [0, 96], sizes = [16, 32], strides = [1, 1]} : vector<16x128xf32> to vector<16x32xf32>
    %123 = arith.mulf %120, %103 : vector<16x32xf32>
    %124 = arith.mulf %119, %121 : vector<16x32xf32>
    %125 = arith.addf %123, %124 : vector<16x32xf32>
    %126 = math.tanh %125 : vector<16x32xf32>
    %127 = arith.mulf %122, %126 : vector<16x32xf32>
    %c3_i32 = arith.constant 3 : i32
    %128 = vector.broadcast %c3_i32 : i32 to vector<16x1xi32>
    %129 = arith.cmpi sgt, %8, %128 : vector<16x1xi32>
    %130 = vector.shape_cast %129 : vector<16x1xi1> to vector<16x1xi1>
    %131 = vector.broadcast %130 : vector<16x1xi1> to vector<16x32xi1>
    %132 = arith.select %131, %127, %100 : vector<16x32xi1>, vector<16x32xf32>
    %133 = vector.shape_cast %129 : vector<16x1xi1> to vector<16x1xi1>
    %134 = vector.broadcast %133 : vector<16x1xi1> to vector<16x32xi1>
    %135 = arith.select %134, %125, %103 : vector<16x32xi1>, vector<16x32xf32>
    %cst_23 = arith.constant 0.000000e+00 : f32
    %136 = vector.shape_cast %129 : vector<16x1xi1> to vector<16x1xi1>
    %137 = vector.broadcast %136 : vector<16x1xi1> to vector<16x32xi1>
    %138 = vector.broadcast %cst_23 : f32 to vector<16x32xf32>
    %139 = arith.select %137, %127, %138 : vector<16x32xi1>, vector<16x32xf32>
    %140 = vector.extract_strided_slice %7 {offsets = [0, 4, 0], sizes = [16, 1, 128], strides = [1, 1, 1]} : vector<16x8x128xf32> to vector<16x1x128xf32>
    %141 = vector.shape_cast %140 : vector<16x1x128xf32> to vector<16x128xf32>
    %142 = arith.truncf %132 : vector<16x32xf32> to vector<16x32xbf16>
    %cst_24 = arith.constant dense<0.000000e+00> : vector<16x128xf32>
    %143 = tpu.matmul %142, %9, %cst_24 {dimension_numbers = #tpu.dot_dimension_numbers<[1], [0], [0], [1], [0, 0, 1, 1], [], []>} : vector<16x32xbf16>, vector<32x128xbf16>, vector<16x128xf32> -> vector<16x128xf32>
    %144 = arith.addf %141, %143 : vector<16x128xf32>
    %145 = arith.negf %144 : vector<16x128xf32>
    %146 = math.exp %145 : vector<16x128xf32>
    %cst_25 = arith.constant 1.000000e+00 : f32
    %147 = vector.broadcast %cst_25 : f32 to vector<16x128xf32>
    %148 = arith.addf %147, %146 : vector<16x128xf32>
    %149 = arith.divf %147, %148 : vector<16x128xf32>
    %150 = math.tanh %144 : vector<16x128xf32>
    %151 = vector.extract_strided_slice %149 {offsets = [0, 0], sizes = [16, 32], strides = [1, 1]} : vector<16x128xf32> to vector<16x32xf32>
    %152 = vector.extract_strided_slice %149 {offsets = [0, 32], sizes = [16, 32], strides = [1, 1]} : vector<16x128xf32> to vector<16x32xf32>
    %153 = vector.extract_strided_slice %150 {offsets = [0, 64], sizes = [16, 32], strides = [1, 1]} : vector<16x128xf32> to vector<16x32xf32>
    %154 = vector.extract_strided_slice %149 {offsets = [0, 96], sizes = [16, 32], strides = [1, 1]} : vector<16x128xf32> to vector<16x32xf32>
    %155 = arith.mulf %152, %135 : vector<16x32xf32>
    %156 = arith.mulf %151, %153 : vector<16x32xf32>
    %157 = arith.addf %155, %156 : vector<16x32xf32>
    %158 = math.tanh %157 : vector<16x32xf32>
    %159 = arith.mulf %154, %158 : vector<16x32xf32>
    %c4_i32 = arith.constant 4 : i32
    %160 = vector.broadcast %c4_i32 : i32 to vector<16x1xi32>
    %161 = arith.cmpi sgt, %8, %160 : vector<16x1xi32>
    %162 = vector.shape_cast %161 : vector<16x1xi1> to vector<16x1xi1>
    %163 = vector.broadcast %162 : vector<16x1xi1> to vector<16x32xi1>
    %164 = arith.select %163, %159, %132 : vector<16x32xi1>, vector<16x32xf32>
    %165 = vector.shape_cast %161 : vector<16x1xi1> to vector<16x1xi1>
    %166 = vector.broadcast %165 : vector<16x1xi1> to vector<16x32xi1>
    %167 = arith.select %166, %157, %135 : vector<16x32xi1>, vector<16x32xf32>
    %cst_26 = arith.constant 0.000000e+00 : f32
    %168 = vector.shape_cast %161 : vector<16x1xi1> to vector<16x1xi1>
    %169 = vector.broadcast %168 : vector<16x1xi1> to vector<16x32xi1>
    %170 = vector.broadcast %cst_26 : f32 to vector<16x32xf32>
    %171 = arith.select %169, %159, %170 : vector<16x32xi1>, vector<16x32xf32>
    %172 = vector.extract_strided_slice %7 {offsets = [0, 5, 0], sizes = [16, 1, 128], strides = [1, 1, 1]} : vector<16x8x128xf32> to vector<16x1x128xf32>
    %173 = vector.shape_cast %172 : vector<16x1x128xf32> to vector<16x128xf32>
    %174 = arith.truncf %164 : vector<16x32xf32> to vector<16x32xbf16>
    %cst_27 = arith.constant dense<0.000000e+00> : vector<16x128xf32>
    %175 = tpu.matmul %174, %9, %cst_27 {dimension_numbers = #tpu.dot_dimension_numbers<[1], [0], [0], [1], [0, 0, 1, 1], [], []>} : vector<16x32xbf16>, vector<32x128xbf16>, vector<16x128xf32> -> vector<16x128xf32>
    %176 = arith.addf %173, %175 : vector<16x128xf32>
    %177 = arith.negf %176 : vector<16x128xf32>
    %178 = math.exp %177 : vector<16x128xf32>
    %cst_28 = arith.constant 1.000000e+00 : f32
    %179 = vector.broadcast %cst_28 : f32 to vector<16x128xf32>
    %180 = arith.addf %179, %178 : vector<16x128xf32>
    %181 = arith.divf %179, %180 : vector<16x128xf32>
    %182 = math.tanh %176 : vector<16x128xf32>
    %183 = vector.extract_strided_slice %181 {offsets = [0, 0], sizes = [16, 32], strides = [1, 1]} : vector<16x128xf32> to vector<16x32xf32>
    %184 = vector.extract_strided_slice %181 {offsets = [0, 32], sizes = [16, 32], strides = [1, 1]} : vector<16x128xf32> to vector<16x32xf32>
    %185 = vector.extract_strided_slice %182 {offsets = [0, 64], sizes = [16, 32], strides = [1, 1]} : vector<16x128xf32> to vector<16x32xf32>
    %186 = vector.extract_strided_slice %181 {offsets = [0, 96], sizes = [16, 32], strides = [1, 1]} : vector<16x128xf32> to vector<16x32xf32>
    %187 = arith.mulf %184, %167 : vector<16x32xf32>
    %188 = arith.mulf %183, %185 : vector<16x32xf32>
    %189 = arith.addf %187, %188 : vector<16x32xf32>
    %190 = math.tanh %189 : vector<16x32xf32>
    %191 = arith.mulf %186, %190 : vector<16x32xf32>
    %c5_i32 = arith.constant 5 : i32
    %192 = vector.broadcast %c5_i32 : i32 to vector<16x1xi32>
    %193 = arith.cmpi sgt, %8, %192 : vector<16x1xi32>
    %194 = vector.shape_cast %193 : vector<16x1xi1> to vector<16x1xi1>
    %195 = vector.broadcast %194 : vector<16x1xi1> to vector<16x32xi1>
    %196 = arith.select %195, %191, %164 : vector<16x32xi1>, vector<16x32xf32>
    %197 = vector.shape_cast %193 : vector<16x1xi1> to vector<16x1xi1>
    %198 = vector.broadcast %197 : vector<16x1xi1> to vector<16x32xi1>
    %199 = arith.select %198, %189, %167 : vector<16x32xi1>, vector<16x32xf32>
    %cst_29 = arith.constant 0.000000e+00 : f32
    %200 = vector.shape_cast %193 : vector<16x1xi1> to vector<16x1xi1>
    %201 = vector.broadcast %200 : vector<16x1xi1> to vector<16x32xi1>
    %202 = vector.broadcast %cst_29 : f32 to vector<16x32xf32>
    %203 = arith.select %201, %191, %202 : vector<16x32xi1>, vector<16x32xf32>
    %204 = vector.extract_strided_slice %7 {offsets = [0, 6, 0], sizes = [16, 1, 128], strides = [1, 1, 1]} : vector<16x8x128xf32> to vector<16x1x128xf32>
    %205 = vector.shape_cast %204 : vector<16x1x128xf32> to vector<16x128xf32>
    %206 = arith.truncf %196 : vector<16x32xf32> to vector<16x32xbf16>
    %cst_30 = arith.constant dense<0.000000e+00> : vector<16x128xf32>
    %207 = tpu.matmul %206, %9, %cst_30 {dimension_numbers = #tpu.dot_dimension_numbers<[1], [0], [0], [1], [0, 0, 1, 1], [], []>} : vector<16x32xbf16>, vector<32x128xbf16>, vector<16x128xf32> -> vector<16x128xf32>
    %208 = arith.addf %205, %207 : vector<16x128xf32>
    %209 = arith.negf %208 : vector<16x128xf32>
    %210 = math.exp %209 : vector<16x128xf32>
    %cst_31 = arith.constant 1.000000e+00 : f32
    %211 = vector.broadcast %cst_31 : f32 to vector<16x128xf32>
    %212 = arith.addf %211, %210 : vector<16x128xf32>
    %213 = arith.divf %211, %212 : vector<16x128xf32>
    %214 = math.tanh %208 : vector<16x128xf32>
    %215 = vector.extract_strided_slice %213 {offsets = [0, 0], sizes = [16, 32], strides = [1, 1]} : vector<16x128xf32> to vector<16x32xf32>
    %216 = vector.extract_strided_slice %213 {offsets = [0, 32], sizes = [16, 32], strides = [1, 1]} : vector<16x128xf32> to vector<16x32xf32>
    %217 = vector.extract_strided_slice %214 {offsets = [0, 64], sizes = [16, 32], strides = [1, 1]} : vector<16x128xf32> to vector<16x32xf32>
    %218 = vector.extract_strided_slice %213 {offsets = [0, 96], sizes = [16, 32], strides = [1, 1]} : vector<16x128xf32> to vector<16x32xf32>
    %219 = arith.mulf %216, %199 : vector<16x32xf32>
    %220 = arith.mulf %215, %217 : vector<16x32xf32>
    %221 = arith.addf %219, %220 : vector<16x32xf32>
    %222 = math.tanh %221 : vector<16x32xf32>
    %223 = arith.mulf %218, %222 : vector<16x32xf32>
    %c6_i32 = arith.constant 6 : i32
    %224 = vector.broadcast %c6_i32 : i32 to vector<16x1xi32>
    %225 = arith.cmpi sgt, %8, %224 : vector<16x1xi32>
    %226 = vector.shape_cast %225 : vector<16x1xi1> to vector<16x1xi1>
    %227 = vector.broadcast %226 : vector<16x1xi1> to vector<16x32xi1>
    %228 = arith.select %227, %223, %196 : vector<16x32xi1>, vector<16x32xf32>
    %229 = vector.shape_cast %225 : vector<16x1xi1> to vector<16x1xi1>
    %230 = vector.broadcast %229 : vector<16x1xi1> to vector<16x32xi1>
    %231 = arith.select %230, %221, %199 : vector<16x32xi1>, vector<16x32xf32>
    %cst_32 = arith.constant 0.000000e+00 : f32
    %232 = vector.shape_cast %225 : vector<16x1xi1> to vector<16x1xi1>
    %233 = vector.broadcast %232 : vector<16x1xi1> to vector<16x32xi1>
    %234 = vector.broadcast %cst_32 : f32 to vector<16x32xf32>
    %235 = arith.select %233, %223, %234 : vector<16x32xi1>, vector<16x32xf32>
    %236 = vector.extract_strided_slice %7 {offsets = [0, 7, 0], sizes = [16, 1, 128], strides = [1, 1, 1]} : vector<16x8x128xf32> to vector<16x1x128xf32>
    %237 = vector.shape_cast %236 : vector<16x1x128xf32> to vector<16x128xf32>
    %238 = arith.truncf %228 : vector<16x32xf32> to vector<16x32xbf16>
    %cst_33 = arith.constant dense<0.000000e+00> : vector<16x128xf32>
    %239 = tpu.matmul %238, %9, %cst_33 {dimension_numbers = #tpu.dot_dimension_numbers<[1], [0], [0], [1], [0, 0, 1, 1], [], []>} : vector<16x32xbf16>, vector<32x128xbf16>, vector<16x128xf32> -> vector<16x128xf32>
    %240 = arith.addf %237, %239 : vector<16x128xf32>
    %241 = arith.negf %240 : vector<16x128xf32>
    %242 = math.exp %241 : vector<16x128xf32>
    %cst_34 = arith.constant 1.000000e+00 : f32
    %243 = vector.broadcast %cst_34 : f32 to vector<16x128xf32>
    %244 = arith.addf %243, %242 : vector<16x128xf32>
    %245 = arith.divf %243, %244 : vector<16x128xf32>
    %246 = math.tanh %240 : vector<16x128xf32>
    %247 = vector.extract_strided_slice %245 {offsets = [0, 0], sizes = [16, 32], strides = [1, 1]} : vector<16x128xf32> to vector<16x32xf32>
    %248 = vector.extract_strided_slice %245 {offsets = [0, 32], sizes = [16, 32], strides = [1, 1]} : vector<16x128xf32> to vector<16x32xf32>
    %249 = vector.extract_strided_slice %246 {offsets = [0, 64], sizes = [16, 32], strides = [1, 1]} : vector<16x128xf32> to vector<16x32xf32>
    %250 = vector.extract_strided_slice %245 {offsets = [0, 96], sizes = [16, 32], strides = [1, 1]} : vector<16x128xf32> to vector<16x32xf32>
    %251 = arith.mulf %248, %231 : vector<16x32xf32>
    %252 = arith.mulf %247, %249 : vector<16x32xf32>
    %253 = arith.addf %251, %252 : vector<16x32xf32>
    %254 = math.tanh %253 : vector<16x32xf32>
    %255 = arith.mulf %250, %254 : vector<16x32xf32>
    %c7_i32 = arith.constant 7 : i32
    %256 = vector.broadcast %c7_i32 : i32 to vector<16x1xi32>
    %257 = arith.cmpi sgt, %8, %256 : vector<16x1xi32>
    %258 = vector.shape_cast %257 : vector<16x1xi1> to vector<16x1xi1>
    %259 = vector.broadcast %258 : vector<16x1xi1> to vector<16x32xi1>
    %260 = arith.select %259, %255, %228 : vector<16x32xi1>, vector<16x32xf32>
    %cst_35 = arith.constant 0.000000e+00 : f32
    %261 = vector.shape_cast %257 : vector<16x1xi1> to vector<16x1xi1>
    %262 = vector.broadcast %261 : vector<16x1xi1> to vector<16x32xi1>
    %263 = vector.broadcast %cst_35 : f32 to vector<16x32xf32>
    %264 = arith.select %262, %255, %263 : vector<16x32xi1>, vector<16x32xf32>
    %265 = tpu.concatenate %43, %75, %107, %139, %171, %203, %235, %264 in 1 : vector<16x32xf32>, vector<16x32xf32>, vector<16x32xf32>, vector<16x32xf32>, vector<16x32xf32>, vector<16x32xf32>, vector<16x32xf32>, vector<16x32xf32> -> vector<16x256xf32>
    %c0_36 = arith.constant 0 : index
    %c0_37 = arith.constant 0 : index
    %266 = vector.load %arg6[%c0_36, %c0_37] : memref<16x256xf32, #tpu.memory_space<vmem>>, vector<16x256xf32>
    tpu.vector_store %arg6[%c0_36, %c0_37], %265 {strides = array<i32>} : memref<16x256xf32, #tpu.memory_space<vmem>>, vector<16x256xf32>,
    %c0_38 = arith.constant 0 : index
    %c0_39 = arith.constant 0 : index
    %267 = vector.load %arg7[%c0_38, %c0_39] : memref<16x32xf32, #tpu.memory_space<vmem>>, vector<16x32xf32>
    tpu.vector_store %arg7[%c0_38, %c0_39], %260 {strides = array<i32>} : memref<16x32xf32, #tpu.memory_space<vmem>>, vector<16x32xf32>,
    return
  }
  func.func @transform_0(%arg0: i32) -> (i32, i32, i32) {
    %c0_i32 = arith.constant 0 : i32
    %c0_i32_0 = arith.constant 0 : i32
    %c0_i32_1 = arith.constant 0 : i32
    return %arg0, %c0_i32, %c0_i32_0 : i32, i32, i32
  }
  func.func @transform_1(%arg0: i32) -> (i32, i32) {
    %c0_i32 = arith.constant 0 : i32
    %c0_i32_0 = arith.constant 0 : i32
    return %arg0, %c0_i32 : i32, i32
  }
  func.func @transform_2(%arg0: i32) -> (i32, i32) {
    %c0_i32 = arith.constant 0 : i32
    %c0_i32_0 = arith.constant 0 : i32
    %c0_i32_1 = arith.constant 0 : i32
    return %c0_i32, %c0_i32_0 : i32, i32
  }
  func.func @transform_3(%arg0: i32) -> (i32, i32) {
    %c0_i32 = arith.constant 0 : i32
    %c0_i32_0 = arith.constant 0 : i32
    %c0_i32_1 = arith.constant 0 : i32
    return %c0_i32, %c0_i32_0 : i32, i32
  }
  func.func @transform_4(%arg0: i32) -> (i32, i32) {
    %c0_i32 = arith.constant 0 : i32
    %c0_i32_0 = arith.constant 0 : i32
    %c0_i32_1 = arith.constant 0 : i32
    return %c0_i32, %c0_i32_0 : i32, i32
  }
  func.func @transform_5(%arg0: i32) -> (i32, i32) {
    %c0_i32 = arith.constant 0 : i32
    %c0_i32_0 = arith.constant 0 : i32
    return %arg0, %c0_i32 : i32, i32
  }
  func.func @transform_6(%arg0: i32) -> (i32, i32) {
    %c0_i32 = arith.constant 0 : i32
    %c0_i32_0 = arith.constant 0 : i32
    return %arg0, %c0_i32 : i32, i32
  }
}

</mosaic_0001>

<bundles_post_ra>
// kernel: encoder_rnn_forward.1
= control target key start
LH: loop header
LB: loop body
LE: loop exit
PB: predicated region body
PF: predicated region fallthrough
CT: control target
= control target key end

     0   :  { %v9869_v1 = vmov 0.0   ;;  %vm6847_vm0 = vmmov 0   ;;  %vm103_vm1 = vcmask 261120   ;;  %v9871_v6 = vmov 0   ;;  %s9862_s0 = inlined_call_operand.vmem [shape: bf16[16,8,32], index: 0, kind: input, shape index: {}]   ;;  %s9863_s1 = inlined_call_operand.vmem [shape: s32[16,1], index: 1, kind: input, shape index: {}]   ;;  %s9864_s2 = inlined_call_operand.vmem [shape: bf16[32,128], index: 2, kind: input, shape index: {}]   ;;  %s9865_s3 = inlined_call_operand.vmem [shape: bf16[32,128], index: 3, kind: input, shape index: {}]   ;;  %s9866_s4 = inlined_call_operand.vmem [shape: f32[1,128], index: 4, kind: input, shape index: {}]   ;;  %s9867_s5 = inlined_call_operand.vmem [shape: f32[16,256], index: 5, kind: output, shape index: {0}]   ;;  %s9868_s6 = inlined_call_operand.hbm [shape: f32[16,32], index: 6, kind: output, shape index: {1}]  }
   0x1   :  { %v5776_v0 = vld [vmem:[%s9864_s2 + $0x8] sm:$0xff]   ;;  %5701 = vmatprep.subr.bf16.mxu1 %v9869_v1  ;;  %v5778_v3 = vld [vmem:[%s9864_s2] sm:$0xff]   ;;  %5705 = vmatprep.mubr.msk.bf16.mxu1 %vm6847_vm0, %v9869_v1  ;;  %v5782_v8 = vld [vmem:[%s9862_s0 + $0x10] sm:$0xff]  }
   0x2   :  { %v5777_v2 = vld [vmem:[%s9865_s3 + $0x8] sm:$0xff]   ;;  %5681 = vmatprep.subr.bf16.mxu0 %v5776_v0  ;;  %v5779_v4 = vld [vmem:[%s9865_s3] sm:$0xff]   ;;  %5775 = vset.pattern.permute.xlu1 %v9871_v6 }
   0x3   :  { %5702 = vmatpush3.bf16.msra.mxu1 %v5777_v2  ;;  %5682 = vmatpush3.bf16.msra.mxu0 %v5776_v0  ;;  %v5780_v5 = vld [vmem:[%s9862_s0] sm:$0xff]   ;;  %v5781_v7 = vld [vmem:[%s9862_s0 + $0x8] sm:$0xff]  }
   0x4   :  { %5703 = vmatprep.subr.bf16.mxu1 %v9869_v1  ;;  %5683 = vmatprep.subr.bf16.mxu0 %v5778_v3 }
   0x5   :  { %5774 = vset.pattern.permute.xlu0 %v9871_v6  ;;  %5685 = vmatprep.mubr.msk.bf16.mxu0 %vm103_vm1, %v5780_v5 }
   0x7   :  { %5704 = vmatpush3.bf16.msra.mxu1 %v5779_v4  ;;  %5684 = vmatpush3.bf16.msra.mxu0 %v5778_v3 }
   0x8   :  { %5709 = vmatprep.subr.bf16.mxu1 %v9869_v1  ;;  %5733 = vmatprep.subr.bf16.mxu0 %v9869_v1 }
   0xa   :  { %5706 = vmatmul.mubr.bf16.vlgmr.msra.gmra.mxu1 %v9871_v6  ;;  %5686 = vmatmul.mubr.msk.bf16.vlgmr.msra.gmra.mxu0 %vm103_vm1, %v5781_v7 }
   0xb   :  { %5689 = vmatprep.mubr.msk.bf16.mxu0 %vm103_vm1, %v5782_v8  ;;  %5710 = vmatpush3.bf16.msra.mxu1 %v5777_v2 }
   0xc   :  { %5711 = vmatprep.subr.bf16.mxu1 %v9869_v1  ;;  %5713 = vmatprep.mubr.msk.bf16.mxu1 %vm6847_vm0, %v9869_v1 }
   0xd   :  { %12 = vsyncpa [#allocation3], 0  ;;  %5734 = vmatpush3.bf16.msra.mxu0 %v5777_v2  ;;  %v5783_v9 = vld [vmem:[%s9862_s0 + $0x18] sm:$0xff]   ;;  %v5784_v10 = vld [vmem:[%s9862_s0 + $0x20] sm:$0xff]   ;;  %vm748_vm2 = vcmask 1041409   ;;  %vm751_vm3 = vcmask 1042434  }
   0xe   :  { %5735 = vmatprep.subr.bf16.mxu0 %v9869_v1  ;;  %v5785_v11 = vld [vmem:[%s9862_s0 + $0x28] sm:$0xff]   ;;  %v5786_v12 = vld [vmem:[%s9862_s0 + $0x30] sm:$0xff]   ;;  %v5787_v13 = vld [vmem:[%s9862_s0 + $0x38] sm:$0xff]   ;;  %s6849_s0 = smov 64   ;;  %vm754_vm4 = vcmask 1043459   ;;  %vm757_vm5 = vcmask 1044484  }
   0xf   :  { %5712 = vmatpush3.bf16.msra.mxu1 %v5779_v4  ;;  %v6954_v14 = vld [vmem:[%s9866_s4] ss:$0 sm:$0xff]  ;;  %s6850_s4 = smov 32   ;;  %vm760_vm6 = vcmask 1045509   ;;  %vm763_vm7 = vcmask 1046534   ;;  %vm766_vm8 = vcmask 1047559  }
  0x10   :  { %5717 = vmatprep.subr.bf16.mxu1 %v9869_v1  ;;  %s6851_s26 = smov 96  }
  0x11   :  { %5736 = vmatpush3.bf16.msra.mxu0 %v5779_v4 }
  0x12   :  { %5690 = vmatmul.mubr.msk.bf16.gmra.mxu0 %vm103_vm1, %v5783_v9  ;;  %5749 = vmatprep.subr.bf16.mxu0 %v9869_v1 }
  0x13   :  { %5693 = vmatprep.mubr.msk.bf16.mxu0 %vm103_vm1, %v5784_v10 }
  0x1a   :  { %5694 = vmatmul.mubr.msk.bf16.gmra.mxu0 %vm103_vm1, %v5785_v11 }
  0x1b   :  { %5697 = vmatprep.mubr.msk.bf16.mxu0 %vm103_vm1, %v5786_v12 }
  0x22   :  { %5698 = vmatmul.mubr.msk.bf16.gmra.mxu0 %vm103_vm1, %v5787_v13 }
  0x23   :  { %5737 = vmatprep.mubr.msk.bf16.mxu0 %vm6847_vm0, %v9869_v1 }
  0xca   :  { %v6956_v15 = vpop.f32.mrf.mxu1  ;;  %v5687_v16 = vpop.f32.mrf.mxu0 }
  0xcb   :  { %v6959_v17 = vadd.f32 %v5687_v16, %v6954_v14  ;;  %v290_v20 = vrot.slane %v6956_v15, 2  ;;  %v291_v25 = vrot.slane %v6956_v15, 3  ;;  %v289_v32 = vrot.slane %v6956_v15, 1 }
  0xcc   :  { %v5707_v18 = vpop.f32.mrf.mxu1  ;;  %v162_v19 = vpop.f32.mrf.mxu0  ;;  %v292_v36 = vrot.slane %v6956_v15, 4  ;;  %v293_v41 = vrot.slane %v6956_v15, 5  ;;  %v294_v7 = vrot.slane %v6956_v15, 6 }
  0xcd   :  { %v6963_v21 = vadd.f32 %v6954_v14, %v162_v19  ;;  %v6968_v24 = vadd.f32 %v290_v20, %v6959_v17  ;;  %v295_v19 = vrot.slane %v6956_v15, 7 }
  0xce   :  { %v6965_v22 = vpop.f32.mrf.mxu1  ;;  %v5688_v23 = vpop.f32.mrf.mxu0 }
  0xcf   :  { %v6972_v26 = vadd.f32 %v5688_v23, %v6954_v14  ;;  %5788 = vtanh.f32 %v6968_v24  ;;  %v6977_v29 = vadd.f32 %v6956_v15, %v6963_v21  ;;  %v297_v44 = vrot.slane %v6965_v22, 2 }
  0xd0   :  { %v5708_v27 = vpop.f32.mrf.mxu1  ;;  %v165_v28 = vpop.f32.mrf.mxu0  ;;  %v298_v56 = vrot.slane %v6965_v22, 3  ;;  %v296_v60 = vrot.slane %v6965_v22, 1  ;;  %v301_v0 = vrot.slane %v6965_v22, 6  ;;  %v299_v12 = vrot.slane %v6965_v22, 4 }
  0xd1   :  { %v6980_v30 = vadd.f32 %v6954_v14, %v165_v28  ;;  %v6984_v33 = vadd.f32 %v291_v25, %v6972_v26  ;;  %5790 = vtanh.f32 %v6977_v29  ;;  %v300_v27 = vrot.slane %v6965_v22, 5 }
  0xd2   :  { %v5691_v31 = vpop.f32.mrf.mxu0 }
  0xd3   :  { %v6992_v37 = vadd.f32 %v289_v32, %v6980_v30  ;;  %5792 = vtanh.f32 %v6984_v33  ;;  %v7042_v2 = vadd.f32 %v5691_v31, %v6954_v14 }
  0xd4   :  { %v178_v34 = vpop.f32.mrf.mxu0 }
  0xd5   :  { %v6988_v35 = vadd.f32 %v6954_v14, %v178_v34  ;;  %5794 = vtanh.f32 %v6992_v37  ;;  %v325_v13 = vadd.f32 %v294_v7, %v7042_v2  ;;  %v302_v34 = vrot.slane %v6965_v22, 7 }
  0xd6   :  { %v5692_v38 = vpop.f32.mrf.mxu0 }
  0xd7   :  { %v6995_v39 = vadd.f32 %v292_v36, %v6988_v35  ;;  %v7060_v16 = vadd.f32 %v5692_v38, %v6954_v14 }
  0xd8   :  { %v181_v40 = vpop.f32.mrf.mxu0 }
  0xd9   :  { %v7000_v42 = vadd.f32 %v6954_v14, %v181_v40  ;;  %5796 = vtanh.f32 %v6995_v39  ;;  %9929 = vst [vmem:[#allocation10_spill] sm:$0xff] %v7060_v16  ;;  %v7074_v28 = vadd.f32 %v295_v19, %v7060_v16 }
  0xda   :  { %v5695_v43 = vpop.f32.mrf.mxu0 }
  0xdb   :  { %v7005_v45 = vadd.f32 %v293_v41, %v7000_v42  ;;  %v7008_v46 = vadd.f32 %v5695_v43, %v6954_v14 }
  0xdc   :  { %v194_v47 = vpop.f32.mrf.mxu0  ;;  %v5789_v50 = vpop.eup %5788 }
  0xdd   :  { %9924 = vst [vmem:[#allocation5_spill] sm:$0xff] %v7008_v46  ;;  %v7012_v48 = vadd.f32 %v297_v44, %v7008_v46  ;;  %v7015_v49 = vadd.f32 %v6954_v14, %v194_v47  ;;  %483 = vrot.lane.b32.xlu1 %v5789_v50, %s6849_s0  ;;  %5798 = vtanh.f32 %v7005_v45  ;;  %v5514_v50 = vmul.f32 -1.442695, %v6968_v24 }
  0xde   :  { %v5696_v51 = vpop.f32.mrf.mxu0  ;;  %v5791_v55 = vpop.eup %5790 }
  0xdf   :  { %9925 = vst [vmem:[#allocation6_spill] sm:$0xff] %v7015_v49  ;;  %v7019_v52 = vadd.f32 %v5696_v51, %v6954_v14  ;;  %v7024_v53 = vadd.f32 %v6965_v22, %v7015_v49  ;;  %5800 = vtanh.f32 %v7012_v48  ;;  %479 = vrot.lane.b32.xlu0 %v5791_v55, %s6849_s0  ;;  %v5512_v51 = vmul.f32 -1.442695, %v6977_v29 }
  0xe0   :  { %v197_v54 = vpop.f32.mrf.mxu0  ;;  %v5793_v63 = vpop.eup %5792  ;;  %v5513_v55 = vmul.f32 -1.442695, %v6992_v37 }
  0xe1   :  { %9926 = vst [vmem:[#allocation7_spill] sm:$0xff] %v7019_v52  ;;  %v7030_v57 = vadd.f32 %v6954_v14, %v197_v54  ;;  %v7033_v59 = vadd.f32 %v298_v56, %v7019_v52  ;;  %5802 = vtanh.f32 %v7024_v53  ;;  %485 = vrot.lane.b32.xlu1 %v5793_v63, %s6849_s0  ;;  %v5515_v54 = vmul.f32 -1.442695, %v6984_v33 }
  0xe2   :  { %v5699_v58 = vpop.f32.mrf.mxu0  ;;  %v5795_v5 = vpop.eup %5794  ;;  %v5522_v56 = vmul.f32 -1.442695, %v7012_v48 }
  0xe3   :  { %v7037_v61 = vadd.f32 %v5699_v58, %v6954_v14  ;;  %v7045_v3 = vadd.f32 %v296_v60, %v7030_v57  ;;  %5804 = vtanh.f32 %v7033_v59  ;;  %481 = vrot.lane.b32.xlu0 %v5795_v5, %s6849_s0  ;;  %v5523_v63 = vmul.f32 -1.442695, %v7033_v59 }
  0xe4   :  { %v210_v62 = vpop.f32.mrf.mxu0  ;;  %v5518_v5 = vmul.f32 -1.442695, %v325_v13 }
  0xe5   :  { %9927 = vst [vmem:[#allocation8_spill] sm:$0xff] %v7037_v61  ;;  %v7051_v8 = vadd.f32 %v301_v0, %v7037_v61  ;;  %v7055_v9 = vadd.f32 %v6954_v14, %v210_v62  ;;  %5806 = vtanh.f32 %v7045_v3  ;;  %v5521_v29 = vmul.f32 -1.442695, %v7045_v3 }
  0xe6   :  { %v5700_v4 = vpop.f32.mrf.mxu0  ;;  %v5797_v10 = vpop.eup %5796  ;;  %v5517_v3 = vmul.f32 -1.442695, %v7005_v45 }
  0xe7   :  { %9928 = vst [vmem:[#allocation9_spill] sm:$0xff] %v7055_v9  ;;  %v7065_v20 = vadd.f32 %v299_v12, %v7055_v9  ;;  %487 = vrot.lane.b32.xlu0 %v5797_v10, %s6849_s0  ;;  %5808 = vtanh.f32 %v7051_v8  ;;  %v7078_v15 = vadd.f32 %v5700_v4, %v6954_v14  ;;  %v5526_v48 = vmul.f32 -1.442695, %v7051_v8 }
  0xe8   :  { %v213_v11 = vpop.f32.mrf.mxu0  ;;  %5810 = vtanh.f32 %v325_v13  ;;  %v5516_v10 = vmul.f32 -1.442695, %v6995_v39  ;;  %v5520_v39 = vmul.f32 -1.442695, %v7024_v53 }
  0xe9   :  { %v7069_v23 = vadd.f32 %v6954_v14, %v213_v11  ;;  %9931 = vst [vmem:[#allocation12_spill] sm:$0xff] %v7078_v15  ;;  %5812 = vtanh.f32 %v7065_v20  ;;  %v7088_v38 = vadd.f32 %v302_v34, %v7078_v15  ;;  %v5524_v59 = vmul.f32 -1.442695, %v7065_v20 }
  0xea   :  { %v5799_v18 = vpop.eup %5798  ;;  %5814 = vtanh.f32 %v7074_v28 }
  0xeb   :  { %9930 = vst [vmem:[#allocation11_spill] sm:$0xff] %v7069_v23  ;;  %v7081_v31 = vadd.f32 %v300_v27, %v7069_v23  ;;  %489 = vrot.lane.b32.xlu0 %v5799_v18, %s6849_s0  ;;  %v5527_v27 = vmul.f32 -1.442695, %v7088_v38 }
  0xec   :  { %v5801_v25 = vpop.eup %5800 }
  0xed   :  { %499 = vrot.lane.b32.xlu1 %v5801_v25, %s6849_s0  ;;  %5816 = vtanh.f32 %v7081_v31  ;;  %v5525_v18 = vmul.f32 -1.442695, %v7081_v31 }
  0xee   :  { %v5803_v32 = vpop.eup %5802  ;;  %5818 = vtanh.f32 %v7088_v38 }
  0xef   :  { %495 = vrot.lane.b32.xlu0 %v5803_v32, %s6849_s0  ;;  %5820 = vpow2.f32 %v5514_v50 }
  0xf0   :  { %v5805_v36 = vpop.eup %5804  ;;  %5822 = vpow2.f32 %v5512_v51 }
  0xf1   :  { %501 = vrot.lane.b32.xlu1 %v5805_v36, %s6849_s0  ;;  %5824 = vpow2.f32 %v5515_v54 }
  0xf2   :  { %v5807_v14 = vpop.eup %5806  ;;  %5826 = vpow2.f32 %v5513_v55 }
  0xf3   :  { %497 = vrot.lane.b32.xlu0 %v5807_v14, %s6849_s0  ;;  %5828 = vpow2.f32 %v5522_v56  ;;  %v5519_v14 = vmul.f32 -1.442695, %v7074_v28 }
  0xf4   :  { %v5809_v40 = vpop.eup %5808 }
  0xf5   :  { %507 = vrot.lane.b32.xlu1 %v5809_v40, %s6849_s0  ;;  %v5811_v22 = vpop.eup %5810 }
  0xf6   :  { %v5813_v41 = vpop.eup %5812 }
  0xf7   :  { %491 = vrot.lane.b32.xlu0 %v5811_v22, %s6849_s0  ;;  %v5815_v43 = vpop.eup %5814 }
  0xf9   :  { %503 = vrot.lane.b32.xlu1 %v5813_v41, %s6849_s0 }
  0xfa   :  { %v5817_v44 = vpop.eup %5816 }
  0xfb   :  { %493 = vrot.lane.b32.xlu0 %v5815_v43, %s6849_s0  ;;  %v5819_v47 = vpop.eup %5818 }
  0xfc   :  { %v5821_v58 = vpop.eup %5820 }
  0xfd   :  { %505 = vrot.lane.b32.xlu1 %v5817_v44, %s6849_s0  ;;  %v385_v60 = vadd.f32 1.0, %v5821_v58  ;;  %v5823_v62 = vpop.eup %5822 }
  0xfe   :  { %v5825_v0 = vpop.eup %5824  ;;  %v383_v24 = vadd.f32 1.0, %v5823_v62 }
  0xff   :  { %5830 = vrcp.f32 %v385_v60  ;;  %v5827_v4 = vpop.eup %5826  ;;  %v386_v33 = vadd.f32 1.0, %v5825_v0 }
 0x100   :  { %5832 = vpow2.f32 %v5523_v63  ;;  %v384_v37 = vadd.f32 1.0, %v5827_v4  ;;  %v5829_v7 = vpop.eup %5828 }
 0x101   :  { %509 = vrot.lane.b32.xlu1 %v5819_v47, %s6849_s0  ;;  %5834 = vrcp.f32 %v383_v24  ;;  %v393_v11 = vadd.f32 1.0, %v5829_v7 }
 0x102   :  { %5836 = vpow2.f32 %v5521_v29 }
 0x103   :  { %5838 = vrcp.f32 %v386_v33 }
 0x104   :  { %5840 = vpow2.f32 %v5518_v5 }
 0x105   :  { %5842 = vrcp.f32 %v384_v37 }
 0x106   :  { %5844 = vpow2.f32 %v5526_v48 }
 0x107   :  { %5846 = vpow2.f32 %v5516_v10 }
 0x108   :  { %5848 = vpow2.f32 %v5524_v59 }
 0x109   :  { %5850 = vrcp.f32 %v393_v11 }
 0x10a   :  { %5852 = vpow2.f32 %v5517_v3 }
 0x10b   :  { %5854 = vpow2.f32 %v5525_v18 }
 0x10c   :  { %v7111_v12 = vpop.eup %5830  ;;  %5856 = vpow2.f32 %v5520_v39 }
 0x10d   :  { %v5833_v19 = vpop.eup %5832  ;;  %5858 = vpow2.f32 %v5527_v27 }
 0x10e   :  { %v7118_v20 = vpop.eup %5834  ;;  %v394_v32 = vadd.f32 1.0, %v5833_v19 }
 0x10f   :  { %v5837_v31 = vpop.eup %5836 }
 0x110   :  { %v7122_v34 = vpop.eup %5838  ;;  %5860 = vrcp.f32 %v394_v32  ;;  %v392_v41 = vadd.f32 1.0, %v5837_v31 }
 0x111   :  { %v5841_v53 = vpop.eup %5840  ;;  %5862 = vpow2.f32 %v5519_v14 }
 0x112   :  { %v7127_v22 = vpop.eup %5842  ;;  %v389_v47 = vadd.f32 1.0, %v5841_v53  ;;  %5864 = vrcp.f32 %v392_v41 }
 0x113   :  { %v5845_v43 = vpop.eup %5844 }
 0x114   :  { %v5847_v50 = vpop.eup %5846  ;;  %v397_v28 = vadd.f32 1.0, %v5845_v43  ;;  %5866 = vrcp.f32 %v389_v47 }
 0x115   :  { %v5849_v54 = vpop.eup %5848  ;;  %v387_v58 = vadd.f32 1.0, %v5847_v50 }
 0x116   :  { %v7132_v55 = vpop.eup %5850  ;;  %5868 = vrcp.f32 %v397_v28  ;;  %v395_v0 = vadd.f32 1.0, %v5849_v54 }
 0x117   :  { %v5853_v62 = vpop.eup %5852  ;;  %5870 = vrcp.f32 %v387_v58 }
 0x118   :  { %v5855_v24 = vpop.eup %5854  ;;  %v388_v29 = vadd.f32 1.0, %v5853_v62  ;;  %5872 = vrcp.f32 %v395_v0  ;;  %v449_v0 = vmul.f32 0.0, %v7111_v12 }
 0x119   :  { %v5857_v4 = vpop.eup %5856  ;;  %v396_v37 = vadd.f32 1.0, %v5855_v24 }
 0x11a   :  { %v5859_v33 = vpop.eup %5858  ;;  %5874 = vrcp.f32 %v388_v29  ;;  %v391_v59 = vadd.f32 1.0, %v5857_v4  ;;  %v447_v29 = vmul.f32 0.0, %v7118_v20 }
 0x11b   :  { %5876 = vrcp.f32 %v396_v37  ;;  %v450_v37 = vmul.f32 0.0, %v7122_v34 }
 0x11c   :  { %5878 = vrcp.f32 %v391_v59  ;;  %v448_v59 = vmul.f32 0.0, %v7127_v22 }
 0x11d   :  { %v7136_v48 = vpop.eup %5860 }
 0x11e   :  { %v5863_v11 = vpop.eup %5862 }
 0x11f   :  { %v7140_v18 = vpop.eup %5864  ;;  %v390_v39 = vadd.f32 1.0, %v5863_v11 }
 0x14f   :  { %v484_v13 = vpop.permute.xlu1 %483 }
 0x150   :  { %v529_v8 = vmul.f32 %v7111_v12, %v484_v13  ;;  %v398_v13 = vadd.f32 1.0, %v5859_v33 }
 0x151   :  { %v480_v25 = vpop.permute.xlu0 %479 }
 0x152   :  { %563 = vrot.lane.b32.xlu0 %v529_v8, %s6850_s4  ;;  %v527_v45 = vmul.f32 %v7118_v20, %v480_v25  ;;  %v7143_v25 = vpop.eup %5866  ;;  %5880 = vrcp.f32 %v398_v13 }
 0x153   :  { %v486_v36 = vpop.permute.xlu1 %485  ;;  %5882 = vrcp.f32 %v390_v39 }
 0x154   :  { %v530_v40 = vmul.f32 %v7122_v34, %v486_v36 }
 0x155   :  { %v482_v38 = vpop.permute.xlu0 %481 }
 0x156   :  { %559 = vrot.lane.b32.xlu0 %v527_v45, %s6850_s4  ;;  %v528_v44 = vmul.f32 %v7127_v22, %v482_v38  ;;  %565 = vrot.lane.b32.xlu1 %v530_v40, %s6850_s4  ;;  %v7146_v45 = vpop.eup %5868 }
 0x157   :  { %v7151_v53 = vpop.eup %5870 }
 0x158   :  { %v7154_v14 = vpop.eup %5872 }
 0x159   :  { %v488_v51 = vpop.permute.xlu0 %487  ;;  %v7159_v43 = vpop.eup %5874 }
 0x15a   :  { %561 = vrot.lane.b32.xlu0 %v528_v44, %s6850_s4  ;;  %v531_v40 = vmul.f32 %v7151_v53, %v488_v51  ;;  %v7162_v44 = vpop.eup %5876 }
 0x15b   :  { %v7167_v54 = vpop.eup %5878 }
 0x15d   :  { %v490_v63 = vpop.permute.xlu0 %489 }
 0x15e   :  { %v532_v47 = vmul.f32 %v7159_v43, %v490_v63 }
 0x15f   :  { %v500_v56 = vpop.permute.xlu1 %499  ;;  %v7170_v51 = vpop.eup %5880 }
 0x160   :  { %v537_v60 = vmul.f32 %v7132_v55, %v500_v56  ;;  %v7175_v62 = vpop.eup %5882 }
 0x161   :  { %v496_v5 = vpop.permute.xlu0 %495 }
 0x162   :  { %579 = vrot.lane.b32.xlu1 %v537_v60, %s6850_s4  ;;  %v535_v56 = vmul.f32 %v7167_v54, %v496_v5 }
 0x163   :  { %v502_v7 = vpop.permute.xlu1 %501 }
 0x164   :  { %v538_v10 = vmul.f32 %v7136_v48, %v502_v7 }
 0x165   :  { %v498_v3 = vpop.permute.xlu0 %497 }
 0x166   :  { %581 = vrot.lane.b32.xlu1 %v538_v10, %s6850_s4  ;;  %v536_v8 = vmul.f32 %v7140_v18, %v498_v3 }
 0x167   :  { %v508_v19 = vpop.permute.xlu1 %507 }
 0x168   :  { %v541_v31 = vmul.f32 %v7146_v45, %v508_v19 }
 0x169   :  { %v492_v27 = vpop.permute.xlu0 %491 }
 0x16a   :  { %577 = vrot.lane.b32.xlu1 %v536_v8, %s6850_s4  ;;  %v533_v32 = vmul.f32 %v7143_v25, %v492_v27  ;;  %v457_v27 = vmul.f32 0.0, %v7132_v55 }
 0x16b   :  { %v504_v36 = vpop.permute.xlu1 %503 }
 0x16c   :  { %571 = vrot.lane.b32.xlu0 %v533_v32, %s6850_s4  ;;  %v539_v38 = vmul.f32 %v7154_v14, %v504_v36 }
 0x16d   :  { %v494_v58 = vpop.permute.xlu0 %493 }
 0x16e   :  { %587 = vrot.lane.b32.xlu1 %v541_v31, %s6850_s4  ;;  %v534_v63 = vmul.f32 %v7175_v62, %v494_v58 }
 0x16f   :  { %v506_v41 = vpop.permute.xlu1 %505 }
 0x170   :  { %567 = vrot.lane.b32.xlu0 %v531_v40, %s6850_s4  ;;  %v540_v50 = vmul.f32 %v7162_v44, %v506_v41 }
 0x172   :  { %583 = vrot.lane.b32.xlu1 %v539_v38, %s6850_s4 }
 0x173   :  { %v510_v28 = vpop.permute.xlu1 %509 }
 0x174   :  { %569 = vrot.lane.b32.xlu0 %v532_v47, %s6850_s4  ;;  %v542_v60 = vmul.f32 %v7170_v51, %v510_v28  ;;  %v458_v47 = vmul.f32 0.0, %v7136_v48 }
 0x176   :  { %585 = vrot.lane.b32.xlu1 %v540_v50, %s6850_s4 }
 0x178   :  { %575 = vrot.lane.b32.xlu0 %v535_v56, %s6850_s4 }
 0x17a   :  { %589 = vrot.lane.b32.xlu1 %v542_v60, %s6850_s4  ;;  %v456_v60 = vmul.f32 0.0, %v7140_v18 }
 0x17c   :  { %573 = vrot.lane.b32.xlu0 %v534_v63, %s6850_s4 }
 0x1c4   :  { %v564_v24 = vpop.permute.xlu0 %563 }
 0x1c5   :  { %v609_v4 = vadd.f32 %v564_v24, %v449_v0  ;;  %v453_v24 = vmul.f32 0.0, %v7143_v25 }
 0x1c7   :  { %5884 = vtanh.f32 %v609_v4  ;;  %v808_v8 = vrot.slane %v609_v4, 6 }
 0x1c8   :  { %v560_v33 = vpop.permute.xlu0 %559  ;;  %v566_v7 = vpop.permute.xlu1 %565 }
 0x1c9   :  { %v607_v5 = vadd.f32 %v560_v33, %v447_v29  ;;  %v610_v10 = vadd.f32 %v566_v7, %v450_v37  ;;  %v461_v29 = vmul.f32 0.0, %v7146_v45 }
 0x1cb   :  { %5886 = vtanh.f32 %v607_v5  ;;  %v810_v19 = vrot.slane %v610_v10, 5 }
 0x1cc   :  { %v562_v11 = vpop.permute.xlu0 %561  ;;  %5888 = vtanh.f32 %v610_v10  ;;  %v451_v10 = vmul.f32 0.0, %v7151_v53 }
 0x1cd   :  { %v608_v3 = vadd.f32 %v562_v11, %v448_v59  ;;  %v459_v11 = vmul.f32 0.0, %v7154_v14 }
 0x1cf   :  { %5890 = vtanh.f32 %v608_v3  ;;  %v806_v13 = vrot.slane %v608_v3, 7 }
 0x1d1   :  { %v807_v39 = vsel %vm748_vm2, %v806_v13, %v607_v5 }
 0x1d2   :  { %v809_v32 = vsel %vm751_vm3, %v808_v8, %v807_v39  ;;  %v452_v39 = vmul.f32 0.0, %v7159_v43 }
 0x1d3   :  { %v811_v38 = vsel %vm754_vm4, %v810_v19, %v809_v32  ;;  %v460_v32 = vmul.f32 0.0, %v7162_v44 }
 0x1d4   :  { %v580_v31 = vpop.permute.xlu1 %579  ;;  %v5885_v36 = vpop.eup %5884 }
 0x1d5   :  { %v7187_v40 = vadd.f32 %v580_v31, %v457_v27  ;;  %659 = vrot.lane.b32.xlu0 %v5885_v36, %s6849_s0 }
 0x1d7   :  { %5892 = vtanh.f32 %v7187_v40 }
 0x1d8   :  { %v5887_v41 = vpop.eup %5886  ;;  %v582_v50 = vpop.permute.xlu1 %581 }
 0x1d9   :  { %655 = vrot.lane.b32.xlu0 %v5887_v41, %s6849_s0  ;;  %v5889_v28 = vpop.eup %5888  ;;  %v7194_v56 = vadd.f32 %v582_v50, %v458_v47 }
 0x1da   :  { %661 = vrot.lane.b32.xlu1 %v5889_v28, %s6849_s0 }
 0x1db   :  { %5894 = vtanh.f32 %v7194_v56 }
 0x1dc   :  { %v5891_v58 = vpop.eup %5890  ;;  %v578_v63 = vpop.permute.xlu1 %577 }
 0x1dd   :  { %657 = vrot.lane.b32.xlu0 %v5891_v58, %s6849_s0  ;;  %v616_v0 = vadd.f32 %v578_v63, %v456_v60  ;;  %v455_v58 = vmul.f32 0.0, %v7167_v54 }
 0x1de   :  { %v572_v4 = vpop.permute.xlu0 %571 }
 0x1df   :  { %5896 = vtanh.f32 %v616_v0  ;;  %v613_v33 = vadd.f32 %v572_v4, %v453_v24  ;;  %v462_v24 = vmul.f32 0.0, %v7170_v51 }
 0x1e0   :  { %v588_v5 = vpop.permute.xlu1 %587 }
 0x1e1   :  { %v7202_v7 = vadd.f32 %v588_v5, %v461_v29  ;;  %5898 = vtanh.f32 %v613_v33  ;;  %v816_v60 = vrot.slane %v613_v33, 2  ;;  %v820_v29 = vrot.slane %v616_v0, 7 }
 0x1e2   :  { %v568_v59 = vpop.permute.xlu0 %567 }
 0x1e3   :  { %5900 = vtanh.f32 %v7202_v7  ;;  %v611_v3 = vadd.f32 %v568_v59, %v451_v10  ;;  %v822_v10 = vrot.slane %v7187_v40, 6 }
 0x1e4   :  { %v5893_v37 = vpop.eup %5892  ;;  %v584_v13 = vpop.permute.xlu1 %583 }
 0x1e5   :  { %675 = vrot.lane.b32.xlu1 %v5893_v37, %s6849_s0  ;;  %v619_v8 = vadd.f32 %v584_v13, %v459_v11  ;;  %5902 = vtanh.f32 %v611_v3  ;;  %v812_v19 = vrot.slane %v611_v3, 4  ;;  %v824_v3 = vrot.slane %v7194_v56, 5 }
 0x1e6   :  { %v570_v27 = vpop.permute.xlu0 %569  ;;  %v454_v13 = vmul.f32 0.0, %v7175_v62  ;;  %v830_v56 = vrot.slane %v7202_v7, 2 }
 0x1e7   :  { %5904 = vtanh.f32 %v619_v8  ;;  %v813_v36 = vsel %vm757_vm5, %v812_v19, %v811_v38  ;;  %v612_v41 = vadd.f32 %v570_v27, %v452_v39  ;;  %v826_v0 = vrot.slane %v619_v8, 4 }
 0x1e8   :  { %v5895_v31 = vpop.eup %5894  ;;  %v586_v47 = vpop.permute.xlu1 %585 }
 0x1e9   :  { %v620_v50 = vadd.f32 %v586_v47, %v460_v32  ;;  %677 = vrot.lane.b32.xlu1 %v5895_v31, %s6849_s0  ;;  %5906 = vtanh.f32 %v612_v41  ;;  %v814_v28 = vrot.slane %v612_v41, 3 }
 0x1ea   :  { %v576_v63 = vpop.permute.xlu0 %575 }
 0x1eb   :  { %5908 = vtanh.f32 %v620_v50  ;;  %v615_v5 = vadd.f32 %v576_v63, %v455_v58  ;;  %v815_v37 = vsel %vm760_vm6, %v814_v28, %v813_v36  ;;  %v828_v40 = vrot.slane %v620_v50, 3 }
 0x1ec   :  { %v5897_v4 = vpop.eup %5896  ;;  %v590_v38 = vpop.permute.xlu1 %589  ;;  %v817_v11 = vsel %vm763_vm7, %v816_v60, %v815_v37 }
 0x1ed   :  { %v622_v59 = vadd.f32 %v590_v38, %v462_v24  ;;  %673 = vrot.lane.b32.xlu1 %v5897_v4, %s6849_s0  ;;  %5910 = vtanh.f32 %v615_v5  ;;  %v821_v33 = vsel %vm748_vm2, %v820_v29, %v615_v5  ;;  %v7241_v29 = vld [vmem:[%s9863_s1 + $0x8] sm:$0xff]  ;;  %v7248_v38 = vld [vmem:[%s9863_s1] sm:$0xff] }
 0x1ee   :  { %v5899_v19 = vpop.eup %5898  ;;  %v823_v39 = vsel %vm751_vm3, %v822_v10, %v821_v33  ;;  %v574_v27 = vpop.permute.xlu0 %573  ;;  %vm720_vm9 = vcmp.gt.s32.totalorder %v7241_v29, 0  ;;  %vm719_vm10 = vcmp.gt.s32.totalorder %v7248_v38, 0  ;;  %vm1383_vm13 = vcmp.gt.s32.totalorder %v7248_v38, 1 }
 0x1ef   :  { %5912 = vtanh.f32 %v622_v59  ;;  %v614_v31 = vadd.f32 %v574_v27, %v454_v13  ;;  %667 = vrot.lane.b32.xlu0 %v5899_v19, %s6849_s0  ;;  %v825_v36 = vsel %vm754_vm4, %v824_v3, %v823_v39  ;;  %v832_v47 = vrot.slane %v622_v59, 1 }
 0x1f0   :  { %v5901_v32 = vpop.eup %5900  ;;  %v827_v41 = vsel %vm757_vm5, %v826_v0, %v825_v36  ;;  %v722_v10 = vsel %vm720_vm9, 1, %v9871_v6  ;;  %vm1384_vm14 = vcmp.gt.s32.totalorder %v7241_v29, 1 }
 0x1f1   :  { %683 = vrot.lane.b32.xlu1 %v5901_v32, %s6849_s0  ;;  %5914 = vtanh.f32 %v614_v31  ;;  %v818_v8 = vrot.slane %v614_v31, 1  ;;  %v829_v28 = vsel %vm760_vm6, %v828_v40, %v827_v41 }
 0x1f2   :  { %v5903_v58 = vpop.eup %5902  ;;  %v831_v50 = vsel %vm763_vm7, %v830_v56, %v829_v28 }
 0x1f3   :  { %663 = vrot.lane.b32.xlu0 %v5903_v58, %s6849_s0  ;;  %v7231_v63 = vsel %vm766_vm8, %v832_v47, %v831_v50  ;;  %v7234_v7 = vsel %vm766_vm8, %v818_v8, %v817_v11  ;;  %v721_v11 = vsel %vm719_vm10, 1, %v9871_v6 }
 0x1f4   :  { %v5905_v60 = vpop.eup %5904 }
 0x1f5   :  { %679 = vrot.lane.b32.xlu1 %v5905_v60, %s6849_s0 }
 0x1f6   :  { %v5907_v24 = vpop.eup %5906 }
 0x1f7   :  { %665 = vrot.lane.b32.xlu0 %v5907_v24, %s6849_s0 }
 0x1f8   :  { %v5909_v4 = vpop.eup %5908 }
 0x1f9   :  { %681 = vrot.lane.b32.xlu1 %v5909_v4, %s6849_s0 }
 0x1fa   :  { %v5911_v5 = vpop.eup %5910 }
 0x1fb   :  { %671 = vrot.lane.b32.xlu0 %v5911_v5, %s6849_s0 }
 0x1fc   :  { %v5913_v37 = vpop.eup %5912 }
 0x1fd   :  { %685 = vrot.lane.b32.xlu1 %v5913_v37, %s6849_s0 }
 0x1fe   :  { %v5915_v59 = vpop.eup %5914 }
 0x1ff   :  { %669 = vrot.lane.b32.xlu0 %v5915_v59, %s6849_s0 }
 0x201   :  { %727 = vperm.xlu1 %5775, %v722_v10  }
 0x203   :  { %724 = vperm.xlu0 %5774, %v721_v11  }
 0x247   :  { %v660_v33 = vpop.permute.xlu0 %659 }
 0x248   :  { %v705_v47 = vmul.f32 %v7111_v12, %v660_v33 }
 0x24a   :  { %v750_v5 = vrot.slane %v705_v47, 6 }
 0x24b   :  { %v656_v19 = vpop.permute.xlu0 %655 }
 0x24c   :  { %v662_v3 = vpop.permute.xlu1 %661  ;;  %v703_v8 = vmul.f32 %v7118_v20, %v656_v19 }
 0x24d   :  { %v706_v28 = vmul.f32 %v7122_v34, %v662_v3 }
 0x24f   :  { %v658_v39 = vpop.permute.xlu0 %657  ;;  %v753_v12 = vrot.slane %v706_v28, 5 }
 0x250   :  { %v704_v40 = vmul.f32 %v7127_v22, %v658_v39 }
 0x252   :  { %v747_v56 = vrot.slane %v704_v40, 7 }
 0x254   :  { %v749_v60 = vsel %vm748_vm2, %v747_v56, %v703_v8 }
 0x255   :  { %v752_v20 = vsel %vm751_vm3, %v750_v5, %v749_v60 }
 0x257   :  { %v676_v13 = vpop.permute.xlu1 %675 }
 0x258   :  { %v713_v37 = vmul.f32 %v7132_v55, %v676_v13  ;;  %v755_v13 = vsel %vm754_vm4, %v753_v12, %v752_v20 }
 0x25a   :  { %v770_v19 = vrot.slane %v713_v37, 6 }
 0x25b   :  { %v678_v0 = vpop.permute.xlu1 %677 }
 0x25c   :  { %v714_v10 = vmul.f32 %v7136_v48, %v678_v0 }
 0x25e   :  { %v772_v48 = vrot.slane %v714_v10, 5  ;;  %v7317_v10 = vld [vmem:[%s9865_s3] sm:$0xff]  }
 0x25f   :  { %v674_v27 = vpop.permute.xlu1 %673 }
 0x260   :  { %v712_v24 = vmul.f32 %v7140_v18, %v674_v27 }
 0x261   :  { %v668_v32 = vpop.permute.xlu0 %667 }
 0x262   :  { %v768_v11 = vrot.slane %v712_v24, 7  ;;  %v709_v39 = vmul.f32 %v7143_v25, %v668_v32 }
 0x263   :  { %v684_v31 = vpop.permute.xlu1 %683 }
 0x264   :  { %v717_v55 = vmul.f32 %v7146_v45, %v684_v31  ;;  %v762_v32 = vrot.slane %v709_v39, 2 }
 0x265   :  { %v664_v36 = vpop.permute.xlu0 %663 }
 0x266   :  { %v707_v58 = vmul.f32 %v7151_v53, %v664_v36  ;;  %v778_v31 = vrot.slane %v717_v55, 2 }
 0x267   :  { %v680_v41 = vpop.permute.xlu1 %679 }
 0x268   :  { %v756_v59 = vrot.slane %v707_v58, 4  ;;  %v715_v34 = vmul.f32 %v7154_v14, %v680_v41 }
 0x269   :  { %v666_v50 = vpop.permute.xlu0 %665 }
 0x26a   :  { %v708_v4 = vmul.f32 %v7159_v43, %v666_v50  ;;  %v758_v27 = vsel %vm757_vm5, %v756_v59, %v755_v13  ;;  %v774_v40 = vrot.slane %v715_v34, 4 }
 0x26b   :  { %v682_v22 = vpop.permute.xlu1 %681 }
 0x26c   :  { %v759_v3 = vrot.slane %v708_v4, 3  ;;  %v716_v33 = vmul.f32 %v7162_v44, %v682_v22 }
 0x26d   :  { %v672_v53 = vpop.permute.xlu0 %671 }
 0x26e   :  { %v711_v18 = vmul.f32 %v7167_v54, %v672_v53  ;;  %v776_v54 = vrot.slane %v716_v33, 3  ;;  %v761_v45 = vsel %vm760_vm6, %v759_v3, %v758_v27 }
 0x26f   :  { %v686_v43 = vpop.permute.xlu1 %685  ;;  %v764_v58 = vsel %vm763_vm7, %v762_v32, %v761_v45 }
 0x270   :  { %v769_v0 = vsel %vm748_vm2, %v768_v11, %v711_v18  ;;  %v718_v14 = vmul.f32 %v7170_v51, %v686_v43 }
 0x271   :  { %v771_v44 = vsel %vm751_vm3, %v770_v19, %v769_v0  ;;  %v670_v36 = vpop.permute.xlu0 %669 }
 0x272   :  { %v710_v56 = vmul.f32 %v7175_v62, %v670_v36  ;;  %v773_v25 = vsel %vm754_vm4, %v772_v48, %v771_v44  ;;  %v780_v47 = vrot.slane %v718_v14, 1 }
 0x273   :  { %v775_v41 = vsel %vm757_vm5, %v774_v40, %v773_v25 }
 0x274   :  { %v765_v8 = vrot.slane %v710_v56, 1  ;;  %v777_v51 = vsel %vm760_vm6, %v776_v54, %v775_v41 }
 0x275   :  { %v779_v28 = vsel %vm763_vm7, %v778_v31, %v777_v51 }
 0x276   :  { %v781_v50 = vsel %vm766_vm8, %v780_v47, %v779_v28  ;;  %v767_v62 = vsel %vm766_vm8, %v765_v8, %v764_v58 }
 0x277   :  { %784 = vrot.lane.b32.xlu0 %v781_v50, %s6850_s4  ;;  %782 = vrot.lane.b32.xlu1 %v767_v62, %s6850_s4 }
 0x27b   :  { %836 = vrot.lane.b32.xlu0 %v7231_v63, %s6851_s26  ;;  %834 = vrot.lane.b32.xlu1 %v7234_v7, %s6851_s26  ;;  %v7308_v7 = vld [vmem:[%s9865_s3 + $0x8] sm:$0xff]  }
 0x27c   :  { %v728_v60 = vpop.permute.xlu1 %727 }
 0x27d   :  { %vm730_vm11 = vcmp.eq.s32.totalorder %v728_v60, 1 }
 0x27e   :  { %v7292_v24 = vpop.permute.xlu0 %724 }
 0x27f   :  { %vm729_vm12 = vcmp.eq.s32.totalorder %v7292_v24, 1 }
 0x2e9   :  { %v783_v4 = vpop.permute.xlu1 %782  ;;  %v785_v22 = vpop.permute.xlu0 %784 }
 0x2ea   :  { %v7297_v5 = vsel %vm729_vm12, %v783_v4, 0.0  ;;  %v7300_v37 = vsel %vm730_vm11, %v785_v22, 0.0 }
 0x2eb   :  { %9932 = vst [vmem:[#allocation13_spill] sm:$0xff] %v7297_v5  ;;  %9933 = vst [vmem:[#allocation14_spill] sm:$0xff] %v7300_v37  ;;  %v842_v63 = vpack.c.bf16 %v7300_v37, %v7297_v5 }
 0x2ed   :  { %5714 = vmatmul.mubr.msk.bf16.vlgmr.msra.gmra.mxu1 %vm103_vm1, %v842_v63  ;;  %v837_v13 = vpop.permute.xlu0 %836 }
 0x2ee   :  { %5718 = vmatpush3.bf16.msra.mxu1 %v7308_v7  ;;  %5721 = vmatprep.mubr.msk.bf16.mxu1 %vm6847_vm0, %v9869_v1  ;;  %v7348_v44 = vsel %vm730_vm11, %v837_v13, 0.0 }
 0x2ef   :  { %5719 = vmatprep.subr.bf16.mxu1 %v9869_v1  ;;  %9934 = vst [vmem:[#allocation15_spill] sm:$0xff] %v7348_v44  ;;  %v1056_v45 = vrot.slane %v7348_v44, 7 }
 0x2f2   :  { %5720 = vmatpush3.bf16.msra.mxu1 %v7317_v10 }
 0x2f3   :  { %5725 = vmatprep.subr.bf16.mxu1 %v9869_v1 }
 0x3ad   :  { %v880_v12 = vpop.f32.mrf.mxu1 }
 0x3ae   :  { %v891_v53 = vrot.slane %v880_v12, 2  ;;  %v889_v11 = vrot.slane %v880_v12, 7  ;;  %v7324_v3 = vadd.f32 %v880_v12, %v6980_v30  ;;  %v890_v18 = vrot.slane %v880_v12, 1 }
 0x3af   :  { %v5715_v20 = vpop.f32.mrf.mxu1  ;;  %v892_v19 = vrot.slane %v880_v12, 3  ;;  %v893_v55 = vrot.slane %v880_v12, 4  ;;  %v894_v0 = vrot.slane %v880_v12, 5  ;;  %v895_v36 = vrot.slane %v880_v12, 6 }
 0x3b0   :  { %v7327_v33 = vadd.f32 %v891_v53, %v6972_v26  ;;  %v7330_v43 = vadd.f32 %v889_v11, %v6963_v21  ;;  %5916 = vtanh.f32 %v7324_v3  ;;  %v7335_v39 = vadd.f32 %v890_v18, %v6959_v17  ;;  %v835_v11 = vpop.permute.xlu1 %834 }
 0x3b1   :  { %v7321_v59 = vpop.f32.mrf.mxu1  ;;  %v7339_v48 = vadd.f32 %v892_v19, %v6988_v35  ;;  %v7343_v14 = vadd.f32 %v893_v55, %v7000_v42  ;;  %v7351_v54 = vadd.f32 %v894_v0, %v7042_v2  ;;  %v7359_v32 = vadd.f32 %v895_v36, %v7060_v16 }
 0x3b2   :  { %5918 = vtanh.f32 %v7327_v33  ;;  %v896_v56 = vrot.slane %v7321_v59, 7  ;;  %v897_v31 = vrot.slane %v7321_v59, 1  ;;  %v7371_v8 = vadd.f32 %v7321_v59, %v7030_v57 }
 0x3b3   :  { %v5716_v34 = vpop.f32.mrf.mxu1  ;;  %5920 = vtanh.f32 %v7330_v43  ;;  %v898_v51 = vrot.slane %v7321_v59, 2  ;;  %v899_v50 = vrot.slane %v7321_v59, 3  ;;  %v900_v4 = vrot.slane %v7321_v59, 4 }
 0x3b4   :  { %5922 = vtanh.f32 %v7335_v39  ;;  %v7364_v41 = vadd.f32 %v896_v56, %v7015_v49  ;;  %v7375_v28 = vadd.f32 %v897_v31, %v7008_v46  ;;  %v901_v20 = vrot.slane %v7321_v59, 5 }
 0x3b5   :  { %5924 = vtanh.f32 %v7339_v48  ;;  %v7382_v62 = vadd.f32 %v898_v51, %v7019_v52  ;;  %v7388_v22 = vadd.f32 %v899_v50, %v7055_v9  ;;  %v7394_v34 = vadd.f32 %v900_v4, %v7069_v23 }
 0x3b6   :  { %5926 = vtanh.f32 %v7343_v14  ;;  %v902_v19 = vrot.slane %v7321_v59, 6  ;;  %v7401_v55 = vadd.f32 %v901_v20, %v7037_v61  ;;  %v7406_v0 = vsel %vm729_vm12, %v835_v11, 0.0 }
 0x3b7   :  { %5928 = vtanh.f32 %v7351_v54  ;;  %v1049_v59 = vrot.slane %v7406_v0, 7  ;;  %v1050_v24 = vrot.slane %v7406_v0, 1  ;;  %v1053_v51 = vrot.slane %v7406_v0, 4 }
 0x3b8   :  { %5930 = vtanh.f32 %v7359_v32  ;;  %v1054_v50 = vrot.slane %v7406_v0, 5  ;;  %v1055_v4 = vrot.slane %v7406_v0, 6  ;;  %v1061_v20 = vrot.slane %v7348_v44, 5 }
 0x3b9   :  { %5932 = vtanh.f32 %v7364_v41  ;;  %v5530_v11 = vmul.f32 -1.442695, %v7324_v3  ;;  %v5535_v3 = vmul.f32 -1.442695, %v7351_v54  ;;  %v5536_v54 = vmul.f32 -1.442695, %v7359_v32 }
 0x3ba   :  { %5934 = vtanh.f32 %v7371_v8 }
 0x3bb   :  { %5936 = vtanh.f32 %v7375_v28 }
 0x3bc   :  { %5938 = vtanh.f32 %v7382_v62 }
 0x3bd   :  { %v5917_v27 = vpop.eup %5916  ;;  %5940 = vtanh.f32 %v7388_v22 }
 0x3be   :  { %1145 = vrot.lane.b32.xlu1 %v5917_v27, %s6849_s0  ;;  %5942 = vtanh.f32 %v7394_v34  ;;  %v7411_v27 = vadd.f32 %v902_v19, %v7078_v15  ;;  %v5529_v19 = vmul.f32 -1.442695, %v7330_v43 }
 0x3bf   :  { %v5919_v40 = vpop.eup %5918  ;;  %5944 = vtanh.f32 %v7401_v55 }
 0x3c0   :  { %1149 = vrot.lane.b32.xlu0 %v5919_v40, %s6849_s0  ;;  %v5921_v25 = vpop.eup %5920  ;;  %5946 = vtanh.f32 %v7411_v27 }
 0x3c1   :  { %v5923_v47 = vpop.eup %5922  ;;  %5948 = vpow2.f32 %v5530_v11 }
 0x3c2   :  { %1143 = vrot.lane.b32.xlu1 %v5921_v25, %s6849_s0  ;;  %v5925_v58 = vpop.eup %5924 }
 0x3c3   :  { %v5927_v60 = vpop.eup %5926 }
 0x3c4   :  { %1079 = vrot.lane.b32.xlu0 %v1056_v45, %s6850_s4  ;;  %v5929_v63 = vpop.eup %5928  ;;  %v1052_v45 = vrot.slane %v7406_v0, 3 }
 0x3c5   :  { %v5931_v12 = vpop.eup %5930 }
 0x3c6   :  { %1147 = vrot.lane.b32.xlu1 %v5923_v47, %s6849_s0  ;;  %v5933_v53 = vpop.eup %5932  ;;  %v1057_v47 = vrot.slane %v7348_v44, 1 }
 0x3c7   :  { %v5935_v18 = vpop.eup %5934 }
 0x3c8   :  { %1159 = vrot.lane.b32.xlu0 %v5933_v53, %s6849_s0  ;;  %v5937_v13 = vpop.eup %5936  ;;  %v1062_v53 = vrot.slane %v7348_v44, 6 }
 0x3c9   :  { %v5939_v40 = vpop.eup %5938 }
 0x3ca   :  { %1151 = vrot.lane.b32.xlu1 %v5925_v58, %s6849_s0  ;;  %v5941_v36 = vpop.eup %5940  ;;  %v1051_v58 = vrot.slane %v7406_v0, 2 }
 0x3cb   :  { %v5943_v56 = vpop.eup %5942 }
 0x3cc   :  { %1163 = vrot.lane.b32.xlu0 %v5937_v13, %s6849_s0  ;;  %v5945_v25 = vpop.eup %5944  ;;  %v5531_v13 = vmul.f32 -1.442695, %v7335_v39  ;;  %v5537_v39 = vmul.f32 -1.442695, %v7364_v41  ;;  %v5540_v41 = vmul.f32 -1.442695, %v7382_v62 }
 0x3cd   :  { %v5947_v31 = vpop.eup %5946  ;;  %v5542_v62 = vmul.f32 -1.442695, %v7394_v34 }
 0x3ce   :  { %1153 = vrot.lane.b32.xlu1 %v5927_v60, %s6849_s0  ;;  %v1058_v60 = vrot.slane %v7348_v44, 2 }
 0x3d0   :  { %1165 = vrot.lane.b32.xlu0 %v5939_v40, %s6849_s0  ;;  %v5534_v40 = vmul.f32 -1.442695, %v7343_v14 }
 0x3d2   :  { %1155 = vrot.lane.b32.xlu1 %v5929_v63, %s6849_s0  ;;  %v1059_v63 = vrot.slane %v7348_v44, 3 }
 0x3d4   :  { %1167 = vrot.lane.b32.xlu0 %v5941_v36, %s6849_s0 }
 0x3d6   :  { %1157 = vrot.lane.b32.xlu1 %v5931_v12, %s6849_s0  ;;  %v1060_v12 = vrot.slane %v7348_v44, 4 }
 0x3d8   :  { %1169 = vrot.lane.b32.xlu0 %v5943_v56, %s6849_s0 }
 0x3da   :  { %1161 = vrot.lane.b32.xlu1 %v5935_v18, %s6849_s0  ;;  %v5532_v18 = vmul.f32 -1.442695, %v7327_v33 }
 0x3dc   :  { %1171 = vrot.lane.b32.xlu0 %v5945_v25, %s6849_s0  ;;  %5950 = vpow2.f32 %v5532_v18 }
 0x3dd   :  { %5952 = vpow2.f32 %v5529_v19 }
 0x3de   :  { %1063 = vrot.lane.b32.xlu1 %v1049_v59, %s6850_s4  ;;  %5954 = vpow2.f32 %v5531_v13  ;;  %v5533_v59 = vmul.f32 -1.442695, %v7339_v48  ;;  %v5538_v48 = vmul.f32 -1.442695, %v7371_v8  ;;  %v5541_v8 = vmul.f32 -1.442695, %v7388_v22 }
 0x3e0   :  { %1173 = vrot.lane.b32.xlu0 %v5947_v31, %s6849_s0  ;;  %5956 = vpow2.f32 %v5533_v59  ;;  %v5543_v59 = vmul.f32 -1.442695, %v7401_v55 }
 0x3e1   :  { %5958 = vpow2.f32 %v5534_v40 }
 0x3e2   :  { %1067 = vrot.lane.b32.xlu1 %v1050_v24, %s6850_s4  ;;  %v5949_v24 = vpop.eup %5948  ;;  %5960 = vpow2.f32 %v5535_v3  ;;  %v5544_v3 = vmul.f32 -1.442695, %v7411_v27 }
 0x3e3   :  { %v984_v56 = vadd.f32 1.0, %v5949_v24 }
 0x3e4   :  { %1083 = vrot.lane.b32.xlu0 %v1057_v47, %s6850_s4  ;;  %v5539_v47 = vmul.f32 -1.442695, %v7375_v28 }
 0x3e5   :  { %5962 = vrcp.f32 %v984_v56 }
 0x3e6   :  { %1065 = vrot.lane.b32.xlu1 %v7406_v0, %s6850_s4 }
 0x3e8   :  { %1069 = vrot.lane.b32.xlu0 %v1051_v58, %s6850_s4 }
 0x3e9   :  { %v5951_v36 = vpop.eup %5950 }
 0x3ea   :  { %1081 = vrot.lane.b32.xlu1 %v7348_v44, %s6850_s4  ;;  %v5953_v33 = vpop.eup %5952  ;;  %v986_v25 = vadd.f32 1.0, %v5951_v36 }
 0x3eb   :  { %v5955_v43 = vpop.eup %5954 }
 0x3ec   :  { %1085 = vrot.lane.b32.xlu0 %v1058_v60, %s6850_s4  ;;  %v985_v31 = vadd.f32 1.0, %v5955_v43  ;;  %5964 = vrcp.f32 %v986_v25 }
 0x3ed   :  { %5966 = vpow2.f32 %v5537_v39  ;;  %v5957_v14 = vpop.eup %5956 }
 0x3ee   :  { %1071 = vrot.lane.b32.xlu1 %v1052_v45, %s6850_s4  ;;  %v983_v45 = vadd.f32 1.0, %v5953_v33  ;;  %v5959_v58 = vpop.eup %5958 }
 0x3ef   :  { %v5961_v60 = vpop.eup %5960 }
 0x3f0   :  { %1087 = vrot.lane.b32.xlu0 %v1059_v63, %s6850_s4  ;;  %5968 = vrcp.f32 %v983_v45 }
 0x3f1   :  { %5970 = vrcp.f32 %v985_v31 }
 0x3f2   :  { %1073 = vrot.lane.b32.xlu1 %v1053_v51, %s6850_s4  ;;  %v987_v51 = vadd.f32 1.0, %v5957_v14  ;;  %5972 = vpow2.f32 %v5538_v48 }
 0x3f3   :  { %5974 = vpow2.f32 %v5539_v47 }
 0x3f4   :  { %1089 = vrot.lane.b32.xlu0 %v1060_v12, %s6850_s4  ;;  %5976 = vpow2.f32 %v5536_v54  ;;  %v989_v12 = vadd.f32 1.0, %v5961_v60 }
 0x3f5   :  { %5978 = vrcp.f32 %v987_v51 }
 0x3f6   :  { %1075 = vrot.lane.b32.xlu1 %v1054_v50, %s6850_s4  ;;  %v988_v50 = vadd.f32 1.0, %v5959_v58  ;;  %5980 = vpow2.f32 %v5540_v41 }
 0x3f8   :  { %1091 = vrot.lane.b32.xlu0 %v1061_v20, %s6850_s4  ;;  %5982 = vrcp.f32 %v988_v50 }
 0x3f9   :  { %5984 = vpow2.f32 %v5541_v8 }
 0x3fa   :  { %1077 = vrot.lane.b32.xlu1 %v1055_v4, %s6850_s4  ;;  %v7463_v4 = vpop.eup %5962  ;;  %5986 = vrcp.f32 %v989_v12 }
 0x3fb   :  { %v7466_v32 = vpop.eup %5964  ;;  %5988 = vpow2.f32 %v5542_v62 }
 0x3fc   :  { %1093 = vrot.lane.b32.xlu0 %v1062_v53, %s6850_s4  ;;  %v5967_v53 = vpop.eup %5966  ;;  %5990 = vpow2.f32 %v5543_v59 }
 0x3fd   :  { %v7471_v18 = vpop.eup %5968  ;;  %v991_v24 = vadd.f32 1.0, %v5967_v53 }
 0x3fe   :  { %v7475_v13 = vpop.eup %5970 }
 0x3ff   :  { %v5973_v40 = vpop.eup %5972  ;;  %5992 = vrcp.f32 %v991_v24 }
 0x400   :  { %v5975_v34 = vpop.eup %5974  ;;  %v992_v25 = vadd.f32 1.0, %v5973_v40  ;;  %5994 = vpow2.f32 %v5544_v3 }
 0x401   :  { %v5977_v33 = vpop.eup %5976  ;;  %v993_v39 = vadd.f32 1.0, %v5975_v34 }
 0x402   :  { %v7481_v43 = vpop.eup %5978  ;;  %v990_v48 = vadd.f32 1.0, %v5977_v33  ;;  %5996 = vrcp.f32 %v992_v25 }
 0x403   :  { %v5981_v55 = vpop.eup %5980  ;;  %5998 = vrcp.f32 %v993_v39 }
 0x404   :  { %v994_v27 = vadd.f32 1.0, %v5981_v55  ;;  %6000 = vrcp.f32 %v990_v48 }
 0x405   :  { %v7485_v14 = vpop.eup %5982 }
 0x406   :  { %v5985_v47 = vpop.eup %5984  ;;  %6002 = vrcp.f32 %v994_v27 }
 0x407   :  { %v7491_v41 = vpop.eup %5986  ;;  %v995_v50 = vadd.f32 1.0, %v5985_v47 }
 0x408   :  { %v5989_v60 = vpop.eup %5988 }
 0x409   :  { %v996_v12 = vadd.f32 1.0, %v5989_v60  ;;  %6004 = vrcp.f32 %v995_v50 }
 0x40b   :  { %6006 = vrcp.f32 %v996_v12 }
 0x430   :  { %v1146_v63 = vpop.permute.xlu1 %1145 }
 0x431   :  { %v1192_v28 = vmul.f32 %v7463_v4, %v1146_v63 }
 0x432   :  { %v1150_v20 = vpop.permute.xlu0 %1149 }
 0x433   :  { %v1194_v11 = vmul.f32 %v7466_v32, %v1150_v20  ;;  %1225 = vrot.lane.b32.xlu1 %v1192_v28, %s6850_s4  ;;  %v5991_v28 = vpop.eup %5990 }
 0x434   :  { %v1144_v22 = vpop.permute.xlu1 %1143  ;;  %v7496_v20 = vpop.eup %5992  ;;  %v997_v59 = vadd.f32 1.0, %v5991_v28 }
 0x435   :  { %v1191_v19 = vmul.f32 %v7471_v18, %v1144_v22  ;;  %1229 = vrot.lane.b32.xlu0 %v1194_v11, %s6850_s4  ;;  %v5995_v22 = vpop.eup %5994 }
 0x436   :  { %v7489_v58 = vpop.permute.xlu0 %1079  ;;  %v998_v33 = vadd.f32 1.0, %v5995_v22  ;;  %6008 = vrcp.f32 %v997_v59 }
 0x437   :  { %1223 = vrot.lane.b32.xlu1 %v1191_v19, %s6850_s4  ;;  %v7499_v19 = vpop.eup %5996 }
 0x438   :  { %v1148_v36 = vpop.permute.xlu1 %1147  ;;  %v7502_v40 = vpop.eup %5998  ;;  %6010 = vrcp.f32 %v998_v33 }
 0x439   :  { %v1193_v56 = vmul.f32 %v7475_v13, %v1148_v36 }
 0x43a   :  { %v1160_v53 = vpop.permute.xlu0 %1159 }
 0x43b   :  { %1227 = vrot.lane.b32.xlu1 %v1193_v56, %s6850_s4  ;;  %v1199_v11 = vmul.f32 %v7496_v20, %v1160_v53  ;;  %v7506_v56 = vpop.eup %6000 }
 0x43c   :  { %v1152_v45 = vpop.permute.xlu1 %1151  ;;  %v7510_v25 = vpop.eup %6002 }
 0x43d   :  { %v1195_v31 = vmul.f32 %v7481_v43, %v1152_v45  ;;  %1239 = vrot.lane.b32.xlu0 %v1199_v11, %s6850_s4 }
 0x43e   :  { %v1164_v24 = vpop.permute.xlu0 %1163 }
 0x43f   :  { %1231 = vrot.lane.b32.xlu1 %v1195_v31, %s6850_s4  ;;  %v1201_v36 = vmul.f32 %v7502_v40, %v1164_v24  ;;  %v7516_v31 = vpop.eup %6004 }
 0x440   :  { %v1154_v54 = vpop.permute.xlu1 %1153  ;;  %v7520_v47 = vpop.eup %6006 }
 0x441   :  { %v1196_v51 = vmul.f32 %v7485_v14, %v1154_v54  ;;  %1243 = vrot.lane.b32.xlu0 %v1201_v36, %s6850_s4 }
 0x442   :  { %v1166_v39 = vpop.permute.xlu0 %1165 }
 0x443   :  { %1233 = vrot.lane.b32.xlu1 %v1196_v51, %s6850_s4  ;;  %v1202_v55 = vmul.f32 %v7510_v25, %v1166_v39  ;;  %v7524_v50 = vpop.eup %6008 }
 0x444   :  { %v1156_v8 = vpop.permute.xlu1 %1155 }
 0x445   :  { %v1197_v63 = vmul.f32 %v7491_v41, %v1156_v8  ;;  %1245 = vrot.lane.b32.xlu0 %v1202_v55, %s6850_s4 }
 0x446   :  { %v1168_v48 = vpop.permute.xlu0 %1167 }
 0x447   :  { %1235 = vrot.lane.b32.xlu1 %v1197_v63, %s6850_s4  ;;  %v1203_v27 = vmul.f32 %v7516_v31, %v1168_v48  ;;  %v7528_v63 = vpop.eup %6010 }
 0x448   :  { %v1158_v62 = vpop.permute.xlu1 %1157 }
 0x449   :  { %v1198_v45 = vmul.f32 %v7506_v56, %v1158_v62  ;;  %1247 = vrot.lane.b32.xlu0 %v1203_v27, %s6850_s4 }
 0x44a   :  { %v1170_v54 = vpop.permute.xlu0 %1169 }
 0x44b   :  { %v1204_v51 = vmul.f32 %v7520_v47, %v1170_v54 }
 0x44c   :  { %v1162_v34 = vpop.permute.xlu1 %1161 }
 0x44d   :  { %v1200_v3 = vmul.f32 %v7499_v19, %v1162_v34  ;;  %1249 = vrot.lane.b32.xlu0 %v1204_v51, %s6850_s4 }
 0x44e   :  { %v1172_v60 = vpop.permute.xlu0 %1171 }
 0x44f   :  { %1241 = vrot.lane.b32.xlu1 %v1200_v3, %s6850_s4  ;;  %v1205_v8 = vmul.f32 %v7524_v50, %v1172_v60 }
 0x450   :  { %v1064_v53 = vpop.permute.xlu1 %1063 }
 0x451   :  { %1251 = vrot.lane.b32.xlu0 %v1205_v8, %s6850_s4 }
 0x452   :  { %v1174_v28 = vpop.permute.xlu0 %1173 }
 0x453   :  { %1237 = vrot.lane.b32.xlu1 %v1198_v45, %s6850_s4  ;;  %v1206_v12 = vmul.f32 %v7528_v63, %v1174_v28 }
 0x454   :  { %v1068_v62 = vpop.permute.xlu1 %1067 }
 0x455   :  { %1253 = vrot.lane.b32.xlu0 %v1206_v12, %s6850_s4  ;;  %v1111_v12 = vmul.f32 %v7471_v18, %v1064_v53  ;;  %v1113_v15 = vmul.f32 %v7475_v13, %v1068_v62 }
 0x456   :  { %v7532_v11 = vpop.permute.xlu0 %1083 }
 0x458   :  { %v1066_v22 = vpop.permute.xlu1 %1065 }
 0x459   :  { %v1112_v54 = vmul.f32 %v7463_v4, %v1066_v22 }
 0x45a   :  { %v1070_v59 = vpop.permute.xlu0 %1069 }
 0x45b   :  { %v1114_v60 = vmul.f32 %v7466_v32, %v1070_v59 }
 0x45c   :  { %v1082_v24 = vpop.permute.xlu1 %1081 }
 0x45e   :  { %v7534_v34 = vpop.permute.xlu0 %1085 }
 0x460   :  { %v1072_v36 = vpop.permute.xlu1 %1071 }
 0x461   :  { %v1115_v9 = vmul.f32 %v7481_v43, %v1072_v36 }
 0x462   :  { %v7536_v3 = vpop.permute.xlu0 %1087 }
 0x464   :  { %v1074_v33 = vpop.permute.xlu1 %1073 }
 0x466   :  { %v7538_v39 = vpop.permute.xlu0 %1089 }
 0x468   :  { %v1076_v55 = vpop.permute.xlu1 %1075 }
 0x46a   :  { %v7540_v45 = vpop.permute.xlu0 %1091 }
 0x46c   :  { %v7542_v48 = vpop.permute.xlu1 %1077 }
 0x46e   :  { %v7544_v27 = vpop.permute.xlu0 %1093 }
 0x4a5   :  { %v1226_v51 = vpop.permute.xlu1 %1225 }
 0x4a6   :  { %v1272_v8 = vadd.f32 %v1226_v51, %v1112_v54 }
 0x4a7   :  { %v1230_v28 = vpop.permute.xlu0 %1229 }
 0x4a8   :  { %6012 = vtanh.f32 %v1272_v8  ;;  %v1274_v1 = vadd.f32 %v1230_v28, %v1114_v60 }
 0x4a9   :  { %v1224_v6 = vpop.permute.xlu1 %1223 }
 0x4aa   :  { %6014 = vtanh.f32 %v1274_v1  ;;  %v1271_v44 = vadd.f32 %v1224_v6, %v1111_v12  ;;  %v1467_v54 = vrot.slane %v1274_v1, 6  ;;  %v1116_v6 = vmul.f32 %v7485_v14, %v1074_v33 }
 0x4ab   :  { %v1117_v1 = vmul.f32 %v7491_v41, %v1076_v55 }
 0x4ac   :  { %6016 = vtanh.f32 %v1271_v44  ;;  %v1463_v61 = vrot.slane %v1271_v44, 1 }
 0x4ad   :  { %v1228_v23 = vpop.permute.xlu1 %1227 }
 0x4ae   :  { %v1464_v16 = vsel %vm748_vm2, %v1272_v8, %v1463_v61  ;;  %v1273_v22 = vadd.f32 %v1228_v23, %v1113_v15 }
 0x4b0   :  { %6018 = vtanh.f32 %v1273_v22  ;;  %v1465_v59 = vrot.slane %v1273_v22, 7  ;;  %v1119_v22 = vmul.f32 %v7496_v20, %v7489_v58 }
 0x4b1   :  { %v1232_v51 = vpop.permute.xlu1 %1231 }
 0x4b2   :  { %v1466_v53 = vsel %vm751_vm3, %v1465_v59, %v1464_v16  ;;  %v1275_v60 = vadd.f32 %v1232_v51, %v1115_v9  ;;  %v1240_v51 = vpop.permute.xlu0 %1239 }
 0x4b3   :  { %v1468_v28 = vsel %vm754_vm4, %v1467_v54, %v1466_v53  ;;  %v1279_v53 = vadd.f32 %v1240_v51, %v1119_v22 }
 0x4b4   :  { %6020 = vtanh.f32 %v1275_v60  ;;  %v1469_v62 = vrot.slane %v1275_v60, 5  ;;  %v1121_v60 = vmul.f32 %v7502_v40, %v7532_v11 }
 0x4b5   :  { %v6013_v44 = vpop.eup %6012  ;;  %v1234_v12 = vpop.permute.xlu1 %1233 }
 0x4b6   :  { %v1470_v61 = vsel %vm757_vm5, %v1469_v62, %v1468_v28  ;;  %v1276_v23 = vadd.f32 %v1234_v12, %v1116_v6  ;;  %1321 = vrot.lane.b32.xlu1 %v6013_v44, %s6849_s0  ;;  %v1120_v28 = vmul.f32 %v7499_v19, %v1082_v24  ;;  %v1244_v62 = vpop.permute.xlu0 %1243  ;;  %v1477_v12 = vrot.slane %v1279_v53, 1 }
 0x4b7   :  { %v6015_v15 = vpop.eup %6014  ;;  %v1281_v58 = vadd.f32 %v1244_v62, %v1121_v60 }
 0x4b8   :  { %6022 = vtanh.f32 %v1276_v23  ;;  %v1471_v36 = vrot.slane %v1276_v23, 4  ;;  %1325 = vrot.lane.b32.xlu0 %v6015_v15, %s6849_s0  ;;  %v1122_v23 = vmul.f32 %v7510_v25, %v7534_v34  ;;  %v1118_v15 = vmul.f32 %v7506_v56, %v7542_v48 }
 0x4b9   :  { %v6017_v9 = vpop.eup %6016  ;;  %v1236_v16 = vpop.permute.xlu1 %1235  ;;  %v1123_v34 = vmul.f32 %v7516_v31, %v7536_v3 }
 0x4ba   :  { %v1277_v8 = vadd.f32 %v1236_v16, %v1117_v1  ;;  %1319 = vrot.lane.b32.xlu1 %v6017_v9, %s6849_s0  ;;  %v1472_v33 = vsel %vm760_vm6, %v1471_v36, %v1470_v61  ;;  %v1479_v1 = vrot.slane %v1281_v58, 7  ;;  %v1246_v36 = vpop.permute.xlu0 %1245 }
 0x4bb   :  { %v1282_v16 = vadd.f32 %v1246_v36, %v1122_v23 }
 0x4bc   :  { %6024 = vtanh.f32 %v1277_v8  ;;  %v1473_v59 = vrot.slane %v1277_v8, 3 }
 0x4bd   :  { %v6019_v54 = vpop.eup %6018  ;;  %6026 = vtanh.f32 %v1279_v53  ;;  %v1481_v22 = vrot.slane %v1282_v16, 6 }
 0x4be   :  { %1323 = vrot.lane.b32.xlu1 %v6019_v54, %s6849_s0  ;;  %v1474_v55 = vsel %vm763_vm7, %v1473_v59, %v1472_v33  ;;  %6028 = vtanh.f32 %v1281_v58  ;;  %v1248_v54 = vpop.permute.xlu0 %1247  ;;  %v1125_v58 = vmul.f32 %v7524_v50, %v7540_v45 }
 0x4bf   :  { %v1283_v51 = vadd.f32 %v1248_v54, %v1123_v34  ;;  %v9935_v34 = vmov 0  }
 0x4c1   :  { %v6021_v6 = vpop.eup %6020  ;;  %v1242_v44 = vpop.permute.xlu1 %1241 }
 0x4c2   :  { %v1280_v61 = vadd.f32 %v1242_v44, %v1120_v28  ;;  %1327 = vrot.lane.b32.xlu1 %v6021_v6, %s6849_s0  ;;  %v1124_v28 = vmul.f32 %v7520_v47, %v7538_v39  ;;  %v1483_v6 = vrot.slane %v1283_v51, 5  ;;  %v1250_v62 = vpop.permute.xlu0 %1249 }
 0x4c4   :  { %v1478_v11 = vsel %vm748_vm2, %v1280_v61, %v1477_v12  ;;  %6030 = vtanh.f32 %v1280_v61  ;;  %v1284_v44 = vadd.f32 %v1250_v62, %v1124_v28 }
 0x4c5   :  { %v6023_v24 = vpop.eup %6022  ;;  %v1238_v9 = vpop.permute.xlu1 %1237  ;;  %v1480_v8 = vsel %vm751_vm3, %v1479_v1, %v1478_v11  ;;  %6032 = vtanh.f32 %v1282_v16  ;;  %v1126_v11 = vmul.f32 %v7528_v63, %v7544_v27 }
 0x4c6   :  { %v1278_v33 = vadd.f32 %v1238_v9, %v1118_v15  ;;  %1329 = vrot.lane.b32.xlu1 %v6023_v24, %s6849_s0  ;;  %v1482_v53 = vsel %vm754_vm4, %v1481_v22, %v1480_v8  ;;  %v1485_v61 = vrot.slane %v1284_v44, 4  ;;  %v1385_v22 = vsel %vm1383_vm13, 1, %v9935_v34 }
 0x4c7   :  { %v1484_v12 = vsel %vm757_vm5, %v1483_v6, %v1482_v53 }
 0x4c8   :  { %v1475_v48 = vrot.slane %v1278_v33, 2  ;;  %6034 = vtanh.f32 %v1278_v33  ;;  %v1486_v39 = vsel %vm760_vm6, %v1485_v61, %v1484_v12 }
 0x4c9   :  { %v6025_v59 = vpop.eup %6024  ;;  %6036 = vtanh.f32 %v1283_v51  ;;  %v1386_v51 = vsel %vm1384_vm14, 1, %v9935_v34 }
 0x4ca   :  { %1331 = vrot.lane.b32.xlu1 %v6025_v59, %s6849_s0  ;;  %v7581_v60 = vsel %vm766_vm8, %v1475_v48, %v1474_v55  ;;  %v6027_v3 = vpop.eup %6026  ;;  %6038 = vtanh.f32 %v1284_v44  ;;  %v1252_v55 = vpop.permute.xlu0 %1251 }
 0x4cb   :  { %1335 = vrot.lane.b32.xlu0 %v6027_v3, %s6849_s0  ;;  %v6029_v23 = vpop.eup %6028  ;;  %v1285_v1 = vadd.f32 %v1252_v55, %v1125_v58 }
 0x4cd   :  { %6040 = vtanh.f32 %v1285_v1  ;;  %v1487_v24 = vrot.slane %v1285_v1, 3 }
 0x4ce   :  { %v1254_v9 = vpop.permute.xlu0 %1253 }
 0x4cf   :  { %1339 = vrot.lane.b32.xlu0 %v6029_v23, %s6849_s0  ;;  %v1286_v16 = vadd.f32 %v1254_v9, %v1126_v11  ;;  %v1488_v8 = vsel %vm763_vm7, %v1487_v24, %v1486_v39 }
 0x4d1   :  { %v6031_v15 = vpop.eup %6030  ;;  %6042 = vtanh.f32 %v1286_v16  ;;  %v1489_v33 = vrot.slane %v1286_v16, 2 }
 0x4d2   :  { %1337 = vrot.lane.b32.xlu1 %v6031_v15, %s6849_s0  ;;  %v6033_v36 = vpop.eup %6032 }
 0x4d3   :  { %1341 = vrot.lane.b32.xlu0 %v6033_v36, %s6849_s0  ;;  %v7601_v27 = vsel %vm766_vm8, %v1489_v33, %v1488_v8 }
 0x4d5   :  { %v6035_v45 = vpop.eup %6034 }
 0x4d6   :  { %1333 = vrot.lane.b32.xlu1 %v6035_v45, %s6849_s0  ;;  %v6037_v48 = vpop.eup %6036 }
 0x4d7   :  { %1343 = vrot.lane.b32.xlu0 %v6037_v48, %s6849_s0  ;;  %v6039_v38 = vpop.eup %6038 }
 0x4da   :  { %1388 = vperm.xlu1 %5775, %v1385_v22   ;;  %v6041_v59 = vpop.eup %6040 }
 0x4db   :  { %1345 = vrot.lane.b32.xlu0 %v6039_v38, %s6849_s0 }
 0x4de   :  { %v6043_v54 = vpop.eup %6042 }
 0x4df   :  { %1347 = vrot.lane.b32.xlu0 %v6041_v59, %s6849_s0 }
 0x4e3   :  { %1349 = vrot.lane.b32.xlu0 %v6043_v54, %s6849_s0 }
 0x4e7   :  { %1391 = vperm.xlu0 %5774, %v1386_v51  }
 0x528   :  { %v1322_v53 = vpop.permute.xlu1 %1321 }
 0x529   :  { %v1368_v1 = vmul.f32 %v7463_v4, %v1322_v53 }
 0x52a   :  { %v1326_v44 = vpop.permute.xlu0 %1325 }
 0x52b   :  { %v1370_v39 = vmul.f32 %v7466_v32, %v1326_v44 }
 0x52c   :  { %v1320_v28 = vpop.permute.xlu1 %1319 }
 0x52d   :  { %v1367_v12 = vmul.f32 %v7471_v18, %v1320_v28  ;;  %v1415_v8 = vrot.slane %v1370_v39, 6 }
 0x52f   :  { %v1411_v55 = vrot.slane %v1367_v12, 1 }
 0x530   :  { %v1324_v6 = vpop.permute.xlu1 %1323 }
 0x531   :  { %v1369_v58 = vmul.f32 %v7475_v13, %v1324_v6  ;;  %v1412_v18 = vsel %vm748_vm2, %v1368_v1, %v1411_v55 }
 0x533   :  { %v1413_v29 = vrot.slane %v1369_v58, 7 }
 0x534   :  { %v1328_v3 = vpop.permute.xlu1 %1327 }
 0x535   :  { %v1371_v15 = vmul.f32 %v7481_v43, %v1328_v3  ;;  %v1414_v13 = vsel %vm751_vm3, %v1413_v29, %v1412_v18 }
 0x536   :  { %v1416_v48 = vsel %vm754_vm4, %v1415_v8, %v1414_v13  ;;  %v9940_v13 = vmov 0.0  }
 0x537   :  { %v1417_v16 = vrot.slane %v1371_v15, 5 }
 0x538   :  { %v1330_v62 = vpop.permute.xlu1 %1329 }
 0x539   :  { %v1372_v24 = vmul.f32 %v7485_v14, %v1330_v62  ;;  %v1418_v59 = vsel %vm757_vm5, %v1417_v16, %v1416_v48 }
 0x53b   :  { %v1419_v33 = vrot.slane %v1372_v24, 4 }
 0x53c   :  { %v1332_v23 = vpop.permute.xlu1 %1331 }
 0x53d   :  { %v1336_v61 = vpop.permute.xlu0 %1335  ;;  %v1373_v36 = vmul.f32 %v7491_v41, %v1332_v23  ;;  %v1420_v54 = vsel %vm760_vm6, %v1419_v33, %v1418_v59 }
 0x53e   :  { %v1375_v45 = vmul.f32 %v7496_v20, %v1336_v61 }
 0x53f   :  { %v1421_v22 = vrot.slane %v1373_v36, 3 }
 0x540   :  { %v1425_v38 = vrot.slane %v1375_v45, 1 }
 0x541   :  { %v1340_v11 = vpop.permute.xlu0 %1339 }
 0x542   :  { %v1377_v14 = vmul.f32 %v7502_v40, %v1340_v11 }
 0x544   :  { %v1338_v9 = vpop.permute.xlu1 %1337  ;;  %v1427_v6 = vrot.slane %v1377_v14, 7 }
 0x545   :  { %v1342_v43 = vpop.permute.xlu0 %1341  ;;  %v1376_v4 = vmul.f32 %v7499_v19, %v1338_v9  ;;  %v1422_v19 = vsel %vm763_vm7, %v1421_v22, %v1420_v54 }
 0x546   :  { %v1378_v53 = vmul.f32 %v7510_v25, %v1342_v43 }
 0x547   :  { %v1426_v28 = vsel %vm748_vm2, %v1376_v4, %v1425_v38 }
 0x548   :  { %v1334_v32 = vpop.permute.xlu1 %1333  ;;  %v1428_v62 = vsel %vm751_vm3, %v1427_v6, %v1426_v28  ;;  %v1429_v44 = vrot.slane %v1378_v53, 6 }
 0x549   :  { %v1374_v41 = vmul.f32 %v7506_v56, %v1334_v32  ;;  %v1344_v20 = vpop.permute.xlu0 %1343 }
 0x54a   :  { %v1379_v40 = vmul.f32 %v7516_v31, %v1344_v20  ;;  %v1430_v58 = vsel %vm754_vm4, %v1429_v44, %v1428_v62 }
 0x54b   :  { %v1423_v51 = vrot.slane %v1374_v41, 2 }
 0x54c   :  { %v1431_v25 = vrot.slane %v1379_v40, 5 }
 0x54d   :  { %v1424_v3 = vsel %vm766_vm8, %v1423_v51, %v1422_v19  ;;  %v1346_v56 = vpop.permute.xlu0 %1345 }
 0x54e   :  { %1439 = vrot.lane.b32.xlu1 %v1424_v3, %s6850_s4  ;;  %v1380_v12 = vmul.f32 %v7520_v47, %v1346_v56  ;;  %v1432_v55 = vsel %vm757_vm5, %v1431_v25, %v1430_v58 }
 0x550   :  { %v1433_v29 = vrot.slane %v1380_v12, 4 }
 0x551   :  { %v1348_v61 = vpop.permute.xlu0 %1347 }
 0x552   :  { %1491 = vrot.lane.b32.xlu1 %v7581_v60, %s6851_s26  ;;  %v1381_v23 = vmul.f32 %v7524_v50, %v1348_v61  ;;  %v1434_v39 = vsel %vm760_vm6, %v1433_v29, %v1432_v55 }
 0x554   :  { %v1435_v15 = vrot.slane %v1381_v23, 3 }
 0x555   :  { %v1350_v31 = vpop.permute.xlu0 %1349  ;;  %v7644_v50 = vpop.permute.xlu1 %1388 }
 0x556   :  { %v1382_v1 = vmul.f32 %v7528_v63, %v1350_v31  ;;  %v1436_v47 = vsel %vm763_vm7, %v1435_v15, %v1434_v39  ;;  %9936 = vst [vmem:[#allocation16_spill] sm:$0xff] %v7644_v50  ;;  %vm1393_vm15 = vcmp.eq.s32.totalorder %v7644_v50, 1  ;;  %v9941_v31 = vld [vmem:[#allocation9_spill] sm:$0xff] }
 0x558   :  { %v1437_v11 = vrot.slane %v1382_v1, 2 }
 0x55a   :  { %v1438_v24 = vsel %vm766_vm8, %v1437_v11, %v1436_v47  ;;  %v9942_v11 = vld [vmem:[#allocation10_spill] sm:$0xff] }
 0x55b   :  { %1441 = vrot.lane.b32.xlu0 %v1438_v24, %s6850_s4 }
 0x55f   :  { %1493 = vrot.lane.b32.xlu0 %v7601_v27, %s6851_s26 }
 0x562   :  { %v7646_v60 = vpop.permute.xlu0 %1391 }
 0x563   :  { %9937 = vst [vmem:[#allocation17_spill] sm:$0xff] %v7646_v60  ;;  %vm1394_vm9 = vcmp.eq.s32.totalorder %v7646_v60, 1 }
 0x5c0   :  { %v7648_v36 = vpop.permute.xlu1 %1439 }
 0x5c1   :  { %9938 = vst [vmem:[#allocation18_spill] sm:$0xff] %v7648_v36  ;;  %v7658_v9 = vsel %vm1393_vm15, %v7648_v36, %v7297_v5 }
 0x5c4   :  { %v1492_v28 = vpop.permute.xlu1 %1491 }
 0x5c5   :  { %v7709_v6 = vsel %vm1393_vm15, %v1492_v28, %v7406_v0 }
 0x5c6   :  { %v1709_v56 = vrot.slane %v7709_v6, 7 }
 0x5cd   :  { %v7652_v63 = vpop.permute.xlu0 %1441 }
 0x5ce   :  { %9939 = vst [vmem:[#allocation19_spill] sm:$0xff] %v7652_v63  ;;  %v7664_v27 = vsel %vm1394_vm9, %v7652_v63, %v7300_v37 }
 0x5cf   :  { %v1501_v18 = vpack.c.bf16 %v7664_v27, %v7658_v9 }
 0x5d1   :  { %5722 = vmatmul.mubr.msk.bf16.vlgmr.msra.gmra.mxu1 %vm103_vm1, %v1501_v18  ;;  %v9943_v18 = vld [vmem:[#allocation11_spill] sm:$0xff]  ;;  %v1494_v28 = vpop.permute.xlu0 %1493 }
 0x5d2   :  { %5726 = vmatpush3.bf16.msra.mxu1 %v7308_v7  ;;  %5729 = vmatprep.mubr.msk.bf16.mxu1 %vm6847_vm0, %v9940_v13 }
 0x5d3   :  { %5727 = vmatprep.subr.bf16.mxu1 %v9940_v13 }
 0x5d6   :  { %5728 = vmatpush3.bf16.msra.mxu1 %v7317_v10 }
 0x5d7   :  { %5741 = vmatprep.subr.bf16.mxu1 %v9940_v13 }
 0x691   :  { %v1539_v45 = vpop.f32.mrf.mxu1 }
 0x692   :  { %v1549_v33 = vrot.slane %v1539_v45, 7  ;;  %v1551_v22 = vrot.slane %v1539_v45, 2  ;;  %v1548_v7 = vrot.slane %v1539_v45, 6  ;;  %v7681_v32 = vadd.f32 %v1539_v45, %v6959_v17 }
 0x693   :  { %v5723_v16 = vpop.f32.mrf.mxu1  ;;  %v1550_v10 = vrot.slane %v1539_v45, 1  ;;  %v1552_v41 = vrot.slane %v1539_v45, 3  ;;  %v1553_v59 = vrot.slane %v1539_v45, 4  ;;  %v1554_v55 = vrot.slane %v1539_v45, 5 }
 0x694   :  { %v7678_v4 = vadd.f32 %v1549_v33, %v6980_v30  ;;  %v7684_v48 = vadd.f32 %v1551_v22, %v6988_v35  ;;  %v7688_v14 = vadd.f32 %v1548_v7, %v6963_v21  ;;  %v9944_v33 = vld [vmem:[#allocation8_spill] sm:$0xff] }
 0x695   :  { %v7675_v8 = vpop.f32.mrf.mxu1  ;;  %v7693_v38 = vadd.f32 %v1550_v10, %v6972_v26  ;;  %v7697_v54 = vadd.f32 %v1552_v41, %v7000_v42  ;;  %v7701_v51 = vadd.f32 %v1553_v59, %v7042_v2  ;;  %v7743_v47 = vadd.f32 %v1554_v55, %v9942_v11  ;;  %v9945_v10 = vld [vmem:[#allocation12_spill] sm:$0xff] }
 0x696   :  { %6044 = vtanh.f32 %v7678_v4  ;;  %v1556_v3 = vrot.slane %v7675_v8, 7  ;;  %v1557_v62 = vrot.slane %v7675_v8, 1  ;;  %v1555_v0 = vrot.slane %v7675_v8, 6 }
 0x697   :  { %v5724_v43 = vpop.f32.mrf.mxu1  ;;  %6046 = vtanh.f32 %v7681_v32  ;;  %v7723_v58 = vadd.f32 %v7675_v8, %v7008_v46  ;;  %v1558_v25 = vrot.slane %v7675_v8, 2  ;;  %v1559_v15 = vrot.slane %v7675_v8, 3 }
 0x698   :  { %6048 = vtanh.f32 %v7684_v48  ;;  %v7718_v44 = vadd.f32 %v1556_v3, %v7030_v57  ;;  %v7729_v61 = vadd.f32 %v1557_v62, %v7019_v52  ;;  %v7733_v29 = vadd.f32 %v1555_v0, %v7015_v49 }
 0x699   :  { %6050 = vtanh.f32 %v7688_v14  ;;  %v7739_v1 = vadd.f32 %v1558_v25, %v9941_v31  ;;  %v1560_v24 = vrot.slane %v7675_v8, 4  ;;  %v7749_v45 = vadd.f32 %v1559_v15, %v9943_v18 }
 0x69a   :  { %6052 = vtanh.f32 %v7693_v38  ;;  %v1561_v16 = vrot.slane %v7675_v8, 5  ;;  %v1708_v3 = vrot.slane %v7709_v6, 6  ;;  %v1710_v25 = vrot.slane %v7709_v6, 1 }
 0x69b   :  { %6054 = vtanh.f32 %v7697_v54  ;;  %v7755_v43 = vadd.f32 %v1560_v24, %v9944_v33  ;;  %v1711_v15 = vrot.slane %v7709_v6, 2 }
 0x69c   :  { %6056 = vtanh.f32 %v7701_v51  ;;  %v7761_v41 = vadd.f32 %v1561_v16, %v9945_v10  ;;  %v1713_v16 = vrot.slane %v7709_v6, 4 }
 0x69d   :  { %6058 = vtanh.f32 %v7718_v44 }
 0x69e   :  { %6060 = vtanh.f32 %v7723_v58 }
 0x69f   :  { %6062 = vtanh.f32 %v7729_v61 }
 0x6a0   :  { %6064 = vtanh.f32 %v7733_v29 }
 0x6a1   :  { %6066 = vtanh.f32 %v7739_v1 }
 0x6a2   :  { %6068 = vtanh.f32 %v7743_v47 }
 0x6a3   :  { %v6045_v20 = vpop.eup %6044  ;;  %6070 = vtanh.f32 %v7749_v45 }
 0x6a4   :  { %v6047_v53 = vpop.eup %6046  ;;  %1804 = vrot.lane.b32.xlu0 %v6045_v20, %s6849_s0  ;;  %6072 = vtanh.f32 %v7755_v43 }
 0x6a5   :  { %1806 = vrot.lane.b32.xlu1 %v6047_v53, %s6849_s0  ;;  %v6049_v19 = vpop.eup %6048  ;;  %6074 = vtanh.f32 %v7761_v41 }
 0x6a6   :  { %v6051_v40 = vpop.eup %6050 }
 0x6a7   :  { %v6053_v12 = vpop.eup %6052 }
 0x6a8   :  { %1810 = vrot.lane.b32.xlu0 %v6049_v19, %s6849_s0  ;;  %v6055_v23 = vpop.eup %6054 }
 0x6a9   :  { %1802 = vrot.lane.b32.xlu1 %v6051_v40, %s6849_s0  ;;  %v6057_v39 = vpop.eup %6056  ;;  %v9946_v40 = vld [vmem:[#allocation15_spill] sm:$0xff] }
 0x6aa   :  { %v6059_v22 = vpop.eup %6058 }
 0x6ab   :  { %v6061_v7 = vpop.eup %6060 }
 0x6ac   :  { %1724 = vrot.lane.b32.xlu0 %v1709_v56, %s6850_s4  ;;  %v6063_v59 = vpop.eup %6062  ;;  %v7773_v56 = vsel %vm1394_vm9, %v1494_v28, %v9946_v40  ;;  %v5546_v28 = vmul.f32 -1.442695, %v7688_v14  ;;  %v5551_v40 = vmul.f32 -1.442695, %v7697_v54 }
 0x6ad   :  { %1808 = vrot.lane.b32.xlu1 %v6053_v12, %s6849_s0  ;;  %v6065_v20 = vpop.eup %6064  ;;  %9947 = vst [vmem:[#allocation15_spill] sm:$0xff] %v7773_v56  ;;  %v1715_v12 = vrot.slane %v7773_v56, 6  ;;  %v1717_v55 = vrot.slane %v7773_v56, 1  ;;  %v1718_v24 = vrot.slane %v7773_v56, 2 }
 0x6ae   :  { %v6067_v8 = vpop.eup %6066 }
 0x6af   :  { %v6069_v53 = vpop.eup %6068 }
 0x6b0   :  { %1820 = vrot.lane.b32.xlu0 %v6059_v22, %s6849_s0  ;;  %v6071_v19 = vpop.eup %6070  ;;  %v1719_v22 = vrot.slane %v7773_v56, 3 }
 0x6b1   :  { %1812 = vrot.lane.b32.xlu1 %v6055_v23, %s6849_s0  ;;  %v6073_v62 = vpop.eup %6072  ;;  %v1716_v23 = vrot.slane %v7773_v56, 7 }
 0x6b2   :  { %v6075_v0 = vpop.eup %6074 }
 0x6b4   :  { %1824 = vrot.lane.b32.xlu0 %v6063_v59, %s6849_s0  ;;  %v1720_v59 = vrot.slane %v7773_v56, 4 }
 0x6b5   :  { %1814 = vrot.lane.b32.xlu1 %v6057_v39, %s6849_s0  ;;  %v1712_v39 = vrot.slane %v7709_v6, 3 }
 0x6b8   :  { %1826 = vrot.lane.b32.xlu0 %v6067_v8, %s6849_s0  ;;  %v5547_v8 = vmul.f32 -1.442695, %v7678_v4 }
 0x6b9   :  { %1822 = vrot.lane.b32.xlu1 %v6061_v7, %s6849_s0  ;;  %v1714_v7 = vrot.slane %v7709_v6, 5 }
 0x6ba   :  { %6076 = vpow2.f32 %v5547_v8 }
 0x6bc   :  { %1828 = vrot.lane.b32.xlu0 %v6071_v19, %s6849_s0  ;;  %v5550_v19 = vmul.f32 -1.442695, %v7684_v48  ;;  %v5555_v48 = vmul.f32 -1.442695, %v7718_v44 }
 0x6bd   :  { %1818 = vrot.lane.b32.xlu1 %v6065_v20, %s6849_s0  ;;  %v1721_v20 = vrot.slane %v7773_v56, 5 }
 0x6c0   :  { %1830 = vrot.lane.b32.xlu0 %v6073_v62, %s6849_s0 }
 0x6c1   :  { %1816 = vrot.lane.b32.xlu1 %v6069_v53, %s6849_s0  ;;  %v5548_v53 = vmul.f32 -1.442695, %v7681_v32 }
 0x6c3   :  { %6078 = vpow2.f32 %v5548_v53 }
 0x6c4   :  { %1832 = vrot.lane.b32.xlu0 %v6075_v0, %s6849_s0  ;;  %6080 = vpow2.f32 %v5546_v28 }
 0x6c5   :  { %1722 = vrot.lane.b32.xlu1 %v1708_v3, %s6850_s4  ;;  %v5549_v3 = vmul.f32 -1.442695, %v7693_v38  ;;  %6082 = vpow2.f32 %v5550_v19  ;;  %v5556_v38 = vmul.f32 -1.442695, %v7723_v58  ;;  %v5559_v58 = vmul.f32 -1.442695, %v7749_v45 }
 0x6c6   :  { %v5560_v45 = vmul.f32 -1.442695, %v7755_v43 }
 0x6c7   :  { %6084 = vpow2.f32 %v5549_v3  ;;  %v6077_v62 = vpop.eup %6076 }
 0x6c8   :  { %1740 = vrot.lane.b32.xlu0 %v1716_v23, %s6850_s4  ;;  %6086 = vpow2.f32 %v5551_v40  ;;  %v1643_v4 = vadd.f32 1.0, %v6077_v62 }
 0x6c9   :  { %1738 = vrot.lane.b32.xlu1 %v1715_v12, %s6850_s4 }
 0x6ca   :  { %6088 = vrcp.f32 %v1643_v4 }
 0x6cc   :  { %1744 = vrot.lane.b32.xlu0 %v1717_v55, %s6850_s4 }
 0x6cd   :  { %1728 = vrot.lane.b32.xlu1 %v1710_v25, %s6850_s4 }
 0x6d0   :  { %1730 = vrot.lane.b32.xlu0 %v1711_v15, %s6850_s4  ;;  %v6079_v12 = vpop.eup %6078 }
 0x6d1   :  { %1726 = vrot.lane.b32.xlu1 %v7709_v6, %s6850_s4  ;;  %v6081_v0 = vpop.eup %6080  ;;  %v1644_v32 = vadd.f32 1.0, %v6079_v12  ;;  %v5561_v12 = vmul.f32 -1.442695, %v7761_v41 }
 0x6d2   :  { %v6083_v25 = vpop.eup %6082  ;;  %v1642_v23 = vadd.f32 1.0, %v6081_v0 }
 0x6d3   :  { %v1646_v14 = vadd.f32 1.0, %v6083_v25  ;;  %6090 = vrcp.f32 %v1644_v32 }
 0x6d4   :  { %1746 = vrot.lane.b32.xlu0 %v1718_v24, %s6850_s4  ;;  %v6085_v55 = vpop.eup %6084  ;;  %6092 = vrcp.f32 %v1642_v23  ;;  %v5554_v24 = vmul.f32 -1.442695, %v7733_v29 }
 0x6d5   :  { %1742 = vrot.lane.b32.xlu1 %v7773_v56, %s6850_s4  ;;  %v1645_v15 = vadd.f32 1.0, %v6085_v55  ;;  %6094 = vrcp.f32 %v1646_v14  ;;  %v6087_v54 = vpop.eup %6086 }
 0x6d6   :  { %6096 = vpow2.f32 %v5555_v48 }
 0x6d7   :  { %6098 = vpow2.f32 %v5556_v38  ;;  %v7819_v44 = vpop.eup %6088 }
 0x6d8   :  { %1748 = vrot.lane.b32.xlu0 %v1719_v22, %s6850_s4  ;;  %6100 = vrcp.f32 %v1645_v15  ;;  %v5558_v22 = vmul.f32 -1.442695, %v7739_v1 }
 0x6d9   :  { %1732 = vrot.lane.b32.xlu1 %v1712_v39, %s6850_s4  ;;  %v5557_v39 = vmul.f32 -1.442695, %v7729_v61  ;;  %v5553_v61 = vmul.f32 -1.442695, %v7743_v47 }
 0x6db   :  { %6102 = vpow2.f32 %v5557_v39 }
 0x6dc   :  { %1750 = vrot.lane.b32.xlu0 %v1720_v59, %s6850_s4  ;;  %6104 = vpow2.f32 %v5554_v24 }
 0x6dd   :  { %1734 = vrot.lane.b32.xlu1 %v1713_v16, %s6850_s4  ;;  %v1647_v16 = vadd.f32 1.0, %v6087_v54 }
 0x6df   :  { %6106 = vrcp.f32 %v1647_v16 }
 0x6e0   :  { %1752 = vrot.lane.b32.xlu0 %v1721_v20, %s6850_s4  ;;  %6108 = vpow2.f32 %v5558_v22  ;;  %v7822_v20 = vpop.eup %6090 }
 0x6e1   :  { %1736 = vrot.lane.b32.xlu1 %v1714_v7, %s6850_s4  ;;  %v5552_v7 = vmul.f32 -1.442695, %v7701_v51  ;;  %v7827_v53 = vpop.eup %6092 }
 0x6e2   :  { %v7830_v51 = vpop.eup %6094 }
 0x6e3   :  { %6110 = vpow2.f32 %v5552_v7  ;;  %v6097_v19 = vpop.eup %6096 }
 0x6e4   :  { %6112 = vpow2.f32 %v5559_v58  ;;  %v6099_v40 = vpop.eup %6098  ;;  %v1651_v4 = vadd.f32 1.0, %v6097_v19 }
 0x6e5   :  { %6114 = vpow2.f32 %v5553_v61  ;;  %v7838_v0 = vpop.eup %6100  ;;  %v1652_v25 = vadd.f32 1.0, %v6099_v40 }
 0x6e6   :  { %6116 = vpow2.f32 %v5560_v45 }
 0x6e7   :  { %6118 = vpow2.f32 %v5561_v12 }
 0x6e8   :  { %v6103_v43 = vpop.eup %6102  ;;  %6120 = vrcp.f32 %v1651_v4 }
 0x6e9   :  { %v6105_v23 = vpop.eup %6104  ;;  %v1653_v48 = vadd.f32 1.0, %v6103_v43  ;;  %6122 = vrcp.f32 %v1652_v25 }
 0x6ea   :  { %v1650_v38 = vadd.f32 1.0, %v6105_v23 }
 0x6eb   :  { %6124 = vrcp.f32 %v1653_v48 }
 0x6ec   :  { %v7842_v55 = vpop.eup %6106  ;;  %6126 = vrcp.f32 %v1650_v38 }
 0x6ed   :  { %v6109_v41 = vpop.eup %6108 }
 0x6ee   :  { %v1654_v24 = vadd.f32 1.0, %v6109_v41 }
 0x6f0   :  { %v6111_v54 = vpop.eup %6110  ;;  %6128 = vrcp.f32 %v1654_v24 }
 0x6f1   :  { %v6113_v16 = vpop.eup %6112  ;;  %v1648_v22 = vadd.f32 1.0, %v6111_v54 }
 0x6f2   :  { %v6115_v7 = vpop.eup %6114 }
 0x6f3   :  { %6130 = vrcp.f32 %v1648_v22 }
 0x716   :  { %v1805_v59 = vpop.permute.xlu0 %1804 }
 0x717   :  { %v1807_v29 = vpop.permute.xlu1 %1806  ;;  %v1851_v8 = vmul.f32 %v7819_v44, %v1805_v59  ;;  %v1655_v59 = vadd.f32 1.0, %v6113_v16 }
 0x718   :  { %v1852_v1 = vmul.f32 %v7822_v20, %v1807_v29  ;;  %v6117_v29 = vpop.eup %6116 }
 0x719   :  { %1884 = vrot.lane.b32.xlu0 %v1851_v8, %s6850_s4  ;;  %v1649_v8 = vadd.f32 1.0, %v6115_v7  ;;  %v1656_v45 = vadd.f32 1.0, %v6117_v29  ;;  %6132 = vrcp.f32 %v1655_v59 }
 0x71a   :  { %1886 = vrot.lane.b32.xlu1 %v1852_v1, %s6850_s4  ;;  %v1811_v28 = vpop.permute.xlu0 %1810  ;;  %v6119_v1 = vpop.eup %6118 }
 0x71b   :  { %v1803_v47 = vpop.permute.xlu1 %1802  ;;  %v1854_v3 = vmul.f32 %v7830_v51, %v1811_v28  ;;  %v7849_v28 = vpop.eup %6120  ;;  %6134 = vrcp.f32 %v1649_v8  ;;  %v1657_v12 = vadd.f32 1.0, %v6119_v1 }
 0x71c   :  { %v1850_v62 = vmul.f32 %v7827_v53, %v1803_v47  ;;  %v7851_v47 = vpop.eup %6122  ;;  %6136 = vrcp.f32 %v1656_v45 }
 0x71d   :  { %1890 = vrot.lane.b32.xlu0 %v1854_v3, %s6850_s4  ;;  %v7856_v4 = vpop.eup %6124  ;;  %6138 = vrcp.f32 %v1657_v12 }
 0x71e   :  { %1882 = vrot.lane.b32.xlu1 %v1850_v62, %s6850_s4  ;;  %v7847_v58 = vpop.permute.xlu0 %1724  ;;  %v7859_v25 = vpop.eup %6126 }
 0x71f   :  { %v1809_v32 = vpop.permute.xlu1 %1808  ;;  %v7864_v48 = vpop.eup %6128 }
 0x720   :  { %v1853_v14 = vmul.f32 %v7838_v0, %v1809_v32  ;;  %v7867_v38 = vpop.eup %6130 }
 0x722   :  { %1888 = vrot.lane.b32.xlu1 %v1853_v14, %s6850_s4  ;;  %v1821_v19 = vpop.permute.xlu0 %1820 }
 0x723   :  { %v1813_v15 = vpop.permute.xlu1 %1812  ;;  %v1859_v3 = vmul.f32 %v7849_v28, %v1821_v19 }
 0x724   :  { %v1855_v39 = vmul.f32 %v7842_v55, %v1813_v15 }
 0x725   :  { %1900 = vrot.lane.b32.xlu0 %v1859_v3, %s6850_s4 }
 0x726   :  { %1892 = vrot.lane.b32.xlu1 %v1855_v39, %s6850_s4  ;;  %v1825_v43 = vpop.permute.xlu0 %1824  ;;  %v7872_v24 = vpop.eup %6132 }
 0x727   :  { %v1815_v61 = vpop.permute.xlu1 %1814  ;;  %v1861_v32 = vmul.f32 %v7856_v4, %v1825_v43 }
 0x728   :  { %v1856_v54 = vmul.f32 %v7867_v38, %v1815_v61  ;;  %v7875_v22 = vpop.eup %6134 }
 0x729   :  { %1904 = vrot.lane.b32.xlu0 %v1861_v32, %s6850_s4  ;;  %v7880_v29 = vpop.eup %6136 }
 0x72a   :  { %v1827_v41 = vpop.permute.xlu0 %1826  ;;  %v7885_v1 = vpop.eup %6138 }
 0x72b   :  { %v1823_v40 = vpop.permute.xlu1 %1822  ;;  %v1862_v15 = vmul.f32 %v7864_v48, %v1827_v41 }
 0x72c   :  { %v1860_v62 = vmul.f32 %v7851_v47, %v1823_v40 }
 0x72d   :  { %1906 = vrot.lane.b32.xlu0 %v1862_v15, %s6850_s4 }
 0x72e   :  { %1902 = vrot.lane.b32.xlu1 %v1860_v62, %s6850_s4  ;;  %v1829_v16 = vpop.permute.xlu0 %1828 }
 0x72f   :  { %v1819_v23 = vpop.permute.xlu1 %1818  ;;  %v1863_v7 = vmul.f32 %v7872_v24, %v1829_v16 }
 0x730   :  { %v1858_v14 = vmul.f32 %v7859_v25, %v1819_v23 }
 0x731   :  { %1908 = vrot.lane.b32.xlu0 %v1863_v7, %s6850_s4 }
 0x732   :  { %1898 = vrot.lane.b32.xlu1 %v1858_v14, %s6850_s4  ;;  %v1831_v8 = vpop.permute.xlu0 %1830 }
 0x733   :  { %v1817_v39 = vpop.permute.xlu1 %1816  ;;  %v1864_v61 = vmul.f32 %v7880_v29, %v1831_v8  ;;  %v1771_v8 = vmul.f32 %v7819_v44, %v7847_v58 }
 0x734   :  { %v1857_v59 = vmul.f32 %v7875_v22, %v1817_v39 }
 0x735   :  { %1910 = vrot.lane.b32.xlu0 %v1864_v61, %s6850_s4 }
 0x736   :  { %1894 = vrot.lane.b32.xlu1 %v1856_v54, %s6850_s4  ;;  %v1833_v45 = vpop.permute.xlu0 %1832 }
 0x737   :  { %v1865_v19 = vmul.f32 %v7885_v1, %v1833_v45  ;;  %v1723_v3 = vpop.permute.xlu1 %1722 }
 0x738   :  { %v1770_v63 = vmul.f32 %v7827_v53, %v1723_v3 }
 0x739   :  { %1912 = vrot.lane.b32.xlu0 %v1865_v19, %s6850_s4 }
 0x73a   :  { %1896 = vrot.lane.b32.xlu1 %v1857_v59, %s6850_s4  ;;  %v1741_v40 = vpop.permute.xlu0 %1740 }
 0x73b   :  { %v7889_v62 = vpop.permute.xlu1 %1738 }
 0x73e   :  { %v1745_v12 = vpop.permute.xlu0 %1744 }
 0x73f   :  { %v1729_v43 = vpop.permute.xlu1 %1728 }
 0x740   :  { %v1773_v33 = vmul.f32 %v7838_v0, %v1729_v43 }
 0x742   :  { %v1731_v32 = vpop.permute.xlu0 %1730 }
 0x743   :  { %v1727_v23 = vpop.permute.xlu1 %1726  ;;  %v1774_v60 = vmul.f32 %v7830_v51, %v1731_v32 }
 0x744   :  { %v1772_v61 = vmul.f32 %v7822_v20, %v1727_v23 }
 0x746   :  { %v7891_v14 = vpop.permute.xlu0 %1746 }
 0x747   :  { %v1743_v41 = vpop.permute.xlu1 %1742 }
 0x748   :  { %v1780_v43 = vmul.f32 %v7851_v47, %v1743_v41 }
 0x74a   :  { %v7893_v15 = vpop.permute.xlu0 %1748 }
 0x74b   :  { %v1733_v54 = vpop.permute.xlu1 %1732 }
 0x74e   :  { %v7895_v39 = vpop.permute.xlu0 %1750 }
 0x74f   :  { %v7897_v16 = vpop.permute.xlu1 %1734 }
 0x752   :  { %v7899_v7 = vpop.permute.xlu0 %1752 }
 0x753   :  { %v7901_v59 = vpop.permute.xlu1 %1736 }
 0x78b   :  { %v1885_v45 = vpop.permute.xlu0 %1884 }
 0x78c   :  { %v1887_v19 = vpop.permute.xlu1 %1886  ;;  %v1931_v37 = vadd.f32 %v1885_v45, %v1771_v8  ;;  %v1775_v45 = vmul.f32 %v7842_v55, %v1733_v54 }
 0x78d   :  { %v1932_v5 = vadd.f32 %v1887_v19, %v1772_v61 }
 0x78e   :  { %6140 = vtanh.f32 %v1931_v37  ;;  %v2123_v58 = vrot.slane %v1931_v37, 1 }
 0x78f   :  { %6142 = vtanh.f32 %v1932_v5  ;;  %v1891_v50 = vpop.permute.xlu0 %1890 }
 0x790   :  { %v1883_v36 = vpop.permute.xlu1 %1882  ;;  %v1934_v56 = vadd.f32 %v1891_v50, %v1774_v60 }
 0x791   :  { %v1930_v10 = vadd.f32 %v1883_v36, %v1770_v63 }
 0x792   :  { %6144 = vtanh.f32 %v1934_v56  ;;  %v2128_v19 = vrot.slane %v1934_v56, 6 }
 0x793   :  { %6146 = vtanh.f32 %v1930_v10  ;;  %v2122_v23 = vrot.slane %v1930_v10, 2 }
 0x794   :  { %v1889_v18 = vpop.permute.xlu1 %1888 }
 0x795   :  { %v2124_v8 = vsel %vm748_vm2, %v2123_v58, %v2122_v23  ;;  %v1933_v61 = vadd.f32 %v1889_v18, %v1773_v33 }
 0x796   :  { %v2125_v32 = vsel %vm751_vm3, %v1932_v5, %v2124_v8 }
 0x797   :  { %6148 = vtanh.f32 %v1933_v61  ;;  %v2126_v3 = vrot.slane %v1933_v61, 7  ;;  %v1901_v54 = vpop.permute.xlu0 %1900  ;;  %v1781_v61 = vmul.f32 %v7856_v4, %v1745_v12 }
 0x798   :  { %v1893_v11 = vpop.permute.xlu1 %1892 }
 0x799   :  { %v2127_v50 = vsel %vm754_vm4, %v2126_v3, %v2125_v32  ;;  %v1935_v60 = vadd.f32 %v1893_v11, %v1775_v45  ;;  %v1779_v11 = vmul.f32 %v7849_v28, %v1741_v40  ;;  %v1778_v45 = vmul.f32 %v7859_v25, %v7889_v62 }
 0x79a   :  { %v2129_v36 = vsel %vm757_vm5, %v2128_v19, %v2127_v50  ;;  %v1782_v50 = vmul.f32 %v7864_v48, %v7891_v14 }
 0x79b   :  { %v6141_v37 = vpop.eup %6140  ;;  %6150 = vtanh.f32 %v1935_v60  ;;  %v2130_v63 = vrot.slane %v1935_v60, 5  ;;  %v1939_v58 = vadd.f32 %v1901_v54, %v1779_v11  ;;  %v1905_v3 = vpop.permute.xlu0 %1904  ;;  %v1776_v60 = vmul.f32 %v7867_v38, %v7897_v16 }
 0x79c   :  { %v6143_v10 = vpop.eup %6142  ;;  %1980 = vrot.lane.b32.xlu0 %v6141_v37, %s6849_s0  ;;  %v1941_v19 = vadd.f32 %v1905_v3, %v1781_v61  ;;  %v1783_v11 = vmul.f32 %v7872_v24, %v7893_v15  ;;  %v1777_v16 = vmul.f32 %v7875_v22, %v7901_v59  ;;  %v1784_v15 = vmul.f32 %v7880_v29, %v7895_v39 }
 0x79d   :  { %1982 = vrot.lane.b32.xlu1 %v6143_v10, %s6849_s0  ;;  %v2131_v5 = vsel %vm760_vm6, %v2130_v63, %v2129_v36  ;;  %6152 = vtanh.f32 %v1939_v58  ;;  %v2137_v12 = vrot.slane %v1939_v58, 1  ;;  %v1785_v39 = vmul.f32 %v7885_v1, %v7899_v7 }
 0x79e   :  { %v2140_v10 = vrot.slane %v1941_v19, 7 }
 0x79f   :  { %v6145_v18 = vpop.eup %6144  ;;  %v1907_v36 = vpop.permute.xlu0 %1906 }
 0x7a0   :  { %v6147_v33 = vpop.eup %6146  ;;  %1986 = vrot.lane.b32.xlu0 %v6145_v18, %s6849_s0  ;;  %v1903_v23 = vpop.permute.xlu1 %1902  ;;  %v1942_v63 = vadd.f32 %v1907_v36, %v1782_v50 }
 0x7a1   :  { %1978 = vrot.lane.b32.xlu1 %v6147_v33, %s6849_s0  ;;  %v1940_v8 = vadd.f32 %v1903_v23, %v1780_v43 }
 0x7a3   :  { %6154 = vtanh.f32 %v1940_v8  ;;  %v1909_v43 = vpop.permute.xlu0 %1908 }
 0x7a4   :  { %v6149_v56 = vpop.eup %6148  ;;  %v1899_v40 = vpop.permute.xlu1 %1898  ;;  %6156 = vtanh.f32 %v1941_v19  ;;  %v1943_v23 = vadd.f32 %v1909_v43, %v1783_v11 }
 0x7a5   :  { %1984 = vrot.lane.b32.xlu1 %v6149_v56, %s6849_s0  ;;  %v1938_v41 = vadd.f32 %v1899_v40, %v1778_v45  ;;  %v2142_v56 = vrot.slane %v1942_v63, 6 }
 0x7a7   :  { %6158 = vtanh.f32 %v1938_v41  ;;  %v2136_v37 = vrot.slane %v1938_v41, 2  ;;  %v1911_v40 = vpop.permute.xlu0 %1910 }
 0x7a8   :  { %v6151_v32 = vpop.eup %6150  ;;  %v1895_v62 = vpop.permute.xlu1 %1894  ;;  %6160 = vtanh.f32 %v1942_v63  ;;  %v1944_v50 = vadd.f32 %v1911_v40, %v1784_v15 }
 0x7a9   :  { %1988 = vrot.lane.b32.xlu1 %v6151_v32, %s6849_s0  ;;  %v2138_v18 = vsel %vm748_vm2, %v2137_v12, %v2136_v37  ;;  %v1936_v33 = vadd.f32 %v1895_v62, %v1776_v60 }
 0x7aa   :  { %v2139_v14 = vsel %vm751_vm3, %v1940_v8, %v2138_v18  ;;  %v2144_v8 = vrot.slane %v1943_v23, 5  ;;  %v6153_v19 = vpop.eup %6152 }
 0x7ab   :  { %6162 = vtanh.f32 %v1936_v33  ;;  %v2132_v54 = vrot.slane %v1936_v33, 4  ;;  %v2141_v58 = vsel %vm754_vm4, %v2140_v10, %v2139_v14  ;;  %1996 = vrot.lane.b32.xlu0 %v6153_v19, %s6849_s0  ;;  %v1913_v37 = vpop.permute.xlu0 %1912  ;;  %v7960_v14 = vld [vmem:[%s9863_s1] sm:$0xff] }
 0x7ac   :  { %v1897_v61 = vpop.permute.xlu1 %1896  ;;  %v2143_v32 = vsel %vm757_vm5, %v2142_v56, %v2141_v58  ;;  %6164 = vtanh.f32 %v1943_v23  ;;  %v1945_v62 = vadd.f32 %v1913_v37, %v1785_v39  ;;  %vm2042_vm10 = vcmp.gt.s32.totalorder %v7960_v14, 2  ;;  %v7970_v58 = vld [vmem:[%s9863_s1 + $0x8] sm:$0xff] }
 0x7ad   :  { %v1937_v45 = vadd.f32 %v1897_v61, %v1777_v16  ;;  %v2133_v3 = vsel %vm763_vm7, %v2132_v54, %v2131_v5  ;;  %v2145_v60 = vsel %vm760_vm6, %v2144_v8, %v2143_v32  ;;  %v2146_v5 = vrot.slane %v1944_v50, 4 }
 0x7ae   :  { %v2148_v18 = vrot.slane %v1945_v62, 3  ;;  %v2044_v43 = vsel %vm2042_vm10, 1, %v9935_v34  ;;  %vm2043_vm11 = vcmp.gt.s32.totalorder %v7970_v58, 2  ;;  %vm2701_vm14 = vcmp.gt.s32.totalorder %v7960_v14, 3 }
 0x7af   :  { %6166 = vtanh.f32 %v1937_v45  ;;  %v2134_v59 = vrot.slane %v1937_v45, 3  ;;  %v2147_v10 = vsel %vm763_vm7, %v2146_v5, %v2145_v60  ;;  %v2045_v61 = vsel %vm2043_vm11, 1, %v9935_v34 }
 0x7b0   :  { %v6155_v41 = vpop.eup %6154  ;;  %6168 = vtanh.f32 %v1944_v50  ;;  %v7954_v7 = vsel %vm766_vm8, %v2148_v18, %v2147_v10  ;;  %vm2702_vm10 = vcmp.gt.s32.totalorder %v7970_v58, 3 }
 0x7b1   :  { %1998 = vrot.lane.b32.xlu1 %v6155_v41, %s6849_s0  ;;  %v7945_v12 = vsel %vm766_vm8, %v2134_v59, %v2133_v3  ;;  %v6157_v36 = vpop.eup %6156  ;;  %6170 = vtanh.f32 %v1945_v62 }
 0x7b2   :  { %2000 = vrot.lane.b32.xlu0 %v6157_v36, %s6849_s0 }
 0x7b4   :  { %v6159_v63 = vpop.eup %6158 }
 0x7b5   :  { %1994 = vrot.lane.b32.xlu1 %v6159_v63, %s6849_s0  ;;  %v6161_v33 = vpop.eup %6160 }
 0x7b6   :  { %2002 = vrot.lane.b32.xlu0 %v6161_v33, %s6849_s0 }
 0x7b8   :  { %v6163_v11 = vpop.eup %6162 }
 0x7b9   :  { %1990 = vrot.lane.b32.xlu1 %v6163_v11, %s6849_s0  ;;  %v6165_v56 = vpop.eup %6164 }
 0x7ba   :  { %2004 = vrot.lane.b32.xlu0 %v6165_v56, %s6849_s0 }
 0x7bc   :  { %v6167_v16 = vpop.eup %6166 }
 0x7bd   :  { %1992 = vrot.lane.b32.xlu1 %v6167_v16, %s6849_s0  ;;  %v6169_v54 = vpop.eup %6168 }
 0x7be   :  { %2006 = vrot.lane.b32.xlu0 %v6169_v54, %s6849_s0  ;;  %v6171_v23 = vpop.eup %6170 }
 0x7c1   :  { %2047 = vperm.xlu1 %5775, %v2044_v43  }
 0x7c2   :  { %2008 = vrot.lane.b32.xlu0 %v6171_v23, %s6849_s0 }
 0x7c6   :  { %2050 = vperm.xlu0 %5774, %v2045_v61  }
 0x80e   :  { %v1981_v3 = vpop.permute.xlu0 %1980 }
 0x80f   :  { %v1983_v32 = vpop.permute.xlu1 %1982  ;;  %v2027_v41 = vmul.f32 %v7819_v44, %v1981_v3 }
 0x810   :  { %v2028_v44 = vmul.f32 %v7822_v20, %v1983_v32 }
 0x811   :  { %v2071_v37 = vrot.slane %v2027_v41, 1 }
 0x812   :  { %v1987_v8 = vpop.permute.xlu0 %1986 }
 0x813   :  { %v1979_v45 = vpop.permute.xlu1 %1978  ;;  %v2030_v16 = vmul.f32 %v7830_v51, %v1987_v8 }
 0x814   :  { %v2026_v40 = vmul.f32 %v7827_v53, %v1979_v45 }
 0x815   :  { %v2076_v51 = vrot.slane %v2030_v16, 6 }
 0x816   :  { %v2070_v60 = vrot.slane %v2026_v40, 2 }
 0x817   :  { %v1985_v15 = vpop.permute.xlu1 %1984 }
 0x818   :  { %v2029_v39 = vmul.f32 %v7838_v0, %v1985_v15  ;;  %v2072_v10 = vsel %vm748_vm2, %v2071_v37, %v2070_v60 }
 0x819   :  { %v2073_v23 = vsel %vm751_vm3, %v2028_v44, %v2072_v10 }
 0x81a   :  { %v2074_v18 = vrot.slane %v2029_v39, 7 }
 0x81b   :  { %v1989_v19 = vpop.permute.xlu1 %1988 }
 0x81c   :  { %v2031_v33 = vmul.f32 %v7842_v55, %v1989_v19  ;;  %v2075_v55 = vsel %vm754_vm4, %v2074_v18, %v2073_v23 }
 0x81d   :  { %v1997_v59 = vpop.permute.xlu0 %1996  ;;  %v2077_v8 = vsel %vm757_vm5, %v2076_v51, %v2075_v55 }
 0x81e   :  { %v2035_v5 = vmul.f32 %v7849_v28, %v1997_v59  ;;  %v2078_v61 = vrot.slane %v2031_v33, 5 }
 0x820   :  { %v2085_v53 = vrot.slane %v2035_v5, 1  ;;  %v2079_v40 = vsel %vm760_vm6, %v2078_v61, %v2077_v8 }
 0x823   :  { %v1999_v50 = vpop.permute.xlu1 %1998 }
 0x824   :  { %v2001_v36 = vpop.permute.xlu0 %2000  ;;  %v2036_v43 = vmul.f32 %v7851_v47, %v1999_v50 }
 0x825   :  { %v2037_v0 = vmul.f32 %v7856_v4, %v2001_v36 }
 0x827   :  { %v1995_v63 = vpop.permute.xlu1 %1994  ;;  %v2088_v3 = vrot.slane %v2037_v0, 7 }
 0x828   :  { %v2034_v62 = vmul.f32 %v7859_v25, %v1995_v63  ;;  %v2003_v11 = vpop.permute.xlu0 %2002 }
 0x829   :  { %v2038_v45 = vmul.f32 %v7864_v48, %v2003_v11 }
 0x82a   :  { %v2084_v56 = vrot.slane %v2034_v62, 2 }
 0x82b   :  { %v1991_v28 = vpop.permute.xlu1 %1990  ;;  %v2090_v59 = vrot.slane %v2038_v45, 6 }
 0x82c   :  { %v2086_v54 = vsel %vm748_vm2, %v2085_v53, %v2084_v56  ;;  %v2032_v25 = vmul.f32 %v7867_v38, %v1991_v28  ;;  %v2005_v32 = vpop.permute.xlu0 %2004  ;;  %v8039_v56 = vld [vmem:[%s9865_s3 + $0x8] sm:$0xff]  }
 0x82d   :  { %v2087_v20 = vsel %vm751_vm3, %v2036_v43, %v2086_v54  ;;  %v2039_v19 = vmul.f32 %v7872_v24, %v2005_v32 }
 0x82e   :  { %v2080_v4 = vrot.slane %v2032_v25, 4  ;;  %v2089_v38 = vsel %vm754_vm4, %v2088_v3, %v2087_v20 }
 0x82f   :  { %v1993_v15 = vpop.permute.xlu1 %1992  ;;  %v2091_v39 = vsel %vm757_vm5, %v2090_v59, %v2089_v38 }
 0x830   :  { %v2033_v47 = vmul.f32 %v7875_v22, %v1993_v15  ;;  %v2007_v41 = vpop.permute.xlu0 %2006  ;;  %v2081_v60 = vsel %vm763_vm7, %v2080_v4, %v2079_v40  ;;  %v2092_v22 = vrot.slane %v2039_v19, 5 }
 0x831   :  { %v2040_v50 = vmul.f32 %v7880_v29, %v2007_v41 }
 0x832   :  { %v2082_v48 = vrot.slane %v2033_v47, 3  ;;  %v2093_v24 = vsel %vm760_vm6, %v2092_v22, %v2091_v39 }
 0x833   :  { %v2094_v36 = vrot.slane %v2040_v50, 4 }
 0x834   :  { %v2083_v5 = vsel %vm766_vm8, %v2082_v48, %v2081_v60  ;;  %v2009_v37 = vpop.permute.xlu0 %2008 }
 0x835   :  { %2098 = vrot.lane.b32.xlu1 %v2083_v5, %s6850_s4  ;;  %v2041_v63 = vmul.f32 %v7885_v1, %v2009_v37  ;;  %v2095_v29 = vsel %vm763_vm7, %v2094_v36, %v2093_v24 }
 0x837   :  { %v2096_v62 = vrot.slane %v2041_v63, 3 }
 0x839   :  { %2150 = vrot.lane.b32.xlu1 %v7945_v12, %s6851_s26  ;;  %v2097_v10 = vsel %vm766_vm8, %v2096_v62, %v2095_v29 }
 0x83a   :  { %2100 = vrot.lane.b32.xlu0 %v2097_v10, %s6850_s4  ;;  %v9952_v10 = vld [vmem:[#allocation10_spill] sm:$0xff] }
 0x83c   :  { %v8011_v18 = vpop.permute.xlu1 %2047 }
 0x83d   :  { %9948 = vst [vmem:[#allocation20_spill] sm:$0xff] %v8011_v18  ;;  %vm2052_vm12 = vcmp.eq.s32.totalorder %v8011_v18, 1 }
 0x83e   :  { %2152 = vrot.lane.b32.xlu0 %v7954_v7, %s6851_s26 }
 0x841   :  { %v8013_v33 = vpop.permute.xlu0 %2050 }
 0x842   :  { %9949 = vst [vmem:[#allocation21_spill] sm:$0xff] %v8013_v33  ;;  %vm9923_vm13 = vcmp.eq.s32.totalorder %v8013_v33, 1 }
 0x8a7   :  { %v8015_v53 = vpop.permute.xlu1 %2098 }
 0x8a8   :  { %9950 = vst [vmem:[#allocation22_spill] sm:$0xff] %v8015_v53  ;;  %v8025_v12 = vsel %vm2052_vm12, %v8015_v53, %v7658_v9  ;;  %v8048_v9 = vld [vmem:[%s9865_s3] sm:$0xff]  }
 0x8ab   :  { %v2151_v15 = vpop.permute.xlu1 %2150 }
 0x8ac   :  { %v8019_v1 = vpop.permute.xlu0 %2100  ;;  %v8086_v19 = vsel %vm2052_vm12, %v2151_v15, %v7709_v6 }
 0x8ad   :  { %9951 = vst [vmem:[#allocation23_spill] sm:$0xff] %v8019_v1  ;;  %v8031_v7 = vsel %vm9923_vm13, %v8019_v1, %v7664_v27  ;;  %v2368_v41 = vrot.slane %v8086_v19, 6 }
 0x8ae   :  { %v2160_v11 = vpack.c.bf16 %v8031_v7, %v8025_v12 }
 0x8b0   :  { %5730 = vmatmul.mubr.msk.bf16.vlgmr.msra.gmra.mxu1 %vm103_vm1, %v2160_v11 }
 0x8b1   :  { %5742 = vmatpush3.bf16.msra.mxu1 %v8039_v56  ;;  %5745 = vmatprep.mubr.msk.bf16.mxu1 %vm6847_vm0, %v9940_v13 }
 0x8b2   :  { %5743 = vmatprep.subr.bf16.mxu1 %v9940_v13 }
 0x8b5   :  { %5744 = vmatpush3.bf16.msra.mxu1 %v8048_v9 }
 0x8b6   :  { %5757 = vmatprep.subr.bf16.mxu1 %v9940_v13 }
 0x970   :  { %v2198_v27 = vpop.f32.mrf.mxu1 }
 0x971   :  { %v2208_v0 = vrot.slane %v2198_v27, 6  ;;  %v2211_v43 = vrot.slane %v2198_v27, 2  ;;  %v2207_v25 = vrot.slane %v2198_v27, 5  ;;  %v8058_v23 = vadd.f32 %v2198_v27, %v6972_v26 }
 0x972   :  { %v5731_v44 = vpop.f32.mrf.mxu1  ;;  %v2209_v61 = vrot.slane %v2198_v27, 7  ;;  %v2210_v20 = vrot.slane %v2198_v27, 1  ;;  %v2212_v51 = vrot.slane %v2198_v27, 3  ;;  %v2213_v37 = vrot.slane %v2198_v27, 4 }
 0x973   :  { %v8055_v54 = vadd.f32 %v2208_v0, %v6980_v30  ;;  %v8061_v55 = vadd.f32 %v2211_v43, %v7000_v42  ;;  %v8065_v45 = vadd.f32 %v2207_v25, %v6963_v21  ;;  %v9953_v44 = vld [vmem:[#allocation11_spill] sm:$0xff]  ;;  %v9954_v43 = vld [vmem:[#allocation8_spill] sm:$0xff] }
 0x974   :  { %v8052_v16 = vpop.f32.mrf.mxu1  ;;  %v8070_v32 = vadd.f32 %v2209_v61, %v6959_v17  ;;  %v8074_v3 = vadd.f32 %v2210_v20, %v6988_v35  ;;  %v8078_v47 = vadd.f32 %v2212_v51, %v7042_v2  ;;  %v8120_v11 = vadd.f32 %v2213_v37, %v9952_v10  ;;  %v9955_v51 = vld [vmem:[#allocation12_spill] sm:$0xff] }
 0x975   :  { %6172 = vtanh.f32 %v8055_v54  ;;  %v2215_v40 = vrot.slane %v8052_v16, 6  ;;  %v2216_v48 = vrot.slane %v8052_v16, 7  ;;  %v2214_v60 = vrot.slane %v8052_v16, 5 }
 0x976   :  { %v5732_v28 = vpop.f32.mrf.mxu1  ;;  %6174 = vtanh.f32 %v8058_v23  ;;  %v8101_v39 = vadd.f32 %v8052_v16, %v7019_v52  ;;  %v2217_v5 = vrot.slane %v8052_v16, 1  ;;  %v2218_v63 = vrot.slane %v8052_v16, 2 }
 0x977   :  { %6176 = vtanh.f32 %v8061_v55  ;;  %v8095_v50 = vadd.f32 %v2215_v40, %v7030_v57  ;;  %v8106_v22 = vadd.f32 %v2216_v48, %v7008_v46  ;;  %v8110_v24 = vadd.f32 %v2214_v60, %v7015_v49  ;;  %v2153_v40 = vpop.permute.xlu0 %2152  ;;  %v9956_v48 = vld [vmem:[#allocation15_spill] sm:$0xff] }
 0x978   :  { %6178 = vtanh.f32 %v8065_v45  ;;  %v8116_v62 = vadd.f32 %v2217_v5, %v9941_v31  ;;  %v2219_v27 = vrot.slane %v8052_v16, 3  ;;  %v8126_v0 = vadd.f32 %v2218_v63, %v9953_v44 }
 0x979   :  { %6180 = vtanh.f32 %v8070_v32  ;;  %v2220_v28 = vrot.slane %v8052_v16, 4  ;;  %v2369_v37 = vrot.slane %v8086_v19, 7 }
 0x97a   :  { %6182 = vtanh.f32 %v8074_v3  ;;  %v8132_v25 = vadd.f32 %v2219_v27, %v9954_v43 }
 0x97b   :  { %6184 = vtanh.f32 %v8078_v47 }
 0x97c   :  { %6186 = vtanh.f32 %v8095_v50 }
 0x97d   :  { %6188 = vtanh.f32 %v8101_v39 }
 0x97e   :  { %6190 = vtanh.f32 %v8106_v22 }
 0x97f   :  { %6192 = vtanh.f32 %v8110_v24 }
 0x980   :  { %6194 = vtanh.f32 %v8116_v62 }
 0x981   :  { %6196 = vtanh.f32 %v8120_v11 }
 0x982   :  { %v6173_v4 = vpop.eup %6172  ;;  %6198 = vtanh.f32 %v8126_v0 }
 0x983   :  { %2463 = vrot.lane.b32.xlu0 %v6173_v4, %s6849_s0  ;;  %v6175_v8 = vpop.eup %6174  ;;  %v8137_v4 = vadd.f32 %v2220_v28, %v9955_v51  ;;  %6200 = vtanh.f32 %v8132_v25 }
 0x984   :  { %2467 = vrot.lane.b32.xlu1 %v6175_v8, %s6849_s0  ;;  %v6177_v38 = vpop.eup %6176 }
 0x985   :  { %v6179_v59 = vpop.eup %6178  ;;  %6202 = vtanh.f32 %v8137_v4 }
 0x986   :  { %v6181_v6 = vpop.eup %6180 }
 0x987   :  { %2471 = vrot.lane.b32.xlu0 %v6177_v38, %s6849_s0  ;;  %v6183_v36 = vpop.eup %6182 }
 0x988   :  { %2461 = vrot.lane.b32.xlu1 %v6179_v59, %s6849_s0  ;;  %v6185_v29 = vpop.eup %6184 }
 0x989   :  { %v6187_v61 = vpop.eup %6186 }
 0x98a   :  { %v6189_v20 = vpop.eup %6188 }
 0x98b   :  { %2383 = vrot.lane.b32.xlu0 %v2368_v41, %s6850_s4  ;;  %v6191_v15 = vpop.eup %6190  ;;  %v2367_v41 = vrot.slane %v8086_v19, 5 }
 0x98c   :  { %2465 = vrot.lane.b32.xlu1 %v6181_v6, %s6849_s0  ;;  %v6193_v16 = vpop.eup %6192  ;;  %v8151_v6 = vsel %vm9923_vm13, %v2153_v40, %v9956_v48  ;;  %v5564_v40 = vmul.f32 -1.442695, %v8055_v54  ;;  %v5563_v48 = vmul.f32 -1.442695, %v8065_v45 }
 0x98d   :  { %v6195_v8 = vpop.eup %6194  ;;  %9957 = vst [vmem:[#allocation15_spill] sm:$0xff] %v8151_v6  ;;  %v2374_v5 = vrot.slane %v8151_v6, 5  ;;  %v2375_v63 = vrot.slane %v8151_v6, 6  ;;  %v2376_v27 = vrot.slane %v8151_v6, 7  ;;  %v2377_v28 = vrot.slane %v8151_v6, 1 }
 0x98e   :  { %v6197_v38 = vpop.eup %6196  ;;  %6204 = vpow2.f32 %v5564_v40 }
 0x98f   :  { %2479 = vrot.lane.b32.xlu0 %v6187_v61, %s6849_s0  ;;  %v6199_v59 = vpop.eup %6198  ;;  %v2371_v61 = vrot.slane %v8086_v19, 2 }
 0x990   :  { %2469 = vrot.lane.b32.xlu1 %v6183_v36, %s6849_s0  ;;  %v6201_v60 = vpop.eup %6200 }
 0x992   :  { %v6203_v36 = vpop.eup %6202 }
 0x993   :  { %2481 = vrot.lane.b32.xlu0 %v6191_v15, %s6849_s0  ;;  %v2378_v15 = vrot.slane %v8151_v6, 2 }
 0x994   :  { %2473 = vrot.lane.b32.xlu1 %v6185_v29, %s6849_s0  ;;  %v2370_v29 = vrot.slane %v8086_v19, 1 }
 0x997   :  { %2485 = vrot.lane.b32.xlu0 %v6195_v8, %s6849_s0  ;;  %v2379_v8 = vrot.slane %v8151_v6, 3 }
 0x998   :  { %2483 = vrot.lane.b32.xlu1 %v6189_v20, %s6849_s0  ;;  %v2372_v20 = vrot.slane %v8086_v19, 3 }
 0x99b   :  { %2487 = vrot.lane.b32.xlu0 %v6199_v59, %s6849_s0  ;;  %v5566_v59 = vmul.f32 -1.442695, %v8058_v23 }
 0x99c   :  { %2477 = vrot.lane.b32.xlu1 %v6193_v16, %s6849_s0  ;;  %v2373_v16 = vrot.slane %v8086_v19, 4 }
 0x99d   :  { %6206 = vpow2.f32 %v5566_v59 }
 0x99f   :  { %2489 = vrot.lane.b32.xlu0 %v6201_v60, %s6849_s0  ;;  %v5565_v60 = vmul.f32 -1.442695, %v8070_v32  ;;  %v5573_v32 = vmul.f32 -1.442695, %v8106_v22 }
 0x9a0   :  { %2475 = vrot.lane.b32.xlu1 %v6197_v38, %s6849_s0  ;;  %v2380_v38 = vrot.slane %v8151_v6, 4 }
 0x9a3   :  { %2491 = vrot.lane.b32.xlu0 %v6203_v36, %s6849_s0  ;;  %v6205_v36 = vpop.eup %6204 }
 0x9a4   :  { %2381 = vrot.lane.b32.xlu1 %v2367_v41, %s6850_s4  ;;  %v5568_v41 = vmul.f32 -1.442695, %v8061_v55  ;;  %v5572_v55 = vmul.f32 -1.442695, %v8095_v50  ;;  %v5569_v50 = vmul.f32 -1.442695, %v8078_v47 }
 0x9a6   :  { %6208 = vpow2.f32 %v5568_v41 }
 0x9a7   :  { %2399 = vrot.lane.b32.xlu0 %v2375_v63, %s6850_s4  ;;  %6210 = vpow2.f32 %v5563_v48  ;;  %v2302_v63 = vadd.f32 1.0, %v6205_v36  ;;  %v5577_v48 = vmul.f32 -1.442695, %v8132_v25 }
 0x9a8   :  { %2397 = vrot.lane.b32.xlu1 %v2374_v5, %s6850_s4  ;;  %6212 = vpow2.f32 %v5565_v60  ;;  %v5567_v5 = vmul.f32 -1.442695, %v8074_v3 }
 0x9aa   :  { %6214 = vpow2.f32 %v5567_v5 }
 0x9ab   :  { %2401 = vrot.lane.b32.xlu0 %v2376_v27, %s6850_s4  ;;  %6216 = vrcp.f32 %v2302_v63  ;;  %v5578_v63 = vmul.f32 -1.442695, %v8137_v4 }
 0x9ac   :  { %2385 = vrot.lane.b32.xlu1 %v2369_v37, %s6850_s4  ;;  %v6207_v37 = vpop.eup %6206 }
 0x9af   :  { %2405 = vrot.lane.b32.xlu0 %v2377_v28, %s6850_s4 }
 0x9b0   :  { %2389 = vrot.lane.b32.xlu1 %v2370_v29, %s6850_s4  ;;  %v2304_v29 = vadd.f32 1.0, %v6207_v37 }
 0x9b2   :  { %6218 = vrcp.f32 %v2304_v29 }
 0x9b3   :  { %2391 = vrot.lane.b32.xlu0 %v2371_v61, %s6850_s4  ;;  %v6209_v54 = vpop.eup %6208  ;;  %v5574_v61 = vmul.f32 -1.442695, %v8101_v39  ;;  %v5576_v39 = vmul.f32 -1.442695, %v8126_v0 }
 0x9b4   :  { %2387 = vrot.lane.b32.xlu1 %v8086_v19, %s6850_s4  ;;  %v6211_v23 = vpop.eup %6210  ;;  %v2306_v27 = vadd.f32 1.0, %v6209_v54 }
 0x9b5   :  { %v2301_v45 = vadd.f32 1.0, %v6211_v23  ;;  %v6213_v28 = vpop.eup %6212 }
 0x9b6   :  { %6220 = vrcp.f32 %v2306_v27  ;;  %v2303_v3 = vadd.f32 1.0, %v6213_v28 }
 0x9b7   :  { %2407 = vrot.lane.b32.xlu0 %v2378_v15, %s6850_s4  ;;  %6222 = vpow2.f32 %v5572_v55  ;;  %v5571_v15 = vmul.f32 -1.442695, %v8110_v24  ;;  %v5570_v24 = vmul.f32 -1.442695, %v8120_v11 }
 0x9b8   :  { %2403 = vrot.lane.b32.xlu1 %v8151_v6, %s6850_s4  ;;  %6224 = vrcp.f32 %v2301_v45 }
 0x9b9   :  { %6226 = vpow2.f32 %v5574_v61 }
 0x9ba   :  { %6228 = vpow2.f32 %v5573_v32 }
 0x9bb   :  { %2409 = vrot.lane.b32.xlu0 %v2379_v8, %s6850_s4  ;;  %6230 = vrcp.f32 %v2303_v3 }
 0x9bc   :  { %2393 = vrot.lane.b32.xlu1 %v2372_v20, %s6850_s4  ;;  %v6215_v20 = vpop.eup %6214  ;;  %6232 = vpow2.f32 %v5571_v15 }
 0x9bd   :  { %v2305_v8 = vadd.f32 1.0, %v6215_v20 }
 0x9bf   :  { %2411 = vrot.lane.b32.xlu0 %v2380_v38, %s6850_s4  ;;  %v8196_v38 = vpop.eup %6216 }
 0x9c0   :  { %2395 = vrot.lane.b32.xlu1 %v2373_v16, %s6850_s4  ;;  %v5575_v16 = vmul.f32 -1.442695, %v8116_v62  ;;  %v8200_v59 = vpop.eup %6218 }
 0x9c2   :  { %6234 = vpow2.f32 %v5575_v16 }
 0x9c3   :  { %6236 = vrcp.f32 %v2305_v8  ;;  %v8205_v47 = vpop.eup %6220 }
 0x9c4   :  { %6238 = vpow2.f32 %v5569_v50  ;;  %v6223_v60 = vpop.eup %6222 }
 0x9c5   :  { %6240 = vpow2.f32 %v5576_v39  ;;  %v8210_v36 = vpop.eup %6224  ;;  %v2310_v29 = vadd.f32 1.0, %v6223_v60 }
 0x9c6   :  { %6242 = vpow2.f32 %v5570_v24  ;;  %v6227_v37 = vpop.eup %6226 }
 0x9c7   :  { %6244 = vpow2.f32 %v5577_v48  ;;  %v6229_v25 = vpop.eup %6228  ;;  %v2312_v27 = vadd.f32 1.0, %v6227_v37 }
 0x9c8   :  { %v8216_v23 = vpop.eup %6230  ;;  %6246 = vpow2.f32 %v5578_v63  ;;  %v2311_v61 = vadd.f32 1.0, %v6229_v25 }
 0x9c9   :  { %v6233_v45 = vpop.eup %6232  ;;  %6248 = vrcp.f32 %v2310_v29 }
 0x9ca   :  { %v2309_v3 = vadd.f32 1.0, %v6233_v45  ;;  %6250 = vrcp.f32 %v2312_v27 }
 0x9cb   :  { %6252 = vrcp.f32 %v2311_v61 }
 0x9cc   :  { %6254 = vrcp.f32 %v2309_v3 }
 0x9cf   :  { %v6235_v4 = vpop.eup %6234 }
 0x9d0   :  { %v8220_v32 = vpop.eup %6236  ;;  %v2313_v8 = vadd.f32 1.0, %v6235_v4 }
 0x9d1   :  { %v6239_v15 = vpop.eup %6238 }
 0x9d2   :  { %v6241_v50 = vpop.eup %6240  ;;  %v2307_v39 = vadd.f32 1.0, %v6239_v15  ;;  %6256 = vrcp.f32 %v2313_v8 }
 0x9d3   :  { %v2314_v24 = vadd.f32 1.0, %v6241_v50 }
 0x9d4   :  { %6258 = vrcp.f32 %v2307_v39 }
 0x9d5   :  { %6260 = vrcp.f32 %v2314_v24 }
 0x9f5   :  { %v2464_v22 = vpop.permute.xlu0 %2463 }
 0x9f6   :  { %v2510_v40 = vmul.f32 %v8196_v38, %v2464_v22  ;;  %v2468_v62 = vpop.permute.xlu1 %2467  ;;  %v6243_v22 = vpop.eup %6242 }
 0x9f7   :  { %v2512_v41 = vmul.f32 %v8200_v59, %v2468_v62  ;;  %v6245_v62 = vpop.eup %6244  ;;  %v2308_v48 = vadd.f32 1.0, %v6243_v22 }
 0x9f8   :  { %2543 = vrot.lane.b32.xlu0 %v2510_v40, %s6850_s4  ;;  %v2315_v60 = vadd.f32 1.0, %v6245_v62 }
 0x9f9   :  { %v2472_v0 = vpop.permute.xlu0 %2471  ;;  %2547 = vrot.lane.b32.xlu1 %v2512_v41, %s6850_s4  ;;  %6262 = vrcp.f32 %v2308_v48 }
 0x9fa   :  { %v2514_v5 = vmul.f32 %v8205_v47, %v2472_v0  ;;  %v2462_v11 = vpop.permute.xlu1 %2461  ;;  %v6247_v0 = vpop.eup %6246  ;;  %6264 = vrcp.f32 %v2315_v60 }
 0x9fb   :  { %v2509_v54 = vmul.f32 %v8210_v36, %v2462_v11  ;;  %v2316_v29 = vadd.f32 1.0, %v6247_v0 }
 0x9fc   :  { %2551 = vrot.lane.b32.xlu0 %v2514_v5, %s6850_s4  ;;  %v8226_v5 = vpop.eup %6248 }
 0x9fd   :  { %2541 = vrot.lane.b32.xlu1 %v2509_v54, %s6850_s4  ;;  %v8224_v40 = vpop.permute.xlu0 %2383  ;;  %v8229_v63 = vpop.eup %6250  ;;  %6266 = vrcp.f32 %v2316_v29 }
 0x9fe   :  { %v2466_v55 = vpop.permute.xlu1 %2465  ;;  %v8233_v27 = vpop.eup %6252 }
 0x9ff   :  { %v2511_v28 = vmul.f32 %v8216_v23, %v2466_v55 }
 0xa01   :  { %2545 = vrot.lane.b32.xlu1 %v2511_v28, %s6850_s4  ;;  %v2480_v11 = vpop.permute.xlu0 %2479  ;;  %v8237_v28 = vpop.eup %6254 }
 0xa02   :  { %v2470_v20 = vpop.permute.xlu1 %2469  ;;  %v2518_v37 = vmul.f32 %v8226_v5, %v2480_v11  ;;  %v8241_v3 = vpop.eup %6256 }
 0xa03   :  { %v2513_v16 = vmul.f32 %v8220_v32, %v2470_v20 }
 0xa04   :  { %2559 = vrot.lane.b32.xlu0 %v2518_v37, %s6850_s4 }
 0xa05   :  { %2549 = vrot.lane.b32.xlu1 %v2513_v16, %s6850_s4  ;;  %v2482_v55 = vpop.permute.xlu0 %2481  ;;  %v8245_v16 = vpop.eup %6258 }
 0xa06   :  { %v2474_v41 = vpop.permute.xlu1 %2473  ;;  %v2519_v45 = vmul.f32 %v8233_v27, %v2482_v55  ;;  %v8249_v50 = vpop.eup %6260 }
 0xa07   :  { %v2515_v8 = vmul.f32 %v8245_v16, %v2474_v41  ;;  %v8253_v62 = vpop.eup %6262 }
 0xa08   :  { %2561 = vrot.lane.b32.xlu0 %v2519_v45, %s6850_s4  ;;  %v8257_v0 = vpop.eup %6264 }
 0xa09   :  { %v2486_v20 = vpop.permute.xlu0 %2485 }
 0xa0a   :  { %v2484_v54 = vpop.permute.xlu1 %2483  ;;  %v2521_v15 = vmul.f32 %v8241_v3, %v2486_v20  ;;  %v8262_v11 = vpop.eup %6266 }
 0xa0b   :  { %v2520_v25 = vmul.f32 %v8229_v63, %v2484_v54 }
 0xa0c   :  { %2565 = vrot.lane.b32.xlu0 %v2521_v15, %s6850_s4 }
 0xa0d   :  { %2563 = vrot.lane.b32.xlu1 %v2520_v25, %s6850_s4  ;;  %v2488_v39 = vpop.permute.xlu0 %2487 }
 0xa0e   :  { %v2478_v61 = vpop.permute.xlu1 %2477  ;;  %v2522_v24 = vmul.f32 %v8249_v50, %v2488_v39 }
 0xa0f   :  { %v2517_v4 = vmul.f32 %v8237_v28, %v2478_v61 }
 0xa10   :  { %2567 = vrot.lane.b32.xlu0 %v2522_v24, %s6850_s4 }
 0xa11   :  { %2557 = vrot.lane.b32.xlu1 %v2517_v4, %s6850_s4  ;;  %v2490_v60 = vpop.permute.xlu0 %2489 }
 0xa12   :  { %v2476_v22 = vpop.permute.xlu1 %2475  ;;  %v2523_v41 = vmul.f32 %v8257_v0, %v2490_v60 }
 0xa13   :  { %v2516_v48 = vmul.f32 %v8253_v62, %v2476_v22 }
 0xa14   :  { %2569 = vrot.lane.b32.xlu0 %v2523_v41, %s6850_s4 }
 0xa15   :  { %2553 = vrot.lane.b32.xlu1 %v2515_v8, %s6850_s4  ;;  %v2492_v37 = vpop.permute.xlu0 %2491 }
 0xa16   :  { %v2524_v54 = vmul.f32 %v8262_v11, %v2492_v37  ;;  %v2382_v29 = vpop.permute.xlu1 %2381  ;;  %v2430_v37 = vmul.f32 %v8196_v38, %v8224_v40 }
 0xa17   :  { %v2429_v43 = vmul.f32 %v8210_v36, %v2382_v29 }
 0xa18   :  { %2571 = vrot.lane.b32.xlu0 %v2524_v54, %s6850_s4 }
 0xa19   :  { %2555 = vrot.lane.b32.xlu1 %v2516_v48, %s6850_s4  ;;  %v2400_v25 = vpop.permute.xlu0 %2399 }
 0xa1a   :  { %v8266_v55 = vpop.permute.xlu1 %2397 }
 0xa1d   :  { %v2402_v45 = vpop.permute.xlu0 %2401 }
 0xa1e   :  { %v2386_v61 = vpop.permute.xlu1 %2385 }
 0xa1f   :  { %v2431_v49 = vmul.f32 %v8216_v23, %v2386_v61 }
 0xa21   :  { %v8268_v4 = vpop.permute.xlu0 %2405 }
 0xa22   :  { %v2390_v20 = vpop.permute.xlu1 %2389 }
 0xa25   :  { %v2392_v15 = vpop.permute.xlu0 %2391 }
 0xa26   :  { %v2388_v8 = vpop.permute.xlu1 %2387  ;;  %v2434_v53 = vmul.f32 %v8205_v47, %v2392_v15 }
 0xa27   :  { %v2432_v33 = vmul.f32 %v8200_v59, %v2388_v8 }
 0xa29   :  { %v8270_v39 = vpop.permute.xlu0 %2407 }
 0xa2a   :  { %v2404_v22 = vpop.permute.xlu1 %2403 }
 0xa2d   :  { %v8272_v24 = vpop.permute.xlu0 %2409 }
 0xa2e   :  { %v8274_v48 = vpop.permute.xlu1 %2393 }
 0xa31   :  { %v8276_v60 = vpop.permute.xlu0 %2411 }
 0xa32   :  { %v8278_v41 = vpop.permute.xlu1 %2395 }
 0xa6a   :  { %v2544_v54 = vpop.permute.xlu0 %2543 }
 0xa6b   :  { %v2590_v1 = vadd.f32 %v2544_v54, %v2430_v37  ;;  %v2548_v18 = vpop.permute.xlu1 %2547 }
 0xa6c   :  { %v2592_v6 = vadd.f32 %v2548_v18, %v2432_v33  ;;  %v2433_v18 = vmul.f32 %v8220_v32, %v2390_v20 }
 0xa6d   :  { %6268 = vtanh.f32 %v2590_v1  ;;  %v2782_v40 = vrot.slane %v2590_v1, 2 }
 0xa6e   :  { %v2552_v51 = vpop.permute.xlu0 %2551  ;;  %6270 = vtanh.f32 %v2592_v6 }
 0xa6f   :  { %v2594_v44 = vadd.f32 %v2552_v51, %v2434_v53  ;;  %v2542_v10 = vpop.permute.xlu1 %2541 }
 0xa70   :  { %v2589_v52 = vadd.f32 %v2542_v10, %v2429_v43 }
 0xa71   :  { %6272 = vtanh.f32 %v2594_v44  ;;  %v2789_v1 = vrot.slane %v2594_v44, 6 }
 0xa72   :  { %6274 = vtanh.f32 %v2589_v52  ;;  %v2781_v46 = vrot.slane %v2589_v52, 3 }
 0xa73   :  { %v2546_v8 = vpop.permute.xlu1 %2545 }
 0xa74   :  { %v2783_v37 = vsel %vm748_vm2, %v2782_v40, %v2781_v46  ;;  %v2591_v54 = vadd.f32 %v2546_v8, %v2431_v49 }
 0xa76   :  { %6276 = vtanh.f32 %v2591_v54  ;;  %v2784_v33 = vrot.slane %v2591_v54, 1  ;;  %v2560_v40 = vpop.permute.xlu0 %2559 }
 0xa77   :  { %v2550_v15 = vpop.permute.xlu1 %2549 }
 0xa78   :  { %v2785_v29 = vsel %vm751_vm3, %v2784_v33, %v2783_v37  ;;  %v2593_v53 = vadd.f32 %v2550_v15, %v2433_v18  ;;  %v2440_v37 = vmul.f32 %v8229_v63, %v2404_v22  ;;  %v2439_v18 = vmul.f32 %v8233_v27, %v2402_v45 }
 0xa79   :  { %v2786_v10 = vsel %vm754_vm4, %v2592_v6, %v2785_v29  ;;  %v2438_v6 = vmul.f32 %v8226_v5, %v2400_v25  ;;  %v2441_v22 = vmul.f32 %v8241_v3, %v8268_v4  ;;  %v2435_v45 = vmul.f32 %v8245_v16, %v8274_v48 }
 0xa7a   :  { %v6269_v51 = vpop.eup %6268  ;;  %6278 = vtanh.f32 %v2593_v53  ;;  %v2787_v43 = vrot.slane %v2593_v53, 7  ;;  %v2562_v15 = vpop.permute.xlu0 %2561  ;;  %v2437_v53 = vmul.f32 %v8237_v28, %v8266_v55  ;;  %v2436_v4 = vmul.f32 %v8253_v62, %v8278_v41 }
 0xa7b   :  { %2639 = vrot.lane.b32.xlu0 %v6269_v51, %s6849_s0  ;;  %v6271_v52 = vpop.eup %6270  ;;  %v2598_v54 = vadd.f32 %v2560_v40, %v2438_v6  ;;  %v2599_v51 = vadd.f32 %v2562_v15, %v2439_v18  ;;  %v2443_v15 = vmul.f32 %v8257_v0, %v8272_v24  ;;  %v2444_v24 = vmul.f32 %v8262_v11, %v8276_v60 }
 0xa7c   :  { %v2788_v46 = vsel %vm757_vm5, %v2787_v43, %v2786_v10  ;;  %2643 = vrot.lane.b32.xlu1 %v6271_v52, %s6849_s0 }
 0xa7d   :  { %v2790_v61 = vsel %vm760_vm6, %v2789_v1, %v2788_v46  ;;  %6280 = vtanh.f32 %v2598_v54  ;;  %v2796_v52 = vrot.slane %v2598_v54, 2 }
 0xa7e   :  { %v6273_v49 = vpop.eup %6272  ;;  %v2566_v43 = vpop.permute.xlu0 %2565 }
 0xa7f   :  { %2647 = vrot.lane.b32.xlu0 %v6273_v49, %s6849_s0  ;;  %v6275_v20 = vpop.eup %6274  ;;  %v2564_v44 = vpop.permute.xlu1 %2563  ;;  %v2601_v1 = vadd.f32 %v2566_v43, %v2441_v22  ;;  %v2798_v49 = vrot.slane %v2599_v51, 1 }
 0xa80   :  { %2637 = vrot.lane.b32.xlu1 %v6275_v20, %s6849_s0  ;;  %v2600_v33 = vadd.f32 %v2564_v44, %v2440_v37  ;;  %v2442_v20 = vmul.f32 %v8249_v50, %v8270_v39 }
 0xa82   :  { %6282 = vtanh.f32 %v2600_v33  ;;  %v2568_v37 = vpop.permute.xlu0 %2567 }
 0xa83   :  { %v6277_v8 = vpop.eup %6276  ;;  %v2558_v25 = vpop.permute.xlu1 %2557  ;;  %6284 = vtanh.f32 %v2599_v51  ;;  %v2602_v54 = vadd.f32 %v2568_v37, %v2442_v20 }
 0xa84   :  { %2641 = vrot.lane.b32.xlu1 %v6277_v8, %s6849_s0  ;;  %v2597_v10 = vadd.f32 %v2558_v25, %v2437_v53  ;;  %v2801_v8 = vrot.slane %v2601_v1, 7 }
 0xa85   :  { %v2803_v53 = vrot.slane %v2602_v54, 6 }
 0xa86   :  { %6286 = vtanh.f32 %v2597_v10  ;;  %v2795_v46 = vrot.slane %v2597_v10, 3  ;;  %v2570_v22 = vpop.permute.xlu0 %2569 }
 0xa87   :  { %v6279_v29 = vpop.eup %6278  ;;  %v2554_v55 = vpop.permute.xlu1 %2553  ;;  %6288 = vtanh.f32 %v2601_v1  ;;  %v2603_v10 = vadd.f32 %v2570_v22, %v2443_v15 }
 0xa88   :  { %2645 = vrot.lane.b32.xlu1 %v6279_v29, %s6849_s0  ;;  %v2797_v6 = vsel %vm748_vm2, %v2796_v52, %v2795_v46  ;;  %v2595_v40 = vadd.f32 %v2554_v55, %v2435_v45 }
 0xa89   :  { %v2799_v48 = vsel %vm751_vm3, %v2798_v49, %v2797_v6  ;;  %v2805_v52 = vrot.slane %v2603_v10, 5 }
 0xa8a   :  { %6290 = vtanh.f32 %v2595_v40  ;;  %v2791_v44 = vrot.slane %v2595_v40, 5  ;;  %v2800_v18 = vsel %vm754_vm4, %v2600_v33, %v2799_v48  ;;  %v6281_v25 = vpop.eup %6280  ;;  %v2572_v46 = vpop.permute.xlu0 %2571 }
 0xa8b   :  { %v2556_v39 = vpop.permute.xlu1 %2555  ;;  %v2802_v29 = vsel %vm757_vm5, %v2801_v8, %v2800_v18  ;;  %6292 = vtanh.f32 %v2602_v54  ;;  %2655 = vrot.lane.b32.xlu0 %v6281_v25, %s6849_s0  ;;  %v2604_v49 = vadd.f32 %v2572_v46, %v2444_v24  ;;  %v2703_v54 = vsel %vm2701_vm14, 1, %v9935_v34 }
 0xa8c   :  { %v2596_v51 = vadd.f32 %v2556_v39, %v2436_v4  ;;  %v2792_v41 = vsel %vm763_vm7, %v2791_v44, %v2790_v61  ;;  %v2804_v33 = vsel %vm760_vm6, %v2803_v53, %v2802_v29  ;;  %v2704_v18 = vsel %vm2702_vm10, 1, %v9935_v34 }
 0xa8d   :  { %v2806_v55 = vsel %vm763_vm7, %v2805_v52, %v2804_v33  ;;  %v2807_v6 = vrot.slane %v2604_v49, 4 }
 0xa8e   :  { %6294 = vtanh.f32 %v2596_v51  ;;  %v2793_v45 = vrot.slane %v2596_v51, 4 }
 0xa8f   :  { %v6283_v43 = vpop.eup %6282  ;;  %6296 = vtanh.f32 %v2603_v10  ;;  %v8331_v40 = vsel %vm766_vm8, %v2807_v6, %v2806_v55 }
 0xa90   :  { %2659 = vrot.lane.b32.xlu1 %v6283_v43, %s6849_s0  ;;  %v8324_v1 = vsel %vm766_vm8, %v2793_v45, %v2792_v41  ;;  %v6285_v61 = vpop.eup %6284  ;;  %6298 = vtanh.f32 %v2604_v49 }
 0xa91   :  { %2657 = vrot.lane.b32.xlu0 %v6285_v61, %s6849_s0 }
 0xa93   :  { %v6287_v20 = vpop.eup %6286 }
 0xa94   :  { %2653 = vrot.lane.b32.xlu1 %v6287_v20, %s6849_s0  ;;  %v6289_v60 = vpop.eup %6288 }
 0xa95   :  { %2661 = vrot.lane.b32.xlu0 %v6289_v60, %s6849_s0 }
 0xa97   :  { %v6291_v4 = vpop.eup %6290 }
 0xa98   :  { %2649 = vrot.lane.b32.xlu1 %v6291_v4, %s6849_s0  ;;  %v6293_v8 = vpop.eup %6292 }
 0xa99   :  { %2663 = vrot.lane.b32.xlu0 %v6293_v8, %s6849_s0 }
 0xa9b   :  { %v6295_v48 = vpop.eup %6294 }
 0xa9c   :  { %2651 = vrot.lane.b32.xlu1 %v6295_v48, %s6849_s0  ;;  %v6297_v37 = vpop.eup %6296 }
 0xa9d   :  { %2665 = vrot.lane.b32.xlu0 %v6297_v37, %s6849_s0  ;;  %v6299_v44 = vpop.eup %6298 }
 0xaa0   :  { %2706 = vperm.xlu1 %5775, %v2703_v54  }
 0xaa1   :  { %2667 = vrot.lane.b32.xlu0 %v6299_v44, %s6849_s0 }
 0xaa5   :  { %2709 = vperm.xlu0 %5774, %v2704_v18  }
 0xaed   :  { %v2640_v14 = vpop.permute.xlu0 %2639 }
 0xaee   :  { %v2644_v15 = vpop.permute.xlu1 %2643  ;;  %v2686_v58 = vmul.f32 %v8196_v38, %v2640_v14 }
 0xaf0   :  { %v2730_v49 = vrot.slane %v2686_v58, 2 }
 0xaf1   :  { %v2648_v53 = vpop.permute.xlu0 %2647 }
 0xaf2   :  { %v2638_v39 = vpop.permute.xlu1 %2637 }
 0xaf3   :  { %v2685_v25 = vmul.f32 %v8210_v36, %v2638_v39 }
 0xaf5   :  { %v2729_v33 = vrot.slane %v2685_v25, 3 }
 0xaf6   :  { %v2642_v29 = vpop.permute.xlu1 %2641 }
 0xaf7   :  { %v2687_v22 = vmul.f32 %v8216_v23, %v2642_v29  ;;  %v2731_v36 = vsel %vm748_vm2, %v2730_v49, %v2729_v33 }
 0xaf9   :  { %v2732_v24 = vrot.slane %v2687_v22, 1 }
 0xafa   :  { %v2646_v51 = vpop.permute.xlu1 %2645 }
 0xafb   :  { %v2689_v52 = vmul.f32 %v8220_v32, %v2646_v51  ;;  %v2733_v38 = vsel %vm751_vm3, %v2732_v24, %v2731_v36  ;;  %v2690_v32 = vmul.f32 %v8205_v47, %v2648_v53 }
 0xafd   :  { %v2656_v41 = vpop.permute.xlu0 %2655  ;;  %v2735_v60 = vrot.slane %v2689_v52, 7 }
 0xafe   :  { %v2694_v43 = vmul.f32 %v8226_v5, %v2656_v41  ;;  %v2688_v5 = vmul.f32 %v8200_v59, %v2644_v15  ;;  %v2737_v59 = vrot.slane %v2690_v32, 6 }
 0xb00   :  { %v2744_v23 = vrot.slane %v2694_v43, 2  ;;  %v2734_v44 = vsel %vm754_vm4, %v2688_v5, %v2733_v38 }
 0xb01   :  { %v2736_v39 = vsel %vm757_vm5, %v2735_v60, %v2734_v44 }
 0xb02   :  { %v2660_v10 = vpop.permute.xlu1 %2659  ;;  %v2738_v25 = vsel %vm760_vm6, %v2737_v59, %v2736_v39 }
 0xb03   :  { %v2658_v45 = vpop.permute.xlu0 %2657  ;;  %v2696_v18 = vmul.f32 %v8229_v63, %v2660_v10 }
 0xb04   :  { %v2695_v61 = vmul.f32 %v8233_v27, %v2658_v45 }
 0xb06   :  { %v2654_v46 = vpop.permute.xlu1 %2653  ;;  %v2746_v4 = vrot.slane %v2695_v61, 1 }
 0xb07   :  { %v2693_v55 = vmul.f32 %v8237_v28, %v2654_v46  ;;  %v2662_v20 = vpop.permute.xlu0 %2661 }
 0xb08   :  { %v2697_v28 = vmul.f32 %v8241_v3, %v2662_v20 }
 0xb09   :  { %v2743_v6 = vrot.slane %v2693_v55, 3 }
 0xb0a   :  { %v2650_v8 = vpop.permute.xlu1 %2649  ;;  %v2749_v53 = vrot.slane %v2697_v28, 7 }
 0xb0b   :  { %v2745_v27 = vsel %vm748_vm2, %v2744_v23, %v2743_v6  ;;  %v2691_v48 = vmul.f32 %v8245_v16, %v2650_v8  ;;  %v2664_v54 = vpop.permute.xlu0 %2663 }
 0xb0c   :  { %v2747_v37 = vsel %vm751_vm3, %v2746_v4, %v2745_v27  ;;  %v2698_v15 = vmul.f32 %v8249_v50, %v2664_v54 }
 0xb0d   :  { %v2739_v14 = vrot.slane %v2691_v48, 5  ;;  %v2748_v47 = vsel %vm754_vm4, %v2696_v18, %v2747_v37 }
 0xb0e   :  { %v2652_v29 = vpop.permute.xlu1 %2651  ;;  %v2750_v63 = vsel %vm757_vm5, %v2749_v53, %v2748_v47  ;;  %v2751_v10 = vrot.slane %v2698_v15, 6 }
 0xb0f   :  { %v2692_v16 = vmul.f32 %v8253_v62, %v2652_v29  ;;  %v2666_v3 = vpop.permute.xlu0 %2665  ;;  %v2740_v22 = vsel %vm763_vm7, %v2739_v14, %v2738_v25 }
 0xb10   :  { %v2699_v51 = vmul.f32 %v8257_v0, %v2666_v3  ;;  %v2752_v50 = vsel %vm760_vm6, %v2751_v10, %v2750_v63  ;;  %v9962_v3 = vld [vmem:[#allocation5_spill] sm:$0xff]  ;;  %v9963_v63 = vld [vmem:[#allocation6_spill] sm:$0xff] }
 0xb11   :  { %v2741_v41 = vrot.slane %v2692_v16, 4 }
 0xb12   :  { %v2753_v45 = vrot.slane %v2699_v51, 5 }
 0xb13   :  { %v2742_v58 = vsel %vm766_vm8, %v2741_v41, %v2740_v22  ;;  %v2668_v33 = vpop.permute.xlu0 %2667 }
 0xb14   :  { %2757 = vrot.lane.b32.xlu1 %v2742_v58, %s6850_s4  ;;  %v2700_v62 = vmul.f32 %v8262_v11, %v2668_v33  ;;  %v2754_v0 = vsel %vm763_vm7, %v2753_v45, %v2752_v50  ;;  %v9964_v58 = vld [vmem:[#allocation7_spill] sm:$0xff]  ;;  %v9965_v50 = vld [vmem:[#allocation10_spill] sm:$0xff] }
 0xb16   :  { %v2755_v43 = vrot.slane %v2700_v62, 4 }
 0xb18   :  { %2809 = vrot.lane.b32.xlu1 %v8324_v1, %s6851_s26  ;;  %v2756_v24 = vsel %vm766_vm8, %v2755_v43, %v2754_v0  ;;  %v9966_v0 = vld [vmem:[#allocation11_spill] sm:$0xff] }
 0xb19   :  { %2759 = vrot.lane.b32.xlu0 %v2756_v24, %s6850_s4 }
 0xb1b   :  { %v8378_v52 = vpop.permute.xlu1 %2706 }
 0xb1c   :  { %9958 = vst [vmem:[#allocation24_spill] sm:$0xff] %v8378_v52  ;;  %vm2711_vm11 = vcmp.eq.s32.totalorder %v8378_v52, 1 }
 0xb1d   :  { %2811 = vrot.lane.b32.xlu0 %v8331_v40, %s6851_s26 }
 0xb20   :  { %v8380_v61 = vpop.permute.xlu0 %2709 }
 0xb21   :  { %9959 = vst [vmem:[#allocation25_spill] sm:$0xff] %v8380_v61  ;;  %vm9908_vm14 = vcmp.eq.s32.totalorder %v8380_v61, 1 }
 0xb86   :  { %v8382_v46 = vpop.permute.xlu1 %2757 }
 0xb87   :  { %9960 = vst [vmem:[#allocation26_spill] sm:$0xff] %v8382_v46  ;;  %v8392_v1 = vsel %vm2711_vm11, %v8382_v46, %v8025_v12 }
 0xb8a   :  { %v2810_v28 = vpop.permute.xlu1 %2809 }
 0xb8b   :  { %v8386_v11 = vpop.permute.xlu0 %2759  ;;  %v8443_v39 = vsel %vm2711_vm11, %v2810_v28, %v8086_v19 }
 0xb8c   :  { %9961 = vst [vmem:[#allocation27_spill] sm:$0xff] %v8386_v11  ;;  %v8398_v40 = vsel %vm9908_vm14, %v8386_v11, %v8031_v7  ;;  %v3027_v47 = vrot.slane %v8443_v39, 5 }
 0xb8d   :  { %v2819_v49 = vpack.c.bf16 %v8398_v40, %v8392_v1 }
 0xb8f   :  { %5738 = vmatmul.mubr.msk.bf16.vlgmr.msra.gmra.mxu0 %vm103_vm1, %v2819_v49  ;;  %v2812_v28 = vpop.permute.xlu0 %2811 }
 0xb90   :  { %5750 = vmatpush3.bf16.msra.mxu0 %v8039_v56  ;;  %5753 = vmatprep.mubr.msk.bf16.mxu0 %vm6847_vm0, %v9940_v13 }
 0xb91   :  { %5751 = vmatprep.subr.bf16.mxu0 %v9940_v13 }
 0xb94   :  { %5752 = vmatpush3.bf16.msra.mxu0 %v8048_v9 }
 0xc4f   :  { %v2857_v12 = vpop.f32.mrf.mxu0 }
 0xc50   :  { %v2867_v7 = vrot.slane %v2857_v12, 5  ;;  %v2871_v6 = vrot.slane %v2857_v12, 2  ;;  %v2866_v38 = vrot.slane %v2857_v12, 4  ;;  %v8414_v56 = vadd.f32 %v2857_v12, %v6988_v35 }
 0xc51   :  { %v5739_v55 = vpop.f32.mrf.mxu0  ;;  %v2868_v9 = vrot.slane %v2857_v12, 6  ;;  %v2869_v8 = vrot.slane %v2857_v12, 7  ;;  %v2870_v32 = vrot.slane %v2857_v12, 1  ;;  %v2872_v25 = vrot.slane %v2857_v12, 3  ;;  %v9967_v12 = vld [vmem:[#allocation8_spill] sm:$0xff] }
 0xc52   :  { %v8411_v23 = vadd.f32 %v2867_v7, %v6980_v30  ;;  %v8418_v60 = vadd.f32 %v2871_v6, %v7042_v2  ;;  %v8421_v4 = vadd.f32 %v2866_v38, %v6963_v21  ;;  %v9968_v6 = vld [vmem:[#allocation12_spill] sm:$0xff] }
 0xc53   :  { %v8408_v20 = vpop.f32.mrf.mxu0  ;;  %v8426_v5 = vadd.f32 %v2868_v9, %v6959_v17  ;;  %v8430_v27 = vadd.f32 %v2869_v8, %v6972_v26  ;;  %v8435_v37 = vadd.f32 %v2870_v32, %v7000_v42  ;;  %v8476_v62 = vadd.f32 %v2872_v25, %v9965_v50 }
 0xc54   :  { %6300 = vtanh.f32 %v8411_v23  ;;  %v2874_v44 = vrot.slane %v8408_v20, 5  ;;  %v2875_v29 = vrot.slane %v8408_v20, 6  ;;  %v2873_v19 = vrot.slane %v8408_v20, 4 }
 0xc55   :  { %v5740_v36 = vpop.f32.mrf.mxu0  ;;  %6302 = vtanh.f32 %v8414_v56  ;;  %v8457_v16 = vadd.f32 %v8408_v20, %v9941_v31  ;;  %v2876_v53 = vrot.slane %v8408_v20, 7  ;;  %v2877_v10 = vrot.slane %v8408_v20, 1 }
 0xc56   :  { %6304 = vtanh.f32 %v8418_v60  ;;  %v8449_v59 = vadd.f32 %v2874_v44, %v7030_v57  ;;  %v8461_v51 = vadd.f32 %v2875_v29, %v9962_v3  ;;  %v8466_v22 = vadd.f32 %v2873_v19, %v9963_v63  ;;  %v9969_v44 = vld [vmem:[#allocation15_spill] sm:$0xff] }
 0xc57   :  { %6306 = vtanh.f32 %v8421_v4  ;;  %v8471_v45 = vadd.f32 %v2876_v53, %v9964_v58  ;;  %v2878_v43 = vrot.slane %v8408_v20, 2  ;;  %v8481_v24 = vadd.f32 %v2877_v10, %v9966_v0 }
 0xc58   :  { %6308 = vtanh.f32 %v8426_v5  ;;  %v2879_v49 = vrot.slane %v8408_v20, 3  ;;  %v3029_v53 = vrot.slane %v8443_v39, 7  ;;  %v3030_v25 = vrot.slane %v8443_v39, 1 }
 0xc59   :  { %6310 = vtanh.f32 %v8430_v27  ;;  %v8488_v55 = vadd.f32 %v2878_v43, %v9967_v12  ;;  %v3031_v43 = vrot.slane %v8443_v39, 2 }
 0xc5a   :  { %6312 = vtanh.f32 %v8435_v37  ;;  %v8493_v38 = vadd.f32 %v2879_v49, %v9968_v6  ;;  %v3032_v49 = vrot.slane %v8443_v39, 3 }
 0xc5b   :  { %6314 = vtanh.f32 %v8449_v59 }
 0xc5c   :  { %6316 = vtanh.f32 %v8457_v16 }
 0xc5d   :  { %6318 = vtanh.f32 %v8461_v51 }
 0xc5e   :  { %6320 = vtanh.f32 %v8466_v22 }
 0xc5f   :  { %6322 = vtanh.f32 %v8471_v45 }
 0xc60   :  { %6324 = vtanh.f32 %v8476_v62 }
 0xc61   :  { %v6301_v48 = vpop.eup %6300  ;;  %6326 = vtanh.f32 %v8481_v24 }
 0xc62   :  { %3122 = vrot.lane.b32.xlu0 %v6301_v48, %s6849_s0  ;;  %v6303_v54 = vpop.eup %6302  ;;  %6328 = vtanh.f32 %v8488_v55 }
 0xc63   :  { %3128 = vrot.lane.b32.xlu1 %v6303_v54, %s6849_s0  ;;  %v6305_v18 = vpop.eup %6304  ;;  %6330 = vtanh.f32 %v8493_v38  ;;  %v3026_v54 = vrot.slane %v8443_v39, 4 }
 0xc64   :  { %v6307_v14 = vpop.eup %6306 }
 0xc65   :  { %v6309_v15 = vpop.eup %6308 }
 0xc66   :  { %3132 = vrot.lane.b32.xlu0 %v6305_v18, %s6849_s0  ;;  %v6311_v41 = vpop.eup %6310  ;;  %v8507_v18 = vsel %vm9908_vm14, %v2812_v28, %v9969_v44  ;;  %v5583_v28 = vmul.f32 -1.442695, %v8430_v27  ;;  %v5585_v44 = vmul.f32 -1.442695, %v8435_v37  ;;  %v5590_v27 = vmul.f32 -1.442695, %v8461_v51 }
 0xc67   :  { %3120 = vrot.lane.b32.xlu1 %v6307_v14, %s6849_s0  ;;  %v6313_v33 = vpop.eup %6312  ;;  %9970 = vst [vmem:[#allocation5_spill] sm:$0xff] %v8507_v18  ;;  %v3033_v29 = vrot.slane %v8507_v18, 4  ;;  %v3034_v19 = vrot.slane %v8507_v18, 5  ;;  %v3036_v10 = vrot.slane %v8507_v18, 7 }
 0xc68   :  { %v6315_v7 = vpop.eup %6314 }
 0xc69   :  { %v6317_v36 = vpop.eup %6316 }
 0xc6a   :  { %3042 = vrot.lane.b32.xlu0 %v3027_v47, %s6850_s4  ;;  %v6319_v9 = vpop.eup %6318 }
 0xc6b   :  { %3124 = vrot.lane.b32.xlu1 %v6309_v15, %s6849_s0  ;;  %v6321_v20 = vpop.eup %6320  ;;  %v3028_v15 = vrot.slane %v8443_v39, 6 }
 0xc6c   :  { %v6323_v8 = vpop.eup %6322 }
 0xc6d   :  { %v6325_v32 = vpop.eup %6324 }
 0xc6e   :  { %3138 = vrot.lane.b32.xlu0 %v6315_v7, %s6849_s0  ;;  %v6327_v48 = vpop.eup %6326  ;;  %v3038_v7 = vrot.slane %v8507_v18, 2 }
 0xc6f   :  { %3126 = vrot.lane.b32.xlu1 %v6311_v41, %s6849_s0  ;;  %v6329_v14 = vpop.eup %6328  ;;  %v3035_v41 = vrot.slane %v8507_v18, 6 }
 0xc70   :  { %v6331_v47 = vpop.eup %6330 }
 0xc72   :  { %3140 = vrot.lane.b32.xlu0 %v6319_v9, %s6849_s0  ;;  %v5581_v9 = vmul.f32 -1.442695, %v8411_v23 }
 0xc73   :  { %3130 = vrot.lane.b32.xlu1 %v6313_v33, %s6849_s0  ;;  %v3037_v33 = vrot.slane %v8507_v18, 1 }
 0xc74   :  { %6332 = vpow2.f32 %v5581_v9 }
 0xc76   :  { %3142 = vrot.lane.b32.xlu0 %v6323_v8, %s6849_s0  ;;  %v5586_v8 = vmul.f32 -1.442695, %v8418_v60 }
 0xc77   :  { %3144 = vrot.lane.b32.xlu1 %v6317_v36, %s6849_s0  ;;  %v3039_v36 = vrot.slane %v8507_v18, 3 }
 0xc7a   :  { %3146 = vrot.lane.b32.xlu0 %v6327_v48, %s6849_s0  ;;  %v5582_v48 = vmul.f32 -1.442695, %v8426_v5 }
 0xc7b   :  { %3136 = vrot.lane.b32.xlu1 %v6321_v20, %s6849_s0  ;;  %v5584_v20 = vmul.f32 -1.442695, %v8414_v56 }
 0xc7d   :  { %6334 = vpow2.f32 %v5584_v20 }
 0xc7e   :  { %3148 = vrot.lane.b32.xlu0 %v6329_v14, %s6849_s0  ;;  %6336 = vpow2.f32 %v5586_v8 }
 0xc7f   :  { %3134 = vrot.lane.b32.xlu1 %v6325_v32, %s6849_s0  ;;  %v5580_v32 = vmul.f32 -1.442695, %v8421_v4  ;;  %v5589_v4 = vmul.f32 -1.442695, %v8449_v59  ;;  %v5592_v59 = vmul.f32 -1.442695, %v8457_v16 }
 0xc80   :  { %v5594_v16 = vmul.f32 -1.442695, %v8488_v55 }
 0xc81   :  { %6338 = vpow2.f32 %v5580_v32 }
 0xc82   :  { %3150 = vrot.lane.b32.xlu0 %v6331_v47, %s6849_s0  ;;  %6340 = vpow2.f32 %v5582_v48 }
 0xc83   :  { %3040 = vrot.lane.b32.xlu1 %v3026_v54, %s6850_s4  ;;  %v6333_v54 = vpop.eup %6332  ;;  %6342 = vpow2.f32 %v5583_v28 }
 0xc84   :  { %v2961_v14 = vadd.f32 1.0, %v6333_v54  ;;  %6344 = vpow2.f32 %v5585_v44 }
 0xc86   :  { %3058 = vrot.lane.b32.xlu0 %v3034_v19, %s6850_s4  ;;  %6346 = vrcp.f32 %v2961_v14 }
 0xc87   :  { %3056 = vrot.lane.b32.xlu1 %v3033_v29, %s6850_s4 }
 0xc8a   :  { %3060 = vrot.lane.b32.xlu0 %v3035_v41, %s6850_s4  ;;  %v6335_v23 = vpop.eup %6334  ;;  %v5591_v41 = vmul.f32 -1.442695, %v8471_v45  ;;  %v5587_v45 = vmul.f32 -1.442695, %v8476_v62  ;;  %v5595_v62 = vmul.f32 -1.442695, %v8493_v38 }
 0xc8b   :  { %3044 = vrot.lane.b32.xlu1 %v3028_v15, %s6850_s4  ;;  %v6337_v56 = vpop.eup %6336  ;;  %v2964_v29 = vadd.f32 1.0, %v6335_v23 }
 0xc8c   :  { %v2966_v47 = vadd.f32 1.0, %v6337_v56 }
 0xc8d   :  { %6348 = vrcp.f32 %v2964_v29 }
 0xc8e   :  { %3062 = vrot.lane.b32.xlu0 %v3036_v10, %s6850_s4  ;;  %v6339_v60 = vpop.eup %6338  ;;  %6350 = vrcp.f32 %v2966_v47 }
 0xc8f   :  { %3046 = vrot.lane.b32.xlu1 %v3029_v53, %s6850_s4  ;;  %v2960_v15 = vadd.f32 1.0, %v6339_v60  ;;  %v6341_v5 = vpop.eup %6340  ;;  %6352 = vpow2.f32 %v5589_v4  ;;  %v5588_v53 = vmul.f32 -1.442695, %v8466_v22 }
 0xc90   :  { %v2962_v19 = vadd.f32 1.0, %v6341_v5  ;;  %v6343_v37 = vpop.eup %6342 }
 0xc91   :  { %6354 = vrcp.f32 %v2960_v15  ;;  %v6345_v10 = vpop.eup %6344 }
 0xc92   :  { %3066 = vrot.lane.b32.xlu0 %v3037_v33, %s6850_s4  ;;  %6356 = vpow2.f32 %v5590_v27 }
 0xc93   :  { %3050 = vrot.lane.b32.xlu1 %v3030_v25, %s6850_s4  ;;  %v2963_v25 = vadd.f32 1.0, %v6343_v37  ;;  %6358 = vrcp.f32 %v2962_v19  ;;  %v8552_v33 = vpop.eup %6346 }
 0xc94   :  { %6360 = vpow2.f32 %v5588_v53 }
 0xc95   :  { %6362 = vpow2.f32 %v5591_v41 }
 0xc96   :  { %3052 = vrot.lane.b32.xlu0 %v3031_v43, %s6850_s4  ;;  %v5593_v43 = vmul.f32 -1.442695, %v8481_v24  ;;  %6364 = vrcp.f32 %v2963_v25 }
 0xc97   :  { %3048 = vrot.lane.b32.xlu1 %v8443_v39, %s6850_s4  ;;  %6366 = vpow2.f32 %v5592_v59 }
 0xc98   :  { %6368 = vpow2.f32 %v5593_v43 }
 0xc9a   :  { %3068 = vrot.lane.b32.xlu0 %v3038_v7, %s6850_s4  ;;  %v2965_v7 = vadd.f32 1.0, %v6345_v10  ;;  %v8556_v22 = vpop.eup %6348 }
 0xc9b   :  { %3064 = vrot.lane.b32.xlu1 %v8507_v18, %s6850_s4  ;;  %v8560_v9 = vpop.eup %6350 }
 0xc9c   :  { %v6353_v20 = vpop.eup %6352  ;;  %6370 = vrcp.f32 %v2965_v7 }
 0xc9d   :  { %6372 = vpow2.f32 %v5587_v45  ;;  %v2969_v54 = vadd.f32 1.0, %v6353_v20 }
 0xc9e   :  { %3070 = vrot.lane.b32.xlu0 %v3039_v36, %s6850_s4  ;;  %v8566_v48 = vpop.eup %6354  ;;  %6374 = vpow2.f32 %v5594_v16 }
 0xc9f   :  { %3054 = vrot.lane.b32.xlu1 %v3032_v49, %s6850_s4  ;;  %v6357_v55 = vpop.eup %6356  ;;  %6376 = vpow2.f32 %v5595_v62 }
 0xca0   :  { %v8572_v23 = vpop.eup %6358  ;;  %v2970_v29 = vadd.f32 1.0, %v6357_v55  ;;  %6378 = vrcp.f32 %v2969_v54 }
 0xca1   :  { %v6361_v56 = vpop.eup %6360 }
 0xca2   :  { %v6363_v38 = vpop.eup %6362  ;;  %v2968_v4 = vadd.f32 1.0, %v6361_v56  ;;  %6380 = vrcp.f32 %v2970_v29 }
 0xca3   :  { %v8576_v47 = vpop.eup %6364  ;;  %v2971_v27 = vadd.f32 1.0, %v6363_v38 }
 0xca4   :  { %v6367_v5 = vpop.eup %6366  ;;  %6382 = vrcp.f32 %v2968_v4 }
 0xca5   :  { %v6369_v37 = vpop.eup %6368  ;;  %v2972_v41 = vadd.f32 1.0, %v6367_v5  ;;  %6384 = vrcp.f32 %v2971_v27 }
 0xca6   :  { %v2973_v43 = vadd.f32 1.0, %v6369_v37 }
 0xca7   :  { %6386 = vrcp.f32 %v2972_v41 }
 0xca8   :  { %6388 = vrcp.f32 %v2973_v43 }
 0xca9   :  { %v8580_v53 = vpop.eup %6370 }
 0xcaa   :  { %v6373_v59 = vpop.eup %6372 }
 0xcab   :  { %v2967_v7 = vadd.f32 1.0, %v6373_v59 }
 0xcad   :  { %6390 = vrcp.f32 %v2967_v7 }
 0xcd4   :  { %v3123_v51 = vpop.permute.xlu0 %3122 }
 0xcd5   :  { %v3169_v49 = vmul.f32 %v8552_v33, %v3123_v51  ;;  %v3129_v36 = vpop.permute.xlu1 %3128 }
 0xcd6   :  { %v3172_v24 = vmul.f32 %v8556_v22, %v3129_v36 }
 0xcd7   :  { %3202 = vrot.lane.b32.xlu0 %v3169_v49, %s6850_s4  ;;  %v6375_v49 = vpop.eup %6374 }
 0xcd8   :  { %v3133_v8 = vpop.permute.xlu0 %3132  ;;  %3208 = vrot.lane.b32.xlu1 %v3172_v24, %s6850_s4  ;;  %v6377_v45 = vpop.eup %6376  ;;  %v2974_v36 = vadd.f32 1.0, %v6375_v49 }
 0xcd9   :  { %v3174_v32 = vmul.f32 %v8560_v9, %v3133_v8  ;;  %v3121_v28 = vpop.permute.xlu1 %3120  ;;  %v8586_v16 = vpop.eup %6378  ;;  %v2975_v8 = vadd.f32 1.0, %v6377_v45 }
 0xcda   :  { %v3168_v44 = vmul.f32 %v8566_v48, %v3121_v28  ;;  %6392 = vrcp.f32 %v2974_v36  ;;  %v8590_v62 = vpop.eup %6380 }
 0xcdb   :  { %3212 = vrot.lane.b32.xlu0 %v3174_v32, %s6850_s4  ;;  %6394 = vrcp.f32 %v2975_v8 }
 0xcdc   :  { %3200 = vrot.lane.b32.xlu1 %v3168_v44, %s6850_s4  ;;  %v8582_v25 = vpop.permute.xlu0 %3042  ;;  %v8593_v44 = vpop.eup %6382 }
 0xcdd   :  { %v3125_v14 = vpop.permute.xlu1 %3124 }
 0xcde   :  { %v3170_v60 = vmul.f32 %v8572_v23, %v3125_v14  ;;  %v8596_v14 = vpop.eup %6384 }
 0xcdf   :  { %v8601_v38 = vpop.eup %6386 }
 0xce0   :  { %3204 = vrot.lane.b32.xlu1 %v3170_v60, %s6850_s4  ;;  %v3139_v24 = vpop.permute.xlu0 %3138  ;;  %v8604_v4 = vpop.eup %6388 }
 0xce1   :  { %v3127_v15 = vpop.permute.xlu1 %3126  ;;  %v3177_v20 = vmul.f32 %v8586_v16, %v3139_v24  ;;  %v8609_v37 = vpop.eup %6390 }
 0xce2   :  { %v3171_v19 = vmul.f32 %v8576_v47, %v3127_v15 }
 0xce3   :  { %3218 = vrot.lane.b32.xlu0 %v3177_v20, %s6850_s4 }
 0xce4   :  { %3206 = vrot.lane.b32.xlu1 %v3171_v19, %s6850_s4  ;;  %v3141_v28 = vpop.permute.xlu0 %3140 }
 0xce5   :  { %v3131_v10 = vpop.permute.xlu1 %3130  ;;  %v3178_v54 = vmul.f32 %v8590_v62, %v3141_v28 }
 0xce6   :  { %v3173_v51 = vmul.f32 %v8580_v53, %v3131_v10 }
 0xce7   :  { %3220 = vrot.lane.b32.xlu0 %v3178_v54, %s6850_s4  ;;  %v8612_v41 = vpop.eup %6392 }
 0xce8   :  { %3210 = vrot.lane.b32.xlu1 %v3173_v51, %s6850_s4  ;;  %v3143_v56 = vpop.permute.xlu0 %3142  ;;  %v8618_v51 = vpop.eup %6394 }
 0xce9   :  { %v3145_v32 = vpop.permute.xlu1 %3144  ;;  %v3179_v60 = vmul.f32 %v8596_v14, %v3143_v56 }
 0xcea   :  { %v3180_v15 = vmul.f32 %v8601_v38, %v3145_v32 }
 0xceb   :  { %3222 = vrot.lane.b32.xlu0 %v3179_v60, %s6850_s4 }
 0xcec   :  { %v3147_v5 = vpop.permute.xlu0 %3146 }
 0xced   :  { %v3137_v55 = vpop.permute.xlu1 %3136  ;;  %v3181_v27 = vmul.f32 %v8604_v4, %v3147_v5 }
 0xcee   :  { %v3176_v29 = vmul.f32 %v8593_v44, %v3137_v55 }
 0xcef   :  { %3226 = vrot.lane.b32.xlu0 %v3181_v27, %s6850_s4  ;;  %v3089_v27 = vmul.f32 %v8552_v33, %v8582_v25 }
 0xcf0   :  { %3216 = vrot.lane.b32.xlu1 %v3176_v29, %s6850_s4  ;;  %v3149_v59 = vpop.permute.xlu0 %3148 }
 0xcf1   :  { %v3135_v19 = vpop.permute.xlu1 %3134  ;;  %v3182_v43 = vmul.f32 %v8612_v41, %v3149_v59 }
 0xcf2   :  { %v3175_v10 = vmul.f32 %v8609_v37, %v3135_v19 }
 0xcf3   :  { %3228 = vrot.lane.b32.xlu0 %v3182_v43, %s6850_s4 }
 0xcf4   :  { %3224 = vrot.lane.b32.xlu1 %v3180_v15, %s6850_s4  ;;  %v3151_v49 = vpop.permute.xlu0 %3150 }
 0xcf5   :  { %v3183_v7 = vmul.f32 %v8618_v51, %v3151_v49  ;;  %v3041_v45 = vpop.permute.xlu1 %3040 }
 0xcf6   :  { %v3088_v52 = vmul.f32 %v8566_v48, %v3041_v45 }
 0xcf7   :  { %3230 = vrot.lane.b32.xlu0 %v3183_v7, %s6850_s4 }
 0xcf8   :  { %3214 = vrot.lane.b32.xlu1 %v3175_v10, %s6850_s4  ;;  %v3059_v36 = vpop.permute.xlu0 %3058 }
 0xcf9   :  { %v8622_v24 = vpop.permute.xlu1 %3056 }
 0xcfc   :  { %v8624_v20 = vpop.permute.xlu0 %3060 }
 0xcfd   :  { %v3045_v8 = vpop.permute.xlu1 %3044 }
 0xcfe   :  { %v3090_v25 = vmul.f32 %v8572_v23, %v3045_v8 }
 0xd00   :  { %v8626_v32 = vpop.permute.xlu0 %3062 }
 0xd01   :  { %v3047_v28 = vpop.permute.xlu1 %3046 }
 0xd04   :  { %v8628_v54 = vpop.permute.xlu0 %3066 }
 0xd05   :  { %v3051_v55 = vpop.permute.xlu1 %3050 }
 0xd08   :  { %v3053_v56 = vpop.permute.xlu0 %3052 }
 0xd09   :  { %v3049_v29 = vpop.permute.xlu1 %3048  ;;  %v3094_v7 = vmul.f32 %v8560_v9, %v3053_v56  ;;  %v3091_v56 = vmul.f32 %v8576_v47, %v3047_v28 }
 0xd0a   :  { %v3092_v43 = vmul.f32 %v8556_v22, %v3049_v29 }
 0xd0c   :  { %v8630_v60 = vpop.permute.xlu0 %3068 }
 0xd0d   :  { %v8632_v15 = vpop.permute.xlu1 %3064 }
 0xd10   :  { %v8634_v5 = vpop.permute.xlu0 %3070 }
 0xd11   :  { %v8638_v19 = vpop.permute.xlu1 %3054 }
 0xd49   :  { %v3203_v10 = vpop.permute.xlu0 %3202 }
 0xd4a   :  { %v3249_v59 = vadd.f32 %v3203_v10, %v3089_v27  ;;  %v3209_v49 = vpop.permute.xlu1 %3208 }
 0xd4b   :  { %v3252_v61 = vadd.f32 %v3209_v49, %v3092_v43 }
 0xd4c   :  { %6396 = vtanh.f32 %v3249_v59  ;;  %v3441_v12 = vrot.slane %v3249_v59, 3 }
 0xd4d   :  { %v3213_v11 = vpop.permute.xlu0 %3212  ;;  %6398 = vtanh.f32 %v3252_v61 }
 0xd4e   :  { %v3254_v46 = vadd.f32 %v3213_v11, %v3094_v7  ;;  %v3201_v18 = vpop.permute.xlu1 %3200 }
 0xd4f   :  { %v3248_v6 = vadd.f32 %v3201_v18, %v3088_v52  ;;  %v3093_v52 = vmul.f32 %v8580_v53, %v3051_v55  ;;  %v3097_v55 = vmul.f32 %v8586_v16, %v3059_v36  ;;  %v3096_v36 = vmul.f32 %v8593_v44, %v8622_v24 }
 0xd50   :  { %6400 = vtanh.f32 %v3254_v46  ;;  %v3101_v24 = vmul.f32 %v8604_v4, %v8628_v54  ;;  %v3102_v54 = vmul.f32 %v8612_v41, %v8630_v60 }
 0xd51   :  { %6402 = vtanh.f32 %v3248_v6  ;;  %v3440_v27 = vrot.slane %v3248_v6, 4 }
 0xd52   :  { %v3205_v10 = vpop.permute.xlu1 %3204 }
 0xd53   :  { %v3442_v29 = vsel %vm748_vm2, %v3441_v12, %v3440_v27  ;;  %v3250_v31 = vadd.f32 %v3205_v10, %v3090_v25  ;;  %v3450_v10 = vrot.slane %v3254_v46, 6 }
 0xd55   :  { %6404 = vtanh.f32 %v3250_v31  ;;  %v3443_v43 = vrot.slane %v3250_v31, 2 }
 0xd56   :  { %v3207_v49 = vpop.permute.xlu1 %3206 }
 0xd57   :  { %v3444_v11 = vsel %vm751_vm3, %v3443_v43, %v3442_v29  ;;  %v3251_v7 = vadd.f32 %v3207_v49, %v3091_v56  ;;  %v3219_v56 = vpop.permute.xlu0 %3218 }
 0xd58   :  { %v3257_v49 = vadd.f32 %v3219_v56, %v3097_v55 }
 0xd59   :  { %v6397_v45 = vpop.eup %6396  ;;  %6406 = vtanh.f32 %v3251_v7  ;;  %v3445_v18 = vrot.slane %v3251_v7, 1 }
 0xd5a   :  { %3298 = vrot.lane.b32.xlu0 %v6397_v45, %s6849_s0  ;;  %v6399_v6 = vpop.eup %6398  ;;  %v3211_v8 = vpop.permute.xlu1 %3210 }
 0xd5b   :  { %v3446_v12 = vsel %vm754_vm4, %v3445_v18, %v3444_v11  ;;  %v3253_v59 = vadd.f32 %v3211_v8, %v3093_v52  ;;  %3304 = vrot.lane.b32.xlu1 %v6399_v6, %s6849_s0  ;;  %v3221_v11 = vpop.permute.xlu0 %3220  ;;  %v3099_v52 = vmul.f32 %v8596_v14, %v8626_v32 }
 0xd5c   :  { %v3447_v31 = vsel %vm757_vm5, %v3252_v61, %v3446_v12  ;;  %v3098_v61 = vmul.f32 %v8590_v62, %v8624_v20 }
 0xd5d   :  { %v6401_v28 = vpop.eup %6400  ;;  %6408 = vtanh.f32 %v3253_v59  ;;  %v3448_v25 = vrot.slane %v3253_v59, 7  ;;  %v3100_v59 = vmul.f32 %v8601_v38, %v8632_v15  ;;  %v3095_v15 = vmul.f32 %v8609_v37, %v8638_v19 }
 0xd5e   :  { %3308 = vrot.lane.b32.xlu0 %v6401_v28, %s6849_s0  ;;  %v6403_v27 = vpop.eup %6402  ;;  %6410 = vtanh.f32 %v3257_v49  ;;  %v3258_v7 = vadd.f32 %v3221_v11, %v3098_v61  ;;  %v3455_v28 = vrot.slane %v3257_v49, 3 }
 0xd5f   :  { %3296 = vrot.lane.b32.xlu1 %v6403_v27, %s6849_s0  ;;  %v3449_v29 = vsel %vm760_vm6, %v3448_v25, %v3447_v31  ;;  %v3223_v6 = vpop.permute.xlu0 %3222 }
 0xd60   :  { %v3451_v43 = vsel %vm763_vm7, %v3450_v10, %v3449_v29  ;;  %6412 = vtanh.f32 %v3258_v7  ;;  %v3259_v12 = vadd.f32 %v3223_v6, %v3099_v52  ;;  %v3457_v25 = vrot.slane %v3258_v7, 2 }
 0xd62   :  { %v6405_v45 = vpop.eup %6404  ;;  %v3217_v18 = vpop.permute.xlu1 %3216  ;;  %v3459_v27 = vrot.slane %v3259_v12, 1 }
 0xd63   :  { %3300 = vrot.lane.b32.xlu1 %v6405_v45, %s6849_s0  ;;  %v3256_v8 = vadd.f32 %v3217_v18, %v3096_v36  ;;  %v3227_v55 = vpop.permute.xlu0 %3226 }
 0xd64   :  { %v3261_v45 = vadd.f32 %v3227_v55, %v3101_v24 }
 0xd65   :  { %6414 = vtanh.f32 %v3256_v8  ;;  %v3454_v31 = vrot.slane %v3256_v8, 4  ;;  %v3103_v8 = vmul.f32 %v8618_v51, %v8634_v5 }
 0xd66   :  { %v6407_v46 = vpop.eup %6406  ;;  %6416 = vtanh.f32 %v3259_v12  ;;  %v3225_v32 = vpop.permute.xlu1 %3224  ;;  %v3462_v61 = vrot.slane %v3261_v45, 7 }
 0xd67   :  { %3302 = vrot.lane.b32.xlu1 %v6407_v46, %s6849_s0  ;;  %v3456_v10 = vsel %vm748_vm2, %v3455_v28, %v3454_v31  ;;  %v3260_v29 = vadd.f32 %v3225_v32, %v3100_v59  ;;  %v3229_v36 = vpop.permute.xlu0 %3228 }
 0xd68   :  { %v3458_v56 = vsel %vm751_vm3, %v3457_v25, %v3456_v10  ;;  %v3262_v18 = vadd.f32 %v3229_v36, %v3102_v54 }
 0xd69   :  { %6418 = vtanh.f32 %v3260_v29  ;;  %v3460_v49 = vsel %vm754_vm4, %v3459_v27, %v3458_v56 }
 0xd6a   :  { %v6409_v20 = vpop.eup %6408  ;;  %6420 = vtanh.f32 %v3261_v45  ;;  %v3461_v11 = vsel %vm757_vm5, %v3260_v29, %v3460_v49  ;;  %v3215_v7 = vpop.permute.xlu1 %3214  ;;  %v3464_v60 = vrot.slane %v3262_v18, 6  ;;  %v8706_v45 = vld [vmem:[%s9863_s1 + $0x8] sm:$0xff] }
 0xd6b   :  { %3306 = vrot.lane.b32.xlu1 %v6409_v20, %s6849_s0  ;;  %v6411_v46 = vpop.eup %6410  ;;  %v3255_v52 = vadd.f32 %v3215_v7, %v3095_v15  ;;  %v3463_v6 = vsel %vm760_vm6, %v3462_v61, %v3461_v11  ;;  %v3231_v20 = vpop.permute.xlu0 %3230  ;;  %vm3361_vm14 = vcmp.gt.s32.totalorder %v8706_v45, 4 }
 0xd6c   :  { %3314 = vrot.lane.b32.xlu0 %v6411_v46, %s6849_s0  ;;  %v3263_v28 = vadd.f32 %v3231_v20, %v3103_v8  ;;  %v3465_v31 = vsel %vm763_vm7, %v3464_v60, %v3463_v6  ;;  %v3363_v49 = vsel %vm3361_vm14, 1, %v9935_v34 }
 0xd6d   :  { %6422 = vtanh.f32 %v3255_v52  ;;  %v3452_v19 = vrot.slane %v3255_v52, 5  ;;  %v6413_v12 = vpop.eup %6412 }
 0xd6e   :  { %6424 = vtanh.f32 %v3262_v18  ;;  %v3466_v25 = vrot.slane %v3263_v28, 5 }
 0xd6f   :  { %v8683_v59 = vsel %vm766_vm8, %v3452_v19, %v3451_v43  ;;  %6426 = vtanh.f32 %v3263_v28  ;;  %v8697_v43 = vld [vmem:[%s9863_s1] sm:$0xff] }
 0xd70   :  { %3316 = vrot.lane.b32.xlu0 %v6413_v12, %s6849_s0  ;;  %v8690_v5 = vsel %vm766_vm8, %v3466_v25, %v3465_v31  ;;  %vm3360_vm10 = vcmp.gt.s32.totalorder %v8697_v43, 4 }
 0xd71   :  { %v3362_v56 = vsel %vm3360_vm10, 1, %v9935_v34 }
 0xd72   :  { %v6415_v24 = vpop.eup %6414 }
 0xd73   :  { %v6417_v32 = vpop.eup %6416  ;;  %3312 = vrot.lane.b32.xlu1 %v6415_v24, %s6849_s0 }
 0xd74   :  { %3318 = vrot.lane.b32.xlu0 %v6417_v32, %s6849_s0 }
 0xd76   :  { %v6419_v27 = vpop.eup %6418 }
 0xd77   :  { %v6421_v10 = vpop.eup %6420  ;;  %3320 = vrot.lane.b32.xlu1 %v6419_v27, %s6849_s0 }
 0xd78   :  { %3322 = vrot.lane.b32.xlu0 %v6421_v10, %s6849_s0 }
 0xd7a   :  { %v6423_v55 = vpop.eup %6422 }
 0xd7b   :  { %v6425_v29 = vpop.eup %6424  ;;  %3310 = vrot.lane.b32.xlu1 %v6423_v55, %s6849_s0 }
 0xd7c   :  { %3324 = vrot.lane.b32.xlu0 %v6425_v29, %s6849_s0  ;;  %v6427_v15 = vpop.eup %6426 }
 0xd7f   :  { %3365 = vperm.xlu1 %5775, %v3362_v56  }
 0xd80   :  { %3326 = vrot.lane.b32.xlu0 %v6427_v15, %s6849_s0 }
 0xd84   :  { %3368 = vperm.xlu0 %5774, %v3363_v49  }
 0xdcc   :  { %v3299_v11 = vpop.permute.xlu0 %3298 }
 0xdcd   :  { %v3305_v54 = vpop.permute.xlu1 %3304  ;;  %v3345_v8 = vmul.f32 %v8552_v33, %v3299_v11 }
 0xdcf   :  { %v3389_v32 = vrot.slane %v3345_v8, 3 }
 0xdd0   :  { %v3309_v46 = vpop.permute.xlu0 %3308 }
 0xdd1   :  { %v3297_v61 = vpop.permute.xlu1 %3296 }
 0xdd2   :  { %v3344_v18 = vmul.f32 %v8566_v48, %v3297_v61 }
 0xdd4   :  { %v3388_v20 = vrot.slane %v3344_v18, 4 }
 0xdd5   :  { %v3301_v7 = vpop.permute.xlu1 %3300 }
 0xdd6   :  { %v3346_v6 = vmul.f32 %v8572_v23, %v3301_v7  ;;  %v3390_v33 = vsel %vm748_vm2, %v3389_v32, %v3388_v20 }
 0xdd8   :  { %v3391_v31 = vrot.slane %v3346_v6, 2 }
 0xdd9   :  { %v3303_v36 = vpop.permute.xlu1 %3302 }
 0xdda   :  { %v3347_v60 = vmul.f32 %v8576_v47, %v3303_v36  ;;  %v3392_v56 = vsel %vm751_vm3, %v3391_v31, %v3390_v33 }
 0xddc   :  { %v3393_v27 = vrot.slane %v3347_v60, 1 }
 0xddd   :  { %v3307_v19 = vpop.permute.xlu1 %3306 }
 0xdde   :  { %v3315_v52 = vpop.permute.xlu0 %3314  ;;  %v3349_v10 = vmul.f32 %v8580_v53, %v3307_v19  ;;  %v3348_v53 = vmul.f32 %v8556_v22, %v3305_v54 }
 0xddf   :  { %v3353_v28 = vmul.f32 %v8586_v16, %v3315_v52 }
 0xde0   :  { %v3396_v49 = vrot.slane %v3349_v10, 7 }
 0xde1   :  { %v3403_v47 = vrot.slane %v3353_v28, 3 }
 0xde2   :  { %v3317_v12 = vpop.permute.xlu0 %3316 }
 0xde3   :  { %v3354_v24 = vmul.f32 %v8590_v62, %v3317_v12  ;;  %v3394_v62 = vsel %vm754_vm4, %v3393_v27, %v3392_v56 }
 0xde4   :  { %v3395_v52 = vsel %vm757_vm5, %v3348_v53, %v3394_v62 }
 0xde5   :  { %v3313_v25 = vpop.permute.xlu1 %3312  ;;  %v3405_v16 = vrot.slane %v3354_v24, 2  ;;  %v3397_v8 = vsel %vm760_vm6, %v3396_v49, %v3395_v52 }
 0xde6   :  { %v3319_v48 = vpop.permute.xlu0 %3318  ;;  %v3352_v23 = vmul.f32 %v8593_v44, %v3313_v25  ;;  %v3350_v44 = vmul.f32 %v8560_v9, %v3309_v46 }
 0xde7   :  { %v3355_v55 = vmul.f32 %v8596_v14, %v3319_v48 }
 0xde8   :  { %v3402_v29 = vrot.slane %v3352_v23, 4  ;;  %v3398_v22 = vrot.slane %v3350_v44, 6 }
 0xde9   :  { %v3321_v15 = vpop.permute.xlu1 %3320  ;;  %v3407_v7 = vrot.slane %v3355_v55, 1  ;;  %v6820_v55 = vld [vmem:[%s9865_s3 + $0x8] sm:$0xff]  }
 0xdea   :  { %v3404_v61 = vsel %vm748_vm2, %v3403_v47, %v3402_v29  ;;  %v3323_v11 = vpop.permute.xlu0 %3322  ;;  %v3356_v36 = vmul.f32 %v8601_v38, %v3321_v15  ;;  %v3399_v38 = vsel %vm763_vm7, %v3398_v22, %v3397_v8 }
 0xdeb   :  { %v3406_v14 = vsel %vm751_vm3, %v3405_v16, %v3404_v61  ;;  %v3357_v18 = vmul.f32 %v8604_v4, %v3323_v11 }
 0xdec   :  { %v3408_v6 = vsel %vm754_vm4, %v3407_v7, %v3406_v14 }
 0xded   :  { %v3311_v19 = vpop.permute.xlu1 %3310  ;;  %v3409_v54 = vsel %vm757_vm5, %v3356_v36, %v3408_v6  ;;  %v3410_v20 = vrot.slane %v3357_v18, 7 }
 0xdee   :  { %v3325_v60 = vpop.permute.xlu0 %3324  ;;  %v3351_v12 = vmul.f32 %v8609_v37, %v3311_v19 }
 0xdef   :  { %v3358_v9 = vmul.f32 %v8612_v41, %v3325_v60  ;;  %v3411_v25 = vsel %vm760_vm6, %v3410_v20, %v3409_v54 }
 0xdf0   :  { %v3400_v46 = vrot.slane %v3351_v12, 5 }
 0xdf1   :  { %v3412_v28 = vrot.slane %v3358_v9, 6 }
 0xdf2   :  { %v3327_v31 = vpop.permute.xlu0 %3326  ;;  %v3401_v4 = vsel %vm766_vm8, %v3400_v46, %v3399_v38 }
 0xdf3   :  { %v3359_v24 = vmul.f32 %v8618_v51, %v3327_v31  ;;  %3416 = vrot.lane.b32.xlu1 %v3401_v4, %s6850_s4  ;;  %v3413_v32 = vsel %vm763_vm7, %v3412_v28, %v3411_v25 }
 0xdf5   :  { %v3414_v37 = vrot.slane %v3359_v24, 5 }
 0xdf7   :  { %v3415_v41 = vsel %vm766_vm8, %v3414_v37, %v3413_v32  ;;  %3468 = vrot.lane.b32.xlu1 %v8683_v59, %s6851_s26 }
 0xdf8   :  { %3418 = vrot.lane.b32.xlu0 %v3415_v41, %s6850_s4 }
 0xdfa   :  { %v8747_v27 = vpop.permute.xlu1 %3365 }
 0xdfb   :  { %9971 = vst [vmem:[#allocation6_spill] sm:$0xff] %v8747_v27  ;;  %vm9922_vm14 = vcmp.eq.s32.totalorder %v8747_v27, 1 }
 0xdfc   :  { %3470 = vrot.lane.b32.xlu0 %v8690_v5, %s6851_s26 }
 0xdff   :  { %v8749_v51 = vpop.permute.xlu0 %3368 }
 0xe00   :  { %9972 = vst [vmem:[#allocation7_spill] sm:$0xff] %v8749_v51  ;;  %vm9915_vm10 = vcmp.eq.s32.totalorder %v8749_v51, 1 }
 0xe65   :  { %v8751_v10 = vpop.permute.xlu1 %3416 }
 0xe66   :  { %9973 = vst [vmem:[#allocation10_spill] sm:$0xff] %v8751_v10  ;;  %v8761_v59 = vsel %vm9922_vm14, %v8751_v10, %v8392_v1  ;;  %v6821_v1 = vld [vmem:[%s9865_s3] sm:$0xff]  }
 0xe69   :  { %v3469_v52 = vpop.permute.xlu1 %3468 }
 0xe6a   :  { %v8755_v48 = vpop.permute.xlu0 %3418  ;;  %v8816_v12 = vsel %vm9922_vm14, %v3469_v52, %v8443_v39 }
 0xe6b   :  { %9974 = vst [vmem:[#allocation15_spill] sm:$0xff] %v8755_v48  ;;  %v8767_v5 = vsel %vm9915_vm10, %v8755_v48, %v8398_v40  ;;  %v3686_v39 = vrot.slane %v8816_v12, 4 }
 0xe6c   :  { %v3478_v23 = vpack.c.bf16 %v8767_v5, %v8761_v59 }
 0xe6e   :  { %5746 = vmatmul.mubr.msk.bf16.vlgmr.msra.gmra.mxu1 %vm103_vm1, %v3478_v23  ;;  %v3471_v52 = vpop.permute.xlu0 %3470 }
 0xe6f   :  { %5758 = vmatpush3.bf16.msra.mxu1 %v6820_v55  ;;  %5761 = vmatprep.mubr.msk.bf16.mxu1 %vm6847_vm0, %v9940_v13  ;;  %v9975_v55 = vld [vmem:[#allocation9_spill] sm:$0xff]  ;;  %vm4019_vm0 = vcmp.gt.s32.totalorder %v8697_v43, 5 }
 0xe70   :  { %5759 = vmatprep.subr.bf16.mxu1 %v9940_v13 }
 0xe73   :  { %5760 = vmatpush3.bf16.msra.mxu1 %v6821_v1 }
 0xf2e   :  { %v3516_v40 = vpop.f32.mrf.mxu1 }
 0xf2f   :  { %v3526_v29 = vrot.slane %v3516_v40, 4  ;;  %v3531_v15 = vrot.slane %v3516_v40, 2  ;;  %v3525_v62 = vrot.slane %v3516_v40, 3  ;;  %v8787_v49 = vadd.f32 %v3516_v40, %v7000_v42 }
 0xf30   :  { %v5747_v33 = vpop.f32.mrf.mxu1  ;;  %v3527_v61 = vrot.slane %v3516_v40, 5  ;;  %v3528_v53 = vrot.slane %v3516_v40, 6  ;;  %v3529_v7 = vrot.slane %v3516_v40, 7  ;;  %v3530_v18 = vrot.slane %v3516_v40, 1 }
 0xf31   :  { %v8784_v16 = vadd.f32 %v3526_v29, %v6980_v30  ;;  %v8791_v13 = vadd.f32 %v3531_v15, %v9965_v50  ;;  %v8794_v11 = vadd.f32 %v3525_v62, %v6963_v21  ;;  %v9976_v29 = vld [vmem:[#allocation8_spill] sm:$0xff] }
 0xf32   :  { %v8781_v47 = vpop.f32.mrf.mxu1  ;;  %v8799_v44 = vadd.f32 %v3527_v61, %v6959_v17  ;;  %v8803_v14 = vadd.f32 %v3528_v53, %v6972_v26  ;;  %v8808_v6 = vadd.f32 %v3529_v7, %v6988_v35  ;;  %v8819_v22 = vadd.f32 %v3530_v18, %v7042_v2  ;;  %v9977_v61 = vld [vmem:[#allocation12_spill] sm:$0xff] }
 0xf33   :  { %6428 = vtanh.f32 %v8784_v16  ;;  %v3533_v8 = vrot.slane %v8781_v47, 4  ;;  %v3532_v9 = vrot.slane %v8781_v47, 3  ;;  %v3534_v46 = vrot.slane %v8781_v47, 5 }
 0xf34   :  { %v5748_v56 = vpop.f32.mrf.mxu1  ;;  %6430 = vtanh.f32 %v8787_v49  ;;  %v3535_v31 = vrot.slane %v8781_v47, 6  ;;  %v8843_v24 = vadd.f32 %v8781_v47, %v9966_v0  ;;  %v3536_v37 = vrot.slane %v8781_v47, 7 }
 0xf35   :  { %6432 = vtanh.f32 %v8791_v13  ;;  %v8826_v20 = vadd.f32 %v3533_v8, %v7030_v57  ;;  %v8832_v38 = vadd.f32 %v3532_v9, %v9963_v63  ;;  %v8837_v4 = vadd.f32 %v3534_v46, %v9962_v3 }
 0xf36   :  { %6434 = vtanh.f32 %v8794_v11  ;;  %v8848_v32 = vadd.f32 %v3535_v31, %v9964_v58  ;;  %v3537_v23 = vrot.slane %v8781_v47, 1  ;;  %v8855_v1 = vadd.f32 %v3536_v37, %v9975_v55 }
 0xf37   :  { %6436 = vtanh.f32 %v8799_v44  ;;  %v3538_v33 = vrot.slane %v8781_v47, 2  ;;  %v3685_v18 = vrot.slane %v8816_v12, 3  ;;  %v3687_v46 = vrot.slane %v8816_v12, 5 }
 0xf38   :  { %6438 = vtanh.f32 %v8803_v14  ;;  %v8861_v56 = vadd.f32 %v3537_v23, %v9976_v29 }
 0xf39   :  { %6440 = vtanh.f32 %v8808_v6  ;;  %v8867_v53 = vadd.f32 %v3538_v33, %v9977_v61 }
 0xf3a   :  { %6442 = vtanh.f32 %v8819_v22 }
 0xf3b   :  { %6444 = vtanh.f32 %v8826_v20 }
 0xf3c   :  { %6446 = vtanh.f32 %v8832_v38 }
 0xf3d   :  { %6448 = vtanh.f32 %v8837_v4 }
 0xf3e   :  { %6450 = vtanh.f32 %v8843_v24 }
 0xf3f   :  { %6452 = vtanh.f32 %v8848_v32 }
 0xf40   :  { %v6429_v36 = vpop.eup %6428  ;;  %6454 = vtanh.f32 %v8855_v1 }
 0xf41   :  { %3781 = vrot.lane.b32.xlu0 %v6429_v36, %s6849_s0  ;;  %v6431_v19 = vpop.eup %6430  ;;  %6456 = vtanh.f32 %v8861_v56 }
 0xf42   :  { %3789 = vrot.lane.b32.xlu1 %v6431_v19, %s6849_s0  ;;  %v6433_v60 = vpop.eup %6432  ;;  %6458 = vtanh.f32 %v8867_v53  ;;  %v9978_v19 = vld [vmem:[#allocation5_spill] sm:$0xff] }
 0xf43   :  { %v6435_v54 = vpop.eup %6434  ;;  %v8879_v8 = vsel %vm9915_vm10, %v3471_v52, %v9978_v19  ;;  %v5599_v52 = vmul.f32 -1.442695, %v8799_v44  ;;  %v5605_v44 = vmul.f32 -1.442695, %v8832_v38  ;;  %v5610_v38 = vmul.f32 -1.442695, %v8843_v24 }
 0xf44   :  { %v6437_v28 = vpop.eup %6436  ;;  %9979 = vst [vmem:[#allocation5_spill] sm:$0xff] %v8879_v8  ;;  %v3692_v9 = vrot.slane %v8879_v8, 3  ;;  %v3693_v31 = vrot.slane %v8879_v8, 4  ;;  %v3694_v37 = vrot.slane %v8879_v8, 5  ;;  %v3695_v23 = vrot.slane %v8879_v8, 6 }
 0xf45   :  { %3793 = vrot.lane.b32.xlu0 %v6433_v60, %s6849_s0  ;;  %v6439_v25 = vpop.eup %6438  ;;  %v3697_v33 = vrot.slane %v8879_v8, 1  ;;  %vm4020_vm10 = vcmp.gt.s32.totalorder %v8706_v45, 5 }
 0xf46   :  { %3779 = vrot.lane.b32.xlu1 %v6435_v54, %s6849_s0  ;;  %v6441_v41 = vpop.eup %6440 }
 0xf47   :  { %v6443_v40 = vpop.eup %6442 }
 0xf48   :  { %v6445_v15 = vpop.eup %6444 }
 0xf49   :  { %3701 = vrot.lane.b32.xlu0 %v3686_v39, %s6850_s4  ;;  %v6447_v62 = vpop.eup %6446 }
 0xf4a   :  { %3783 = vrot.lane.b32.xlu1 %v6437_v28, %s6849_s0  ;;  %v6449_v7 = vpop.eup %6448  ;;  %v3688_v28 = vrot.slane %v8816_v12, 6 }
 0xf4b   :  { %v6451_v47 = vpop.eup %6450 }
 0xf4c   :  { %v6453_v36 = vpop.eup %6452 }
 0xf4d   :  { %3797 = vrot.lane.b32.xlu0 %v6445_v15, %s6849_s0  ;;  %v6455_v60 = vpop.eup %6454  ;;  %v3691_v15 = vrot.slane %v8816_v12, 2 }
 0xf4e   :  { %3785 = vrot.lane.b32.xlu1 %v6439_v25, %s6849_s0  ;;  %v6457_v54 = vpop.eup %6456  ;;  %v3689_v25 = vrot.slane %v8816_v12, 7 }
 0xf4f   :  { %v6459_v39 = vpop.eup %6458 }
 0xf51   :  { %3799 = vrot.lane.b32.xlu0 %v6449_v7, %s6849_s0  ;;  %v5598_v7 = vmul.f32 -1.442695, %v8784_v16  ;;  %v5603_v16 = vmul.f32 -1.442695, %v8819_v22  ;;  %v5608_v22 = vmul.f32 -1.442695, %v8848_v32 }
 0xf52   :  { %3787 = vrot.lane.b32.xlu1 %v6441_v41, %s6849_s0  ;;  %v3690_v41 = vrot.slane %v8816_v12, 1  ;;  %v5611_v32 = vmul.f32 -1.442695, %v8861_v56 }
 0xf53   :  { %6460 = vpow2.f32 %v5598_v7 }
 0xf55   :  { %3801 = vrot.lane.b32.xlu0 %v6453_v36, %s6849_s0  ;;  %v5597_v36 = vmul.f32 -1.442695, %v8794_v11  ;;  %v5606_v11 = vmul.f32 -1.442695, %v8826_v20 }
 0xf56   :  { %3791 = vrot.lane.b32.xlu1 %v6443_v40, %s6849_s0  ;;  %v3696_v40 = vrot.slane %v8879_v8, 7 }
 0xf59   :  { %3803 = vrot.lane.b32.xlu0 %v6455_v60, %s6849_s0  ;;  %v5601_v60 = vmul.f32 -1.442695, %v8808_v6  ;;  %v5602_v6 = vmul.f32 -1.442695, %v8787_v49 }
 0xf5a   :  { %3795 = vrot.lane.b32.xlu1 %v6447_v62, %s6849_s0  ;;  %v3698_v62 = vrot.slane %v8879_v8, 2 }
 0xf5d   :  { %3807 = vrot.lane.b32.xlu0 %v6457_v54, %s6849_s0 }
 0xf5e   :  { %3805 = vrot.lane.b32.xlu1 %v6451_v47, %s6849_s0  ;;  %v5604_v47 = vmul.f32 -1.442695, %v8791_v13 }
 0xf60   :  { %6462 = vpow2.f32 %v5604_v47  ;;  %v6461_v19 = vpop.eup %6460 }
 0xf61   :  { %3809 = vrot.lane.b32.xlu0 %v6459_v39, %s6849_s0  ;;  %6464 = vpow2.f32 %v5597_v36  ;;  %v5612_v36 = vmul.f32 -1.442695, %v8867_v53 }
 0xf62   :  { %3699 = vrot.lane.b32.xlu1 %v3685_v18, %s6850_s4  ;;  %v5600_v18 = vmul.f32 -1.442695, %v8803_v14  ;;  %6466 = vpow2.f32 %v5599_v52 }
 0xf64   :  { %6468 = vpow2.f32 %v5600_v18 }
 0xf65   :  { %3717 = vrot.lane.b32.xlu0 %v3693_v31, %s6850_s4  ;;  %6470 = vpow2.f32 %v5601_v60 }
 0xf66   :  { %3715 = vrot.lane.b32.xlu1 %v3692_v9, %s6850_s4  ;;  %v3620_v9 = vadd.f32 1.0, %v6461_v19 }
 0xf68   :  { %6472 = vrcp.f32 %v3620_v9 }
 0xf69   :  { %3719 = vrot.lane.b32.xlu0 %v3694_v37, %s6850_s4  ;;  %6474 = vpow2.f32 %v5603_v16 }
 0xf6a   :  { %3703 = vrot.lane.b32.xlu1 %v3687_v46, %s6850_s4  ;;  %6476 = vpow2.f32 %v5606_v11 }
 0xf6d   :  { %3721 = vrot.lane.b32.xlu0 %v3695_v23, %s6850_s4  ;;  %v6463_v54 = vpop.eup %6462 }
 0xf6e   :  { %3705 = vrot.lane.b32.xlu1 %v3688_v28, %s6850_s4  ;;  %v6465_v13 = vpop.eup %6464  ;;  %v3626_v46 = vadd.f32 1.0, %v6463_v54  ;;  %v5607_v28 = vmul.f32 -1.442695, %v8837_v4  ;;  %v5609_v4 = vmul.f32 -1.442695, %v8855_v1 }
 0xf6f   :  { %v3619_v39 = vadd.f32 1.0, %v6465_v13  ;;  %v6467_v14 = vpop.eup %6466 }
 0xf70   :  { %6478 = vrcp.f32 %v3626_v46 }
 0xf71   :  { %3723 = vrot.lane.b32.xlu0 %v3696_v40, %s6850_s4  ;;  %6480 = vpow2.f32 %v5605_v44  ;;  %v6469_v31 = vpop.eup %6468 }
 0xf72   :  { %3707 = vrot.lane.b32.xlu1 %v3689_v25, %s6850_s4  ;;  %v3621_v25 = vadd.f32 1.0, %v6467_v14  ;;  %6482 = vrcp.f32 %v3619_v39  ;;  %v3622_v20 = vadd.f32 1.0, %v6469_v31  ;;  %v6471_v37 = vpop.eup %6470 }
 0xf73   :  { %6484 = vpow2.f32 %v5607_v28 }
 0xf74   :  { %6486 = vpow2.f32 %v5602_v6 }
 0xf75   :  { %3727 = vrot.lane.b32.xlu0 %v3697_v33, %s6850_s4  ;;  %6488 = vrcp.f32 %v3621_v25  ;;  %v3623_v33 = vadd.f32 1.0, %v6471_v37 }
 0xf76   :  { %3711 = vrot.lane.b32.xlu1 %v3690_v41, %s6850_s4  ;;  %v8926_v41 = vpop.eup %6472  ;;  %6490 = vpow2.f32 %v5608_v22 }
 0xf77   :  { %6492 = vrcp.f32 %v3622_v20  ;;  %v6475_v40 = vpop.eup %6474 }
 0xf78   :  { %6494 = vpow2.f32 %v5610_v38  ;;  %v6477_v24 = vpop.eup %6476  ;;  %v3625_v7 = vadd.f32 1.0, %v6475_v40 }
 0xf79   :  { %3713 = vrot.lane.b32.xlu0 %v3691_v15, %s6850_s4  ;;  %6496 = vpow2.f32 %v5609_v4  ;;  %v3628_v19 = vadd.f32 1.0, %v6477_v24 }
 0xf7a   :  { %3709 = vrot.lane.b32.xlu1 %v8816_v12, %s6850_s4  ;;  %6498 = vrcp.f32 %v3623_v33 }
 0xf7b   :  { %6500 = vpow2.f32 %v5611_v32 }
 0xf7c   :  { %6502 = vrcp.f32 %v3625_v7 }
 0xf7d   :  { %3729 = vrot.lane.b32.xlu0 %v3698_v62, %s6850_s4  ;;  %v8934_v62 = vpop.eup %6478  ;;  %6504 = vpow2.f32 %v5612_v36 }
 0xf7e   :  { %3725 = vrot.lane.b32.xlu1 %v8879_v8, %s6850_s4  ;;  %v6481_v1 = vpop.eup %6480  ;;  %6506 = vrcp.f32 %v3628_v19 }
 0xf7f   :  { %v8938_v18 = vpop.eup %6482  ;;  %v3627_v16 = vadd.f32 1.0, %v6481_v1 }
 0xf80   :  { %v6485_v9 = vpop.eup %6484 }
 0xf81   :  { %v6487_v54 = vpop.eup %6486  ;;  %v3629_v53 = vadd.f32 1.0, %v6485_v9  ;;  %6508 = vrcp.f32 %v3627_v16 }
 0xf82   :  { %v8943_v13 = vpop.eup %6488  ;;  %v3624_v14 = vadd.f32 1.0, %v6487_v54 }
 0xf83   :  { %v6491_v46 = vpop.eup %6490  ;;  %6510 = vrcp.f32 %v3629_v53 }
 0xf84   :  { %v8946_v39 = vpop.eup %6492  ;;  %v3630_v6 = vadd.f32 1.0, %v6491_v46  ;;  %6512 = vrcp.f32 %v3624_v14 }
 0xf85   :  { %v6495_v28 = vpop.eup %6494 }
 0xf86   :  { %v6497_v25 = vpop.eup %6496  ;;  %v3632_v20 = vadd.f32 1.0, %v6495_v28  ;;  %6514 = vrcp.f32 %v3630_v6 }
 0xf87   :  { %v8953_v38 = vpop.eup %6498  ;;  %v3631_v4 = vadd.f32 1.0, %v6497_v25 }
 0xf88   :  { %6516 = vrcp.f32 %v3632_v20 }
 0xf89   :  { %6518 = vrcp.f32 %v3631_v4 }
 0xfb3   :  { %v3782_v23 = vpop.permute.xlu0 %3781 }
 0xfb4   :  { %v3828_v49 = vmul.f32 %v8926_v41, %v3782_v23  ;;  %v8932_v15 = vpop.permute.xlu1 %3789 }
 0xfb6   :  { %3861 = vrot.lane.b32.xlu0 %v3828_v49, %s6850_s4  ;;  %v6501_v49 = vpop.eup %6500 }
 0xfb7   :  { %v3794_v47 = vpop.permute.xlu0 %3793  ;;  %v8956_v33 = vpop.eup %6502  ;;  %v3633_v24 = vadd.f32 1.0, %v6501_v49 }
 0xfb8   :  { %v3834_v52 = vmul.f32 %v8934_v62, %v3794_v47  ;;  %v3780_v60 = vpop.permute.xlu1 %3779  ;;  %v6505_v32 = vpop.eup %6504 }
 0xfb9   :  { %v3827_v56 = vmul.f32 %v8938_v18, %v3780_v60  ;;  %v8959_v47 = vpop.eup %6506  ;;  %v3634_v60 = vadd.f32 1.0, %v6505_v32  ;;  %6520 = vrcp.f32 %v3633_v24 }
 0xfba   :  { %3873 = vrot.lane.b32.xlu0 %v3834_v52, %s6850_s4  ;;  %v8964_v19 = vpop.eup %6508 }
 0xfbb   :  { %3859 = vrot.lane.b32.xlu1 %v3827_v56, %s6850_s4  ;;  %v8950_v37 = vpop.permute.xlu0 %3701  ;;  %v8967_v56 = vpop.eup %6510  ;;  %6522 = vrcp.f32 %v3634_v60 }
 0xfbc   :  { %v3784_v11 = vpop.permute.xlu1 %3783 }
 0xfbd   :  { %v3829_v44 = vmul.f32 %v8943_v13, %v3784_v11  ;;  %v8972_v11 = vpop.eup %6512 }
 0xfbe   :  { %v8975_v46 = vpop.eup %6514 }
 0xfbf   :  { %3863 = vrot.lane.b32.xlu1 %v3829_v44, %s6850_s4  ;;  %v3798_v1 = vpop.permute.xlu0 %3797  ;;  %v3832_v44 = vmul.f32 %v8972_v11, %v8932_v15 }
 0xfc0   :  { %v3786_v31 = vpop.permute.xlu1 %3785  ;;  %v3836_v52 = vmul.f32 %v8959_v47, %v3798_v1 }
 0xfc1   :  { %v3830_v22 = vmul.f32 %v8946_v39, %v3786_v31  ;;  %v8981_v31 = vpop.eup %6516 }
 0xfc2   :  { %3877 = vrot.lane.b32.xlu0 %v3836_v52, %s6850_s4  ;;  %v8984_v25 = vpop.eup %6518 }
 0xfc3   :  { %3865 = vrot.lane.b32.xlu1 %v3830_v22, %s6850_s4  ;;  %v3800_v54 = vpop.permute.xlu0 %3799 }
 0xfc4   :  { %v3788_v23 = vpop.permute.xlu1 %3787  ;;  %v3837_v53 = vmul.f32 %v8967_v56, %v3800_v54 }
 0xfc5   :  { %v3831_v40 = vmul.f32 %v8953_v38, %v3788_v23 }
 0xfc6   :  { %3879 = vrot.lane.b32.xlu0 %v3837_v53, %s6850_s4  ;;  %v8990_v15 = vpop.eup %6520 }
 0xfc7   :  { %3867 = vrot.lane.b32.xlu1 %v3831_v40, %s6850_s4  ;;  %v3802_v14 = vpop.permute.xlu0 %3801 }
 0xfc8   :  { %v3792_v7 = vpop.permute.xlu1 %3791  ;;  %v3838_v28 = vmul.f32 %v8975_v46, %v3802_v14  ;;  %v8994_v40 = vpop.eup %6522 }
 0xfc9   :  { %v3833_v36 = vmul.f32 %v8956_v33, %v3792_v7 }
 0xfca   :  { %3881 = vrot.lane.b32.xlu0 %v3838_v28, %s6850_s4 }
 0xfcb   :  { %3871 = vrot.lane.b32.xlu1 %v3833_v36, %s6850_s4  ;;  %v3804_v22 = vpop.permute.xlu0 %3803 }
 0xfcc   :  { %v3796_v9 = vpop.permute.xlu1 %3795  ;;  %v3839_v4 = vmul.f32 %v8984_v25, %v3804_v22 }
 0xfcd   :  { %v3835_v16 = vmul.f32 %v8964_v19, %v3796_v9 }
 0xfce   :  { %3883 = vrot.lane.b32.xlu0 %v3839_v4, %s6850_s4 }
 0xfcf   :  { %3875 = vrot.lane.b32.xlu1 %v3835_v16, %s6850_s4  ;;  %v3808_v23 = vpop.permute.xlu0 %3807 }
 0xfd0   :  { %v3806_v6 = vpop.permute.xlu1 %3805  ;;  %v3841_v49 = vmul.f32 %v8990_v15, %v3808_v23 }
 0xfd1   :  { %v3840_v20 = vmul.f32 %v8981_v31, %v3806_v6 }
 0xfd2   :  { %3887 = vrot.lane.b32.xlu0 %v3841_v49, %s6850_s4 }
 0xfd3   :  { %3869 = vrot.lane.b32.xlu1 %v3832_v44, %s6850_s4  ;;  %v3810_v32 = vpop.permute.xlu0 %3809 }
 0xfd4   :  { %v3842_v24 = vmul.f32 %v8994_v40, %v3810_v32  ;;  %v3700_v1 = vpop.permute.xlu1 %3699 }
 0xfd5   :  { %v3747_v51 = vmul.f32 %v8938_v18, %v3700_v1 }
 0xfd6   :  { %3889 = vrot.lane.b32.xlu0 %v3842_v24, %s6850_s4 }
 0xfd7   :  { %3885 = vrot.lane.b32.xlu1 %v3840_v20, %s6850_s4  ;;  %v3718_v7 = vpop.permute.xlu0 %3717  ;;  %v3748_v20 = vmul.f32 %v8926_v41, %v8950_v37 }
 0xfd8   :  { %v3716_v52 = vpop.permute.xlu1 %3715 }
 0xfdb   :  { %v3720_v36 = vpop.permute.xlu0 %3719 }
 0xfdc   :  { %v3704_v9 = vpop.permute.xlu1 %3703 }
 0xfdd   :  { %v3749_v61 = vmul.f32 %v8943_v13, %v3704_v9 }
 0xfdf   :  { %v8998_v60 = vpop.permute.xlu0 %3721 }
 0xfe0   :  { %v3706_v16 = vpop.permute.xlu1 %3705 }
 0xfe3   :  { %v9000_v54 = vpop.permute.xlu0 %3723 }
 0xfe4   :  { %v3708_v44 = vpop.permute.xlu1 %3707 }
 0xfe7   :  { %v9002_v53 = vpop.permute.xlu0 %3727 }
 0xfe8   :  { %v3712_v28 = vpop.permute.xlu1 %3711 }
 0xfeb   :  { %v3714_v14 = vpop.permute.xlu0 %3713 }
 0xfec   :  { %v3710_v22 = vpop.permute.xlu1 %3709  ;;  %v3754_v32 = vmul.f32 %v8934_v62, %v3714_v14  ;;  %v3750_v14 = vmul.f32 %v8946_v39, %v3706_v16  ;;  %v3753_v16 = vmul.f32 %v8956_v33, %v3712_v28  ;;  %v3757_v28 = vmul.f32 %v8967_v56, %v3720_v36 }
 0xfef   :  { %v9004_v6 = vpop.permute.xlu0 %3729 }
 0xff0   :  { %v9008_v49 = vpop.permute.xlu1 %3725 }
0x1028   :  { %v3862_v4 = vpop.permute.xlu0 %3861 }
0x1029   :  { %v3908_v23 = vadd.f32 %v3862_v4, %v3748_v20 }
0x102b   :  { %6524 = vtanh.f32 %v3908_v23  ;;  %v4100_v0 = vrot.slane %v3908_v23, 4 }
0x102c   :  { %v3874_v24 = vpop.permute.xlu0 %3873 }
0x102d   :  { %v9012_v48 = vadd.f32 %v3874_v24, %v3754_v32  ;;  %v3860_v27 = vpop.permute.xlu1 %3859 }
0x102e   :  { %v3907_v10 = vadd.f32 %v3860_v27, %v3747_v51  ;;  %v3751_v51 = vmul.f32 %v8953_v38, %v3708_v44 }
0x102f   :  { %6526 = vtanh.f32 %v9012_v48 }
0x1030   :  { %6528 = vtanh.f32 %v3907_v10  ;;  %v4099_v37 = vrot.slane %v3907_v10, 5 }
0x1031   :  { %v3864_v20 = vpop.permute.xlu1 %3863 }
0x1032   :  { %v4101_v4 = vsel %vm748_vm2, %v4100_v0, %v4099_v37  ;;  %v3909_v8 = vadd.f32 %v3864_v20, %v3749_v61 }
0x1034   :  { %6530 = vtanh.f32 %v3909_v8  ;;  %v4102_v55 = vrot.slane %v3909_v8, 3 }
0x1035   :  { %v3866_v32 = vpop.permute.xlu1 %3865 }
0x1036   :  { %v4103_v24 = vsel %vm751_vm3, %v4102_v55, %v4101_v4  ;;  %v3910_v27 = vadd.f32 %v3866_v32, %v3750_v14  ;;  %v3756_v55 = vmul.f32 %v8959_v47, %v3718_v7  ;;  %v3878_v4 = vpop.permute.xlu0 %3877  ;;  %v3755_v32 = vmul.f32 %v8964_v19, %v3716_v52 }
0x1037   :  { %v3758_v52 = vmul.f32 %v8975_v46, %v8998_v60 }
0x1038   :  { %v6525_v1 = vpop.eup %6524  ;;  %6532 = vtanh.f32 %v3910_v27  ;;  %v4104_v9 = vrot.slane %v3910_v27, 2 }
0x1039   :  { %3957 = vrot.lane.b32.xlu0 %v6525_v1, %s6849_s0  ;;  %v3868_v10 = vpop.permute.xlu1 %3867  ;;  %v3916_v1 = vadd.f32 %v3878_v4, %v3756_v55 }
0x103a   :  { %v4105_v23 = vsel %vm754_vm4, %v4104_v9, %v4103_v24  ;;  %v3911_v0 = vadd.f32 %v3868_v10, %v3751_v51  ;;  %v3880_v51 = vpop.permute.xlu0 %3879  ;;  %v3752_v10 = vmul.f32 %v8972_v11, %v3710_v22 }
0x103b   :  { %v3917_v7 = vadd.f32 %v3880_v51, %v3757_v28  ;;  %v3759_v28 = vmul.f32 %v8984_v25, %v9000_v54  ;;  %v3761_v54 = vmul.f32 %v8990_v15, %v9002_v53 }
0x103c   :  { %v6527_v61 = vpop.eup %6526  ;;  %6534 = vtanh.f32 %v3911_v0  ;;  %v4106_v8 = vrot.slane %v3911_v0, 1 }
0x103d   :  { %3969 = vrot.lane.b32.xlu0 %v6527_v61, %s6849_s0  ;;  %v6529_v37 = vpop.eup %6528  ;;  %v3872_v20 = vpop.permute.xlu1 %3871 }
0x103e   :  { %v4107_v44 = vsel %vm757_vm5, %v4106_v8, %v4105_v23  ;;  %v3913_v14 = vadd.f32 %v3872_v20, %v3753_v16  ;;  %3955 = vrot.lane.b32.xlu1 %v6529_v37, %s6849_s0  ;;  %v4114_v23 = vrot.slane %v3916_v1, 4  ;;  %v4116_v16 = vrot.slane %v3917_v7, 3  ;;  %v3882_v36 = vpop.permute.xlu0 %3881 }
0x103f   :  { %v3918_v4 = vadd.f32 %v3882_v36, %v3758_v52 }
0x1040   :  { %6536 = vtanh.f32 %v3913_v14  ;;  %v4109_v20 = vrot.slane %v3913_v14, 7 }
0x1041   :  { %v6531_v24 = vpop.eup %6530  ;;  %6538 = vtanh.f32 %v3916_v1  ;;  %v3876_v27 = vpop.permute.xlu1 %3875  ;;  %v3760_v1 = vmul.f32 %v8981_v31, %v9008_v49 }
0x1042   :  { %v3915_v9 = vadd.f32 %v3876_v27, %v3755_v32  ;;  %3959 = vrot.lane.b32.xlu1 %v6531_v24, %s6849_s0  ;;  %v4111_v32 = vrot.slane %v9012_v48, 6  ;;  %v4118_v27 = vrot.slane %v3918_v4, 2 }
0x1044   :  { %6540 = vtanh.f32 %v3915_v9  ;;  %v4113_v0 = vrot.slane %v3915_v9, 5  ;;  %v3884_v9 = vpop.permute.xlu0 %3883 }
0x1045   :  { %v6533_v61 = vpop.eup %6532  ;;  %6542 = vtanh.f32 %v3917_v7  ;;  %v3870_v8 = vpop.permute.xlu1 %3869 }
0x1046   :  { %v4115_v37 = vsel %vm748_vm2, %v4114_v23, %v4113_v0  ;;  %v3912_v55 = vadd.f32 %v3870_v8, %v3752_v10  ;;  %3961 = vrot.lane.b32.xlu1 %v6533_v61, %s6849_s0  ;;  %v3919_v10 = vadd.f32 %v3884_v9, %v3759_v28  ;;  %v4022_v9 = vsel %vm4020_vm10, 1, %v9935_v34 }
0x1047   :  { %v4117_v22 = vsel %vm751_vm3, %v4116_v16, %v4115_v37  ;;  %v3762_v37 = vmul.f32 %v8994_v40, %v9004_v6 }
0x1048   :  { %6544 = vtanh.f32 %v3912_v55  ;;  %v4108_v60 = vsel %vm760_vm6, %v3912_v55, %v4107_v44  ;;  %v4119_v48 = vsel %vm754_vm4, %v4118_v27, %v4117_v22  ;;  %v4120_v23 = vrot.slane %v3919_v10, 1  ;;  %v3888_v61 = vpop.permute.xlu0 %3887 }
0x1049   :  { %v6535_v24 = vpop.eup %6534  ;;  %6546 = vtanh.f32 %v3918_v4  ;;  %v3886_v51 = vpop.permute.xlu1 %3885  ;;  %v4110_v14 = vsel %vm763_vm7, %v4109_v20, %v4108_v60  ;;  %v3921_v16 = vadd.f32 %v3888_v61, %v3761_v54  ;;  %v4021_v27 = vsel %vm4019_vm0, 1, %v9935_v34 }
0x104a   :  { %v3920_v7 = vadd.f32 %v3886_v51, %v3760_v1  ;;  %3963 = vrot.lane.b32.xlu1 %v6535_v24, %s6849_s0  ;;  %v9045_v49 = vsel %vm766_vm8, %v4111_v32, %v4110_v14  ;;  %v4121_v52 = vsel %vm757_vm5, %v4120_v23, %v4119_v48 }
0x104b   :  { %v4123_v55 = vrot.slane %v3921_v16, 7 }
0x104c   :  { %6548 = vtanh.f32 %v3920_v7  ;;  %v4122_v8 = vsel %vm760_vm6, %v3920_v7, %v4121_v52  ;;  %v3890_v20 = vpop.permute.xlu0 %3889 }
0x104d   :  { %v6537_v44 = vpop.eup %6536  ;;  %6550 = vtanh.f32 %v3919_v10  ;;  %v3922_v4 = vadd.f32 %v3890_v20, %v3762_v37  ;;  %v4124_v22 = vsel %vm763_vm7, %v4123_v55, %v4122_v8 }
0x104e   :  { %v6539_v0 = vpop.eup %6538  ;;  %3967 = vrot.lane.b32.xlu1 %v6537_v44, %s6849_s0  ;;  %6552 = vtanh.f32 %v3921_v16 }
0x104f   :  { %3973 = vrot.lane.b32.xlu0 %v6539_v0, %s6849_s0  ;;  %6554 = vtanh.f32 %v3922_v4  ;;  %v4125_v32 = vrot.slane %v3922_v4, 6 }
0x1051   :  { %v6541_v36 = vpop.eup %6540  ;;  %v9062_v6 = vsel %vm766_vm8, %v4125_v32, %v4124_v22 }
0x1052   :  { %v6543_v53 = vpop.eup %6542  ;;  %3971 = vrot.lane.b32.xlu1 %v6541_v36, %s6849_s0 }
0x1053   :  { %3975 = vrot.lane.b32.xlu0 %v6543_v53, %s6849_s0 }
0x1055   :  { %v6545_v1 = vpop.eup %6544 }
0x1056   :  { %v6547_v60 = vpop.eup %6546  ;;  %3965 = vrot.lane.b32.xlu1 %v6545_v1, %s6849_s0 }
0x1057   :  { %3977 = vrot.lane.b32.xlu0 %v6547_v60, %s6849_s0 }
0x1059   :  { %v6549_v24 = vpop.eup %6548 }
0x105a   :  { %v6551_v28 = vpop.eup %6550  ;;  %3981 = vrot.lane.b32.xlu1 %v6549_v24, %s6849_s0 }
0x105b   :  { %3979 = vrot.lane.b32.xlu0 %v6551_v28, %s6849_s0  ;;  %v6553_v51 = vpop.eup %6552 }
0x105c   :  { %v6555_v14 = vpop.eup %6554 }
0x105e   :  { %4024 = vperm.xlu1 %5775, %v4021_v27  }
0x105f   :  { %3983 = vrot.lane.b32.xlu0 %v6553_v51, %s6849_s0 }
0x1063   :  { %3985 = vrot.lane.b32.xlu0 %v6555_v14, %s6849_s0 }
0x1067   :  { %4027 = vperm.xlu0 %5774, %v4022_v9  }
0x10ab   :  { %v3958_v48 = vpop.permute.xlu0 %3957 }
0x10ac   :  { %v4004_v52 = vmul.f32 %v8926_v41, %v3958_v48 }
0x10ae   :  { %v4048_v53 = vrot.slane %v4004_v52, 4 }
0x10af   :  { %v3970_v54 = vpop.permute.xlu0 %3969 }
0x10b0   :  { %v3956_v43 = vpop.permute.xlu1 %3955 }
0x10b1   :  { %v4003_v23 = vmul.f32 %v8938_v18, %v3956_v43 }
0x10b3   :  { %v4047_v36 = vrot.slane %v4003_v23, 5 }
0x10b4   :  { %v3960_v7 = vpop.permute.xlu1 %3959 }
0x10b5   :  { %v4005_v0 = vmul.f32 %v8943_v13, %v3960_v7  ;;  %v4049_v41 = vsel %vm748_vm2, %v4048_v53, %v4047_v36 }
0x10b7   :  { %v4050_v37 = vrot.slane %v4005_v0, 3 }
0x10b8   :  { %v3962_v10 = vpop.permute.xlu1 %3961 }
0x10b9   :  { %v4006_v45 = vmul.f32 %v8946_v39, %v3962_v10  ;;  %v4010_v39 = vmul.f32 %v8934_v62, %v3970_v54  ;;  %v4051_v32 = vsel %vm751_vm3, %v4050_v37, %v4049_v41 }
0x10bb   :  { %v4052_v20 = vrot.slane %v4006_v45, 2 }
0x10bc   :  { %v3964_v44 = vpop.permute.xlu1 %3963 }
0x10bd   :  { %v4007_v8 = vmul.f32 %v8953_v38, %v3964_v44  ;;  %v4053_v24 = vsel %vm754_vm4, %v4052_v20, %v4051_v32 }
0x10bf   :  { %v4054_v1 = vrot.slane %v4007_v8, 1 }
0x10c0   :  { %v3968_v61 = vpop.permute.xlu1 %3967 }
0x10c1   :  { %v3974_v16 = vpop.permute.xlu0 %3973  ;;  %v4009_v13 = vmul.f32 %v8956_v33, %v3968_v61  ;;  %v4059_v33 = vrot.slane %v4010_v39, 6 }
0x10c2   :  { %v4012_v18 = vmul.f32 %v8959_v47, %v3974_v16  ;;  %v4055_v47 = vsel %vm757_vm5, %v4054_v1, %v4053_v24 }
0x10c3   :  { %v4057_v14 = vrot.slane %v4009_v13, 7 }
0x10c4   :  { %v3972_v55 = vpop.permute.xlu1 %3971  ;;  %v4062_v51 = vrot.slane %v4012_v18, 4 }
0x10c5   :  { %v3976_v4 = vpop.permute.xlu0 %3975  ;;  %v4011_v22 = vmul.f32 %v8964_v19, %v3972_v55 }
0x10c6   :  { %v4013_v28 = vmul.f32 %v8967_v56, %v3976_v4 }
0x10c7   :  { %v4061_v38 = vrot.slane %v4011_v22, 5 }
0x10c8   :  { %v3966_v60 = vpop.permute.xlu1 %3965  ;;  %v4064_v48 = vrot.slane %v4013_v28, 3 }
0x10c9   :  { %v3978_v27 = vpop.permute.xlu0 %3977  ;;  %v4008_v19 = vmul.f32 %v8972_v11, %v3966_v60  ;;  %v4063_v43 = vsel %vm748_vm2, %v4062_v51, %v4061_v38 }
0x10ca   :  { %v4014_v62 = vmul.f32 %v8975_v46, %v3978_v27  ;;  %v4065_v11 = vsel %vm751_vm3, %v4064_v48, %v4063_v43 }
0x10cb   :  { %v4056_v9 = vsel %vm760_vm6, %v4008_v19, %v4055_v47 }
0x10cc   :  { %v4058_v7 = vsel %vm763_vm7, %v4057_v14, %v4056_v9  ;;  %v3982_v54 = vpop.permute.xlu1 %3981  ;;  %v4066_v23 = vrot.slane %v4014_v62, 2 }
0x10cd   :  { %v3980_v10 = vpop.permute.xlu0 %3979  ;;  %v4060_v56 = vsel %vm766_vm8, %v4059_v33, %v4058_v7  ;;  %v4016_v45 = vmul.f32 %v8981_v31, %v3982_v54 }
0x10ce   :  { %v4015_v44 = vmul.f32 %v8984_v25, %v3980_v10  ;;  %4075 = vrot.lane.b32.xlu1 %v4060_v56, %s6850_s4  ;;  %v4067_v46 = vsel %vm754_vm4, %v4066_v23, %v4065_v11 }
0x10d0   :  { %v4068_v0 = vrot.slane %v4015_v44, 1 }
0x10d1   :  { %v3984_v61 = vpop.permute.xlu0 %3983 }
0x10d2   :  { %v4017_v52 = vmul.f32 %v8990_v15, %v3984_v61  ;;  %4127 = vrot.lane.b32.xlu1 %v9045_v49, %s6851_s26  ;;  %v4069_v16 = vsel %vm757_vm5, %v4068_v0, %v4067_v46 }
0x10d3   :  { %v4070_v36 = vsel %vm760_vm6, %v4016_v45, %v4069_v16 }
0x10d4   :  { %v4071_v25 = vrot.slane %v4017_v52, 7 }
0x10d5   :  { %v3986_v8 = vpop.permute.xlu0 %3985 }
0x10d6   :  { %v4018_v37 = vmul.f32 %v8994_v40, %v3986_v8  ;;  %v4072_v53 = vsel %vm763_vm7, %v4071_v25, %v4070_v36 }
0x10d8   :  { %v4073_v55 = vrot.slane %v4018_v37, 6 }
0x10d9   :  { %v9108_v31 = vpop.permute.xlu1 %4024 }
0x10da   :  { %v4074_v20 = vsel %vm766_vm8, %v4073_v55, %v4072_v53  ;;  %9980 = vst [vmem:[#allocation28_spill] sm:$0xff] %v9108_v31  ;;  %vm4029_vm10 = vcmp.eq.s32.totalorder %v9108_v31, 1 }
0x10db   :  { %4077 = vrot.lane.b32.xlu0 %v4074_v20, %s6850_s4 }
0x10df   :  { %4129 = vrot.lane.b32.xlu0 %v9062_v6, %s6851_s26 }
0x10e2   :  { %v9110_v15 = vpop.permute.xlu0 %4027 }
0x10e3   :  { %9981 = vst [vmem:[#allocation29_spill] sm:$0xff] %v9110_v15  ;;  %vm4030_vm0 = vcmp.eq.s32.totalorder %v9110_v15, 1 }
0x1140   :  { %v9112_v49 = vpop.permute.xlu1 %4075 }
0x1141   :  { %9982 = vst [vmem:[#allocation30_spill] sm:$0xff] %v9112_v49  ;;  %v9122_v4 = vsel %vm4029_vm10, %v9112_v49, %v8761_v59 }
0x1144   :  { %v4128_v25 = vpop.permute.xlu1 %4127 }
0x1145   :  { %v9203_v55 = vsel %vm4029_vm10, %v4128_v25, %v8816_v12 }
0x114d   :  { %v9116_v40 = vpop.permute.xlu0 %4077 }
0x114e   :  { %9983 = vst [vmem:[#allocation31_spill] sm:$0xff] %v9116_v40  ;;  %v9128_v6 = vsel %vm4030_vm0, %v9116_v40, %v8767_v5 }
0x114f   :  { %v4137_v22 = vpack.c.bf16 %v9128_v6, %v9122_v4 }
0x1151   :  { %5754 = vmatmul.mubr.msk.bf16.vlgmr.msra.gmra.mxu0 %vm103_vm1, %v4137_v22  ;;  %v4130_v53 = vpop.permute.xlu0 %4129  ;;  %v9984_v22 = vld [vmem:[#allocation9_spill] sm:$0xff] }
0x1211   :  { %v4175_v18 = vpop.f32.mrf.mxu0 }
0x1212   :  { %v4184_v1 = vrot.slane %v4175_v18, 2  ;;  %v4185_v59 = vrot.slane %v4175_v18, 3  ;;  %v4186_v38 = vrot.slane %v4175_v18, 4  ;;  %v4187_v60 = vrot.slane %v4175_v18, 5 }
0x1213   :  { %v5755_v13 = vpop.f32.mrf.mxu0  ;;  %v4188_v28 = vrot.slane %v4175_v18, 6  ;;  %v4189_v51 = vrot.slane %v4175_v18, 7  ;;  %v4190_v14 = vrot.slane %v4175_v18, 1  ;;  %v9173_v44 = vadd.f32 %v4175_v18, %v7042_v2 }
0x1214   :  { %v9134_v41 = vadd.f32 %v4184_v1, %v6963_v21  ;;  %v9140_v5 = vadd.f32 %v4185_v59, %v6980_v30  ;;  %v9143_v24 = vadd.f32 %v4186_v38, %v6959_v17  ;;  %v9147_v27 = vadd.f32 %v4187_v60, %v6972_v26  ;;  %v9985_v59 = vld [vmem:[#allocation5_spill] sm:$0xff]  ;;  %v9987_v38 = vld [vmem:[#allocation11_spill] sm:$0xff] }
0x1215   :  { %v9136_v39 = vpop.f32.mrf.mxu0  ;;  %v9151_v47 = vadd.f32 %v4188_v28, %v6988_v35  ;;  %v9156_v33 = vadd.f32 %v4189_v51, %v7000_v42  ;;  %v9160_v62 = vadd.f32 %v4190_v14, %v9965_v50  ;;  %v4344_v13 = vrot.slane %v9203_v55, 2  ;;  %v9988_v51 = vld [vmem:[#allocation12_spill] sm:$0xff] }
0x1216   :  { %6556 = vtanh.f32 %v9134_v41  ;;  %v4191_v7 = vrot.slane %v9136_v39, 2  ;;  %v4192_v54 = vrot.slane %v9136_v39, 3  ;;  %v9179_v23 = vadd.f32 %v9136_v39, %v9976_v29 }
0x1217   :  { %v5756_v32 = vpop.f32.mrf.mxu0  ;;  %6558 = vtanh.f32 %v9140_v5  ;;  %v4193_v61 = vrot.slane %v9136_v39, 4  ;;  %v4194_v52 = vrot.slane %v9136_v39, 5  ;;  %v4195_v8 = vrot.slane %v9136_v39, 6 }
0x1218   :  { %6560 = vtanh.f32 %v9143_v24  ;;  %v9169_v10 = vadd.f32 %v4191_v7, %v9963_v63  ;;  %v9185_v46 = vadd.f32 %v4192_v54, %v7030_v57  ;;  %v4196_v20 = vrot.slane %v9136_v39, 7 }
0x1219   :  { %6562 = vtanh.f32 %v9147_v27  ;;  %v9191_v45 = vadd.f32 %v4193_v61, %v9962_v3  ;;  %v9196_v36 = vadd.f32 %v4194_v52, %v9964_v58  ;;  %v9207_v18 = vadd.f32 %v4195_v8, %v9984_v22 }
0x121a   :  { %6564 = vtanh.f32 %v9151_v47  ;;  %v9216_v12 = vsel %vm4030_vm0, %v4130_v53, %v9985_v59  ;;  %v4197_v32 = vrot.slane %v9136_v39, 1  ;;  %v9220_v60 = vadd.f32 %v4196_v20, %v9987_v38 }
0x121b   :  { %6566 = vtanh.f32 %v9156_v33  ;;  %9986 = vst [vmem:[#allocation9_spill] sm:$0xff] %v9216_v12  ;;  %v4347_v7 = vrot.slane %v9203_v55, 5  ;;  %v4349_v54 = vrot.slane %v9203_v55, 7  ;;  %v4350_v61 = vrot.slane %v9203_v55, 1 }
0x121c   :  { %6568 = vtanh.f32 %v9160_v62  ;;  %v9227_v14 = vadd.f32 %v4197_v32, %v9988_v51  ;;  %v4345_v52 = vrot.slane %v9203_v55, 3  ;;  %v4353_v25 = vrot.slane %v9216_v12, 4 }
0x121d   :  { %6570 = vtanh.f32 %v9169_v10  ;;  %v5614_v8 = vmul.f32 -1.442695, %v9134_v41  ;;  %v4355_v53 = vrot.slane %v9216_v12, 6  ;;  %v4356_v20 = vrot.slane %v9216_v12, 7 }
0x121e   :  { %6572 = vtanh.f32 %v9173_v44  ;;  %v4357_v59 = vrot.slane %v9216_v12, 1  ;;  %v5617_v41 = vmul.f32 -1.442695, %v9147_v27 }
0x121f   :  { %6574 = vtanh.f32 %v9179_v23 }
0x1220   :  { %6576 = vtanh.f32 %v9185_v46 }
0x1221   :  { %6578 = vtanh.f32 %v9191_v45 }
0x1222   :  { %6580 = vtanh.f32 %v9196_v36 }
0x1223   :  { %v6557_v19 = vpop.eup %6556  ;;  %6582 = vtanh.f32 %v9207_v18 }
0x1224   :  { %4438 = vrot.lane.b32.xlu1 %v6557_v19, %s6849_s0  ;;  %v6559_v9 = vpop.eup %6558  ;;  %v4351_v19 = vrot.slane %v9216_v12, 2  ;;  %6584 = vtanh.f32 %v9220_v60 }
0x1225   :  { %v6561_v43 = vpop.eup %6560  ;;  %4440 = vrot.lane.b32.xlu0 %v6559_v9, %s6849_s0  ;;  %v4346_v9 = vrot.slane %v9203_v55, 4  ;;  %6586 = vtanh.f32 %v9227_v14 }
0x1226   :  { %v6563_v48 = vpop.eup %6562  ;;  %6588 = vpow2.f32 %v5614_v8 }
0x1227   :  { %v6565_v56 = vpop.eup %6564 }
0x1228   :  { %4442 = vrot.lane.b32.xlu1 %v6561_v43, %s6849_s0  ;;  %v6567_v11 = vpop.eup %6566 }
0x1229   :  { %v6569_v0 = vpop.eup %6568 }
0x122a   :  { %v6571_v16 = vpop.eup %6570 }
0x122b   :  { %v6573_v37 = vpop.eup %6572 }
0x122c   :  { %4444 = vrot.lane.b32.xlu1 %v6563_v48, %s6849_s0  ;;  %v6575_v1 = vpop.eup %6574 }
0x122d   :  { %4466 = vrot.lane.b32.xlu0 %v6575_v1, %s6849_s0  ;;  %v6577_v28 = vpop.eup %6576  ;;  %v5615_v1 = vmul.f32 -1.442695, %v9140_v5 }
0x122e   :  { %v6579_v39 = vpop.eup %6578 }
0x122f   :  { %v6581_v43 = vpop.eup %6580  ;;  %6590 = vpow2.f32 %v5615_v1 }
0x1230   :  { %4446 = vrot.lane.b32.xlu1 %v6565_v56, %s6849_s0  ;;  %v6583_v48 = vpop.eup %6582  ;;  %v4348_v56 = vrot.slane %v9203_v55, 6 }
0x1231   :  { %4456 = vrot.lane.b32.xlu0 %v6577_v28, %s6849_s0  ;;  %v5618_v28 = vmul.f32 -1.442695, %v9151_v47 }
0x1234   :  { %4448 = vrot.lane.b32.xlu1 %v6567_v11, %s6849_s0  ;;  %v6585_v11 = vpop.eup %6584 }
0x1235   :  { %4458 = vrot.lane.b32.xlu0 %v6579_v39, %s6849_s0 }
0x1238   :  { %4452 = vrot.lane.b32.xlu1 %v6569_v0, %s6849_s0  ;;  %v6587_v0 = vpop.eup %6586 }
0x1239   :  { %4460 = vrot.lane.b32.xlu0 %v6581_v43, %s6849_s0  ;;  %v6589_v32 = vpop.eup %6588 }
0x123a   :  { %v4278_v5 = vadd.f32 1.0, %v6589_v32 }
0x123c   :  { %4454 = vrot.lane.b32.xlu1 %v6571_v16, %s6849_s0  ;;  %v4352_v16 = vrot.slane %v9216_v12, 3 }
0x123d   :  { %4462 = vrot.lane.b32.xlu0 %v6583_v48, %s6849_s0 }
0x1240   :  { %4450 = vrot.lane.b32.xlu1 %v6573_v37, %s6849_s0  ;;  %v4354_v37 = vrot.slane %v9216_v12, 5 }
0x1241   :  { %4464 = vrot.lane.b32.xlu0 %v6585_v11, %s6849_s0  ;;  %v5621_v11 = vmul.f32 -1.442695, %v9160_v62 }
0x1244   :  { %4358 = vrot.lane.b32.xlu1 %v4344_v13, %s6850_s4  ;;  %v5616_v13 = vmul.f32 -1.442695, %v9143_v24  ;;  %v5619_v24 = vmul.f32 -1.442695, %v9156_v33 }
0x1245   :  { %4468 = vrot.lane.b32.xlu0 %v6587_v0, %s6849_s0 }
0x1246   :  { %6592 = vpow2.f32 %v5616_v13  ;;  %v5625_v13 = vmul.f32 -1.442695, %v9196_v36 }
0x1247   :  { %6594 = vpow2.f32 %v5617_v41 }
0x1248   :  { %4374 = vrot.lane.b32.xlu1 %v4351_v19, %s6850_s4  ;;  %6596 = vpow2.f32 %v5618_v28  ;;  %v6591_v19 = vpop.eup %6590 }
0x1249   :  { %4360 = vrot.lane.b32.xlu0 %v4345_v52, %s6850_s4  ;;  %6598 = vrcp.f32 %v4278_v5  ;;  %v5620_v52 = vmul.f32 -1.442695, %v9173_v44  ;;  %v5626_v5 = vmul.f32 -1.442695, %v9207_v18  ;;  %v5629_v18 = vmul.f32 -1.442695, %v9227_v14 }
0x124a   :  { %6600 = vpow2.f32 %v5619_v24 }
0x124c   :  { %4362 = vrot.lane.b32.xlu1 %v4346_v9, %s6850_s4  ;;  %v4279_v9 = vadd.f32 1.0, %v6591_v19 }
0x124d   :  { %4376 = vrot.lane.b32.xlu0 %v4352_v16, %s6850_s4  ;;  %v5623_v16 = vmul.f32 -1.442695, %v9185_v46 }
0x124e   :  { %6602 = vrcp.f32 %v4279_v9 }
0x1250   :  { %4364 = vrot.lane.b32.xlu1 %v4347_v7, %s6850_s4  ;;  %v5622_v7 = vmul.f32 -1.442695, %v9169_v10 }
0x1251   :  { %4378 = vrot.lane.b32.xlu0 %v4353_v25, %s6850_s4 }
0x1253   :  { %v6593_v39 = vpop.eup %6592 }
0x1254   :  { %4366 = vrot.lane.b32.xlu1 %v4348_v56, %s6850_s4  ;;  %v4280_v43 = vadd.f32 1.0, %v6593_v39  ;;  %v6595_v27 = vpop.eup %6594 }
0x1255   :  { %4380 = vrot.lane.b32.xlu0 %v4354_v37, %s6850_s4  ;;  %v4281_v48 = vadd.f32 1.0, %v6595_v27  ;;  %v6597_v47 = vpop.eup %6596  ;;  %v5624_v37 = vmul.f32 -1.442695, %v9191_v45 }
0x1256   :  { %6604 = vrcp.f32 %v4280_v43  ;;  %v9272_v56 = vpop.eup %6598  ;;  %v4282_v33 = vadd.f32 1.0, %v6597_v47  ;;  %v5627_v43 = vmul.f32 -1.442695, %v9220_v60 }
0x1257   :  { %6606 = vpow2.f32 %v5622_v7 }
0x1258   :  { %4368 = vrot.lane.b32.xlu1 %v4349_v54, %s6850_s4  ;;  %6608 = vrcp.f32 %v4281_v48 }
0x1259   :  { %4382 = vrot.lane.b32.xlu0 %v4355_v53, %s6850_s4  ;;  %6610 = vpow2.f32 %v5621_v11 }
0x125a   :  { %6612 = vrcp.f32 %v4282_v33 }
0x125b   :  { %6614 = vpow2.f32 %v5620_v52 }
0x125c   :  { %4372 = vrot.lane.b32.xlu1 %v4350_v61, %s6850_s4  ;;  %v6601_v61 = vpop.eup %6600 }
0x125d   :  { %4384 = vrot.lane.b32.xlu0 %v4356_v20, %s6850_s4  ;;  %v4283_v10 = vadd.f32 1.0, %v6601_v61  ;;  %v9279_v25 = vpop.eup %6602 }
0x125f   :  { %6616 = vrcp.f32 %v4283_v10 }
0x1260   :  { %4370 = vrot.lane.b32.xlu1 %v9203_v55, %s6850_s4  ;;  %6618 = vpow2.f32 %v5623_v16 }
0x1261   :  { %4388 = vrot.lane.b32.xlu0 %v4357_v59, %s6850_s4  ;;  %6620 = vpow2.f32 %v5624_v37 }
0x1262   :  { %6622 = vpow2.f32 %v5625_v13 }
0x1263   :  { %v9281_v8 = vpop.eup %6604 }
0x1264   :  { %v6607_v1 = vpop.eup %6606 }
0x1265   :  { %4386 = vrot.lane.b32.xlu0 %v9216_v12, %s6850_s4  ;;  %v9288_v46 = vpop.eup %6608  ;;  %v4286_v32 = vadd.f32 1.0, %v6607_v1 }
0x1266   :  { %v6611_v45 = vpop.eup %6610 }
0x1267   :  { %v9293_v28 = vpop.eup %6612  ;;  %v4285_v39 = vadd.f32 1.0, %v6611_v45  ;;  %6624 = vrcp.f32 %v4286_v32 }
0x1268   :  { %v6615_v9 = vpop.eup %6614  ;;  %6626 = vpow2.f32 %v5626_v5 }
0x1269   :  { %v4284_v47 = vadd.f32 1.0, %v6615_v9  ;;  %6628 = vrcp.f32 %v4285_v39 }
0x126a   :  { %6630 = vpow2.f32 %v5627_v43 }
0x126b   :  { %6632 = vrcp.f32 %v4284_v47 }
0x126c   :  { %v9298_v36 = vpop.eup %6616  ;;  %6634 = vpow2.f32 %v5629_v18 }
0x126d   :  { %v6619_v7 = vpop.eup %6618 }
0x126e   :  { %v4287_v11 = vadd.f32 1.0, %v6619_v7 }
0x1270   :  { %6636 = vrcp.f32 %v4287_v11 }
0x1296   :  { %v4439_v54 = vpop.permute.xlu1 %4438 }
0x1297   :  { %v4486_v0 = vmul.f32 %v9272_v56, %v4439_v54  ;;  %v4441_v62 = vpop.permute.xlu0 %4440  ;;  %v6621_v54 = vpop.eup %6620 }
0x1298   :  { %v4487_v53 = vmul.f32 %v9279_v25, %v4441_v62  ;;  %v4288_v61 = vadd.f32 1.0, %v6621_v54  ;;  %v6623_v60 = vpop.eup %6622 }
0x1299   :  { %4518 = vrot.lane.b32.xlu1 %v4486_v0, %s6850_s4  ;;  %v5628_v0 = vmul.f32 -1.442695, %v9179_v23  ;;  %v9305_v52 = vpop.eup %6624  ;;  %v4289_v16 = vadd.f32 1.0, %v6623_v60 }
0x129a   :  { %v4443_v20 = vpop.permute.xlu1 %4442  ;;  %4520 = vrot.lane.b32.xlu0 %v4487_v53, %s6850_s4  ;;  %v6627_v62 = vpop.eup %6626 }
0x129b   :  { %v4488_v44 = vmul.f32 %v9281_v8, %v4443_v20  ;;  %6638 = vpow2.f32 %v5628_v0  ;;  %v9309_v37 = vpop.eup %6628  ;;  %v4290_v53 = vadd.f32 1.0, %v6627_v62 }
0x129c   :  { %6640 = vrcp.f32 %v4288_v61  ;;  %v6631_v20 = vpop.eup %6630 }
0x129d   :  { %4522 = vrot.lane.b32.xlu1 %v4488_v44, %s6850_s4  ;;  %6642 = vrcp.f32 %v4289_v16  ;;  %v9313_v13 = vpop.eup %6632 }
0x129e   :  { %v4445_v59 = vpop.permute.xlu1 %4444  ;;  %6644 = vrcp.f32 %v4290_v53 }
0x129f   :  { %v4489_v41 = vmul.f32 %v9288_v46, %v4445_v59  ;;  %v4467_v44 = vpop.permute.xlu0 %4466  ;;  %v6635_v59 = vpop.eup %6634 }
0x12a0   :  { %v9316_v45 = vpop.eup %6636  ;;  %v4293_v39 = vadd.f32 1.0, %v6635_v59 }
0x12a1   :  { %4524 = vrot.lane.b32.xlu1 %v4489_v41, %s6850_s4  ;;  %v4291_v41 = vadd.f32 1.0, %v6631_v20 }
0x12a2   :  { %v4447_v24 = vpop.permute.xlu1 %4446 }
0x12a3   :  { %v4490_v19 = vmul.f32 %v9293_v28, %v4447_v24  ;;  %v4457_v5 = vpop.permute.xlu0 %4456  ;;  %6646 = vrcp.f32 %v4291_v41 }
0x12a4   :  { %v4495_v24 = vmul.f32 %v9316_v45, %v4457_v5  ;;  %6648 = vrcp.f32 %v4293_v39 }
0x12a5   :  { %4526 = vrot.lane.b32.xlu1 %v4490_v19, %s6850_s4 }
0x12a6   :  { %v4449_v27 = vpop.permute.xlu1 %4448  ;;  %4536 = vrot.lane.b32.xlu0 %v4495_v24, %s6850_s4 }
0x12a7   :  { %v4491_v48 = vmul.f32 %v9298_v36, %v4449_v27  ;;  %v4459_v43 = vpop.permute.xlu0 %4458 }
0x12a8   :  { %v6639_v19 = vpop.eup %6638 }
0x12a9   :  { %4528 = vrot.lane.b32.xlu1 %v4491_v48, %s6850_s4  ;;  %v9321_v9 = vpop.eup %6640  ;;  %v4292_v7 = vadd.f32 1.0, %v6639_v19 }
0x12aa   :  { %v4453_v33 = vpop.permute.xlu1 %4452  ;;  %v4496_v27 = vmul.f32 %v9321_v9, %v4459_v43  ;;  %v9325_v48 = vpop.eup %6642 }
0x12ab   :  { %v4493_v23 = vmul.f32 %v9309_v37, %v4453_v33  ;;  %v4461_v47 = vpop.permute.xlu0 %4460  ;;  %6650 = vrcp.f32 %v4292_v7  ;;  %v9329_v11 = vpop.eup %6644 }
0x12ac   :  { %4538 = vrot.lane.b32.xlu0 %v4496_v27, %s6850_s4  ;;  %v4497_v18 = vmul.f32 %v9325_v48, %v4461_v47 }
0x12ae   :  { %v4455_v10 = vpop.permute.xlu1 %4454 }
0x12af   :  { %v4494_v14 = vmul.f32 %v9305_v52, %v4455_v10  ;;  %v4463_v54 = vpop.permute.xlu0 %4462 }
0x12b0   :  { %4540 = vrot.lane.b32.xlu0 %v4497_v18, %s6850_s4  ;;  %v4498_v33 = vmul.f32 %v9329_v11, %v4463_v54  ;;  %v9333_v0 = vpop.eup %6646 }
0x12b1   :  { %4534 = vrot.lane.b32.xlu1 %v4494_v14, %s6850_s4  ;;  %v9337_v10 = vpop.eup %6648 }
0x12b2   :  { %v4451_v1 = vpop.permute.xlu1 %4450 }
0x12b3   :  { %v4492_v32 = vmul.f32 %v9313_v13, %v4451_v1  ;;  %v4465_v61 = vpop.permute.xlu0 %4464 }
0x12b4   :  { %4542 = vrot.lane.b32.xlu0 %v4498_v33, %s6850_s4  ;;  %v4499_v60 = vmul.f32 %v9333_v0, %v4465_v61 }
0x12b5   :  { %4532 = vrot.lane.b32.xlu1 %v4493_v23, %s6850_s4 }
0x12b6   :  { %v4359_v23 = vpop.permute.xlu1 %4358 }
0x12b7   :  { %v4469_v16 = vpop.permute.xlu0 %4468  ;;  %v4406_v47 = vmul.f32 %v9272_v56, %v4359_v23 }
0x12b8   :  { %4544 = vrot.lane.b32.xlu0 %v4499_v60, %s6850_s4  ;;  %v4501_v14 = vmul.f32 %v9337_v10, %v4469_v16  ;;  %v9341_v62 = vpop.eup %6650 }
0x12b9   :  { %4530 = vrot.lane.b32.xlu1 %v4492_v32, %s6850_s4  ;;  %v4500_v53 = vmul.f32 %v9341_v62, %v4467_v44 }
0x12ba   :  { %v4375_v20 = vpop.permute.xlu1 %4374 }
0x12bb   :  { %v4361_v1 = vpop.permute.xlu0 %4360 }
0x12bc   :  { %4548 = vrot.lane.b32.xlu0 %v4501_v14, %s6850_s4  ;;  %v4407_v60 = vmul.f32 %v9279_v25, %v4361_v1 }
0x12be   :  { %v4363_v59 = vpop.permute.xlu1 %4362 }
0x12bf   :  { %v9345_v41 = vpop.permute.xlu0 %4376  ;;  %v4408_v16 = vmul.f32 %v9281_v8, %v4363_v59 }
0x12c0   :  { %4546 = vrot.lane.b32.xlu0 %v4500_v53, %s6850_s4 }
0x12c2   :  { %v4365_v32 = vpop.permute.xlu1 %4364 }
0x12c3   :  { %v9347_v5 = vpop.permute.xlu0 %4378  ;;  %v4409_v23 = vmul.f32 %v9288_v46, %v4365_v32 }
0x12c6   :  { %v4367_v24 = vpop.permute.xlu1 %4366 }
0x12c7   :  { %v9349_v19 = vpop.permute.xlu0 %4380  ;;  %v4410_v59 = vmul.f32 %v9293_v28, %v4367_v24 }
0x12ca   :  { %v4369_v39 = vpop.permute.xlu1 %4368 }
0x12cb   :  { %v9351_v43 = vpop.permute.xlu0 %4382  ;;  %v4411_v32 = vmul.f32 %v9298_v36, %v4369_v39  ;;  %v4414_v39 = vmul.f32 %v9305_v52, %v4375_v20  ;;  %v4415_v20 = vmul.f32 %v9316_v45, %v9345_v41 }
0x12ce   :  { %v4373_v27 = vpop.permute.xlu1 %4372 }
0x12cf   :  { %v9353_v7 = vpop.permute.xlu0 %4384 }
0x12d2   :  { %v4371_v44 = vpop.permute.xlu1 %4370 }
0x12d3   :  { %v9356_v18 = vpop.permute.xlu0 %4388 }
0x12d7   :  { %v9358_v61 = vpop.permute.xlu0 %4386 }
0x130b   :  { %v4519_v54 = vpop.permute.xlu1 %4518 }
0x130c   :  { %v4566_v33 = vadd.f32 %v4519_v54, %v4406_v47  ;;  %v4521_v14 = vpop.permute.xlu0 %4520 }
0x130d   :  { %v4567_v15 = vadd.f32 %v4521_v14, %v4407_v60 }
0x130e   :  { %6652 = vtanh.f32 %v4566_v33  ;;  %v4758_v53 = vrot.slane %v4566_v33, 6 }
0x130f   :  { %v4523_v40 = vpop.permute.xlu1 %4522  ;;  %6654 = vtanh.f32 %v4567_v15  ;;  %v4759_v49 = vrot.slane %v4567_v15, 5 }
0x1310   :  { %v4568_v31 = vadd.f32 %v4523_v40, %v4408_v16 }
0x1311   :  { %v4760_v47 = vsel %vm748_vm2, %v4759_v49, %v4758_v53 }
0x1312   :  { %6656 = vtanh.f32 %v4568_v31  ;;  %v4761_v29 = vrot.slane %v4568_v31, 4 }
0x1313   :  { %v4525_v54 = vpop.permute.xlu1 %4524 }
0x1314   :  { %v4762_v38 = vsel %vm751_vm3, %v4761_v29, %v4760_v47  ;;  %v4569_v12 = vadd.f32 %v4525_v54, %v4409_v23 }
0x1316   :  { %6658 = vtanh.f32 %v4569_v12  ;;  %v4763_v33 = vrot.slane %v4569_v12, 3 }
0x1317   :  { %v4527_v40 = vpop.permute.xlu1 %4526 }
0x1318   :  { %v4764_v15 = vsel %vm754_vm4, %v4763_v33, %v4762_v38  ;;  %v4570_v60 = vadd.f32 %v4527_v40, %v4410_v59 }
0x131a   :  { %6660 = vtanh.f32 %v4570_v60  ;;  %v4765_v31 = vrot.slane %v4570_v60, 2 }
0x131b   :  { %v6653_v1 = vpop.eup %6652  ;;  %v4529_v49 = vpop.permute.xlu1 %4528 }
0x131c   :  { %4614 = vrot.lane.b32.xlu1 %v6653_v1, %s6849_s0  ;;  %v4766_v16 = vsel %vm757_vm5, %v4765_v31, %v4764_v15  ;;  %v4571_v29 = vadd.f32 %v4529_v49, %v4411_v32  ;;  %v6655_v14 = vpop.eup %6654  ;;  %v4413_v1 = vmul.f32 %v9309_v37, %v4373_v27  ;;  %v4412_v15 = vmul.f32 %v9313_v13, %v4371_v44  ;;  %v4537_v31 = vpop.permute.xlu0 %4536 }
0x131d   :  { %4616 = vrot.lane.b32.xlu0 %v6655_v14, %s6849_s0 }
0x131e   :  { %6662 = vtanh.f32 %v4571_v29  ;;  %v4767_v53 = vrot.slane %v4571_v29, 1 }
0x131f   :  { %v6657_v24 = vpop.eup %6656 }
0x1320   :  { %4618 = vrot.lane.b32.xlu1 %v6657_v24, %s6849_s0  ;;  %v4768_v12 = vsel %vm760_vm6, %v4767_v53, %v4766_v16  ;;  %v4575_v16 = vadd.f32 %v4537_v31, %v4415_v20  ;;  %v4416_v53 = vmul.f32 %v9321_v9, %v9347_v5  ;;  %v4539_v24 = vpop.permute.xlu0 %4538  ;;  %v4418_v5 = vmul.f32 %v9329_v11, %v9351_v43 }
0x1322   :  { %v4773_v44 = vrot.slane %v4575_v16, 5 }
0x1323   :  { %v6659_v38 = vpop.eup %6658  ;;  %v4535_v23 = vpop.permute.xlu1 %4534 }
0x1324   :  { %4620 = vrot.lane.b32.xlu1 %v6659_v38, %s6849_s0  ;;  %v4574_v54 = vadd.f32 %v4535_v23, %v4414_v39  ;;  %v4576_v38 = vadd.f32 %v4539_v24, %v4416_v53  ;;  %v4417_v23 = vmul.f32 %v9325_v48, %v9349_v19  ;;  %v9398_v19 = vld [vmem:[%s9863_s1] sm:$0xff]  ;;  %v4421_v53 = vmul.f32 %v9337_v10, %v9356_v18 }
0x1325   :  { %vm4678_vm14 = vcmp.gt.s32.totalorder %v9398_v19, 6 }
0x1326   :  { %6664 = vtanh.f32 %v4574_v54  ;;  %v4772_v29 = vrot.slane %v4574_v54, 6 }
0x1327   :  { %v6661_v47 = vpop.eup %6660  ;;  %v4533_v59 = vpop.permute.xlu1 %4532 }
0x1328   :  { %4622 = vrot.lane.b32.xlu1 %v6661_v47, %s6849_s0  ;;  %v4573_v40 = vadd.f32 %v4533_v59, %v4413_v1  ;;  %v4774_v41 = vsel %vm748_vm2, %v4773_v44, %v4772_v29  ;;  %v4775_v47 = vrot.slane %v4576_v38, 4 }
0x132a   :  { %6666 = vtanh.f32 %v4573_v40  ;;  %v4770_v49 = vrot.slane %v4573_v40, 7  ;;  %v4776_v1 = vsel %vm751_vm3, %v4775_v47, %v4774_v41 }
0x132b   :  { %v6663_v33 = vpop.eup %6662  ;;  %v4531_v60 = vpop.permute.xlu1 %4530 }
0x132c   :  { %4624 = vrot.lane.b32.xlu1 %v6663_v33, %s6849_s0  ;;  %v4572_v32 = vadd.f32 %v4531_v60, %v4412_v15 }
0x132e   :  { %6668 = vtanh.f32 %v4572_v32  ;;  %v4769_v27 = vsel %vm763_vm7, %v4572_v32, %v4768_v12  ;;  %v4541_v12 = vpop.permute.xlu0 %4540  ;;  %v4419_v32 = vmul.f32 %v9333_v0, %v9353_v7 }
0x132f   :  { %v9383_v14 = vsel %vm766_vm8, %v4770_v49, %v4769_v27  ;;  %6670 = vtanh.f32 %v4575_v16  ;;  %v4577_v54 = vadd.f32 %v4541_v12, %v4417_v23  ;;  %v4680_v16 = vsel %vm4678_vm14, 1, %v9935_v34 }
0x1330   :  { %6672 = vtanh.f32 %v4576_v38 }
0x1331   :  { %6674 = vtanh.f32 %v4577_v54  ;;  %v4777_v33 = vrot.slane %v4577_v54, 3 }
0x1332   :  { %v4543_v40 = vpop.permute.xlu0 %4542 }
0x1333   :  { %v6665_v39 = vpop.eup %6664  ;;  %v4578_v15 = vadd.f32 %v4543_v40, %v4418_v5  ;;  %v4778_v60 = vsel %vm754_vm4, %v4777_v33, %v4776_v1  ;;  %v9425_v33 = vld [vmem:[%s9863_s1 + $0x8] sm:$0xff] }
0x1334   :  { %4630 = vrot.lane.b32.xlu1 %v6665_v39, %s6849_s0  ;;  %v4420_v39 = vmul.f32 %v9341_v62, %v9358_v61  ;;  %vm4679_vm14 = vcmp.gt.s32.totalorder %v9425_v33, 6 }
0x1335   :  { %6676 = vtanh.f32 %v4578_v15  ;;  %v4779_v43 = vrot.slane %v4578_v15, 2  ;;  %v4681_v15 = vsel %vm4679_vm14, 1, %v9935_v34 }
0x1336   :  { %v4545_v49 = vpop.permute.xlu0 %4544 }
0x1337   :  { %v6667_v59 = vpop.eup %6666  ;;  %v4579_v29 = vadd.f32 %v4545_v49, %v4419_v32  ;;  %v4780_v27 = vsel %vm757_vm5, %v4779_v43, %v4778_v60 }
0x1338   :  { %4628 = vrot.lane.b32.xlu1 %v6667_v59, %s6849_s0 }
0x1339   :  { %6678 = vtanh.f32 %v4579_v29  ;;  %v4781_v44 = vrot.slane %v4579_v29, 1 }
0x133a   :  { %v4549_v24 = vpop.permute.xlu0 %4548 }
0x133b   :  { %v6669_v20 = vpop.eup %6668  ;;  %v4581_v38 = vadd.f32 %v4549_v24, %v4421_v53  ;;  %v4782_v41 = vsel %vm760_vm6, %v4781_v44, %v4780_v27 }
0x133c   :  { %4626 = vrot.lane.b32.xlu1 %v6669_v20, %s6849_s0  ;;  %v6671_v31 = vpop.eup %6670 }
0x133d   :  { %4632 = vrot.lane.b32.xlu0 %v6671_v31, %s6849_s0  ;;  %v6673_v7 = vpop.eup %6672  ;;  %6680 = vtanh.f32 %v4581_v38  ;;  %v4784_v18 = vrot.slane %v4581_v38, 7 }
0x133e   :  { %v6675_v23 = vpop.eup %6674  ;;  %v4547_v47 = vpop.permute.xlu0 %4546 }
0x133f   :  { %v4580_v12 = vadd.f32 %v4547_v47, %v4420_v39 }
0x1340   :  { %4683 = vperm.xlu1 %5775, %v4680_v16  }
0x1341   :  { %4634 = vrot.lane.b32.xlu0 %v6673_v7, %s6849_s0  ;;  %6682 = vtanh.f32 %v4580_v12  ;;  %v4783_v54 = vsel %vm763_vm7, %v4580_v12, %v4782_v41 }
0x1342   :  { %v6677_v1 = vpop.eup %6676  ;;  %v9417_v59 = vsel %vm766_vm8, %v4784_v18, %v4783_v54 }
0x1345   :  { %4636 = vrot.lane.b32.xlu0 %v6675_v23, %s6849_s0 }
0x1346   :  { %v6679_v5 = vpop.eup %6678 }
0x1349   :  { %4638 = vrot.lane.b32.xlu0 %v6677_v1, %s6849_s0 }
0x134a   :  { %v6681_v61 = vpop.eup %6680 }
0x134d   :  { %4640 = vrot.lane.b32.xlu0 %v6679_v5, %s6849_s0 }
0x134e   :  { %v6683_v40 = vpop.eup %6682 }
0x1351   :  { %4644 = vrot.lane.b32.xlu0 %v6681_v61, %s6849_s0 }
0x1355   :  { %4642 = vrot.lane.b32.xlu0 %v6683_v40, %s6849_s0 }
0x1359   :  { %4686 = vperm.xlu0 %5774, %v4681_v15  }
0x138e   :  { %v4615_v60 = vpop.permute.xlu1 %4614 }
0x138f   :  { %v4617_v31 = vpop.permute.xlu0 %4616  ;;  %v4662_v16 = vmul.f32 %v9272_v56, %v4615_v60 }
0x1390   :  { %v4663_v29 = vmul.f32 %v9279_v25, %v4617_v31 }
0x1391   :  { %v4706_v24 = vrot.slane %v4662_v16, 6 }
0x1392   :  { %v4619_v20 = vpop.permute.xlu1 %4618  ;;  %v4707_v38 = vrot.slane %v4663_v29, 5 }
0x1393   :  { %v4664_v27 = vmul.f32 %v9281_v8, %v4619_v20 }
0x1394   :  { %v4708_v18 = vsel %vm748_vm2, %v4707_v38, %v4706_v24 }
0x1395   :  { %v4709_v39 = vrot.slane %v4664_v27, 4 }
0x1396   :  { %v4621_v32 = vpop.permute.xlu1 %4620 }
0x1397   :  { %v4665_v53 = vmul.f32 %v9288_v46, %v4621_v32  ;;  %v4710_v8 = vsel %vm751_vm3, %v4709_v39, %v4708_v18 }
0x1399   :  { %v4711_v23 = vrot.slane %v4665_v53, 3 }
0x139a   :  { %v4623_v43 = vpop.permute.xlu1 %4622 }
0x139b   :  { %v4666_v7 = vmul.f32 %v9293_v28, %v4623_v43  ;;  %v4712_v46 = vsel %vm754_vm4, %v4711_v23, %v4710_v8 }
0x139d   :  { %v4713_v12 = vrot.slane %v4666_v7, 2 }
0x139e   :  { %v4625_v49 = vpop.permute.xlu1 %4624 }
0x139f   :  { %v4667_v41 = vmul.f32 %v9298_v36, %v4625_v49  ;;  %v4714_v28 = vsel %vm757_vm5, %v4713_v12, %v4712_v46 }
0x13a1   :  { %v4715_v56 = vrot.slane %v4667_v41, 1 }
0x13a3   :  { %v4716_v36 = vsel %vm760_vm6, %v4715_v56, %v4714_v28 }
0x13a6   :  { %v4631_v44 = vpop.permute.xlu1 %4630 }
0x13a7   :  { %v4670_v60 = vmul.f32 %v9305_v52, %v4631_v44 }
0x13aa   :  { %v4629_v47 = vpop.permute.xlu1 %4628 }
0x13ab   :  { %v4669_v25 = vmul.f32 %v9309_v37, %v4629_v47 }
0x13ad   :  { %v4718_v61 = vrot.slane %v4669_v25, 7 }
0x13ae   :  { %v4627_v54 = vpop.permute.xlu1 %4626 }
0x13af   :  { %v4668_v1 = vmul.f32 %v9313_v13, %v4627_v54  ;;  %v4633_v5 = vpop.permute.xlu0 %4632  ;;  %v4720_v13 = vrot.slane %v4670_v60, 6 }
0x13b0   :  { %v4671_v20 = vmul.f32 %v9316_v45, %v4633_v5 }
0x13b1   :  { %v4717_v40 = vsel %vm763_vm7, %v4668_v1, %v4716_v36 }
0x13b2   :  { %v4719_v15 = vsel %vm766_vm8, %v4718_v61, %v4717_v40  ;;  %v4721_v31 = vrot.slane %v4671_v20, 5 }
0x13b3   :  { %4734 = vrot.lane.b32.xlu1 %v4719_v15, %s6850_s4  ;;  %v4635_v37 = vpop.permute.xlu0 %4634 }
0x13b4   :  { %v4672_v43 = vmul.f32 %v9321_v9, %v4635_v37  ;;  %v4722_v29 = vsel %vm748_vm2, %v4721_v31, %v4720_v13 }
0x13b6   :  { %v4723_v27 = vrot.slane %v4672_v43, 4 }
0x13b7   :  { %4786 = vrot.lane.b32.xlu1 %v9383_v14, %s6851_s26  ;;  %v4637_v32 = vpop.permute.xlu0 %4636 }
0x13b8   :  { %v4673_v49 = vmul.f32 %v9325_v48, %v4637_v32  ;;  %v4724_v52 = vsel %vm751_vm3, %v4723_v27, %v4722_v29 }
0x13ba   :  { %v4725_v44 = vrot.slane %v4673_v49, 3 }
0x13bb   :  { %v4639_v16 = vpop.permute.xlu0 %4638 }
0x13bc   :  { %v4674_v53 = vmul.f32 %v9329_v11, %v4639_v16  ;;  %v4726_v7 = vsel %vm754_vm4, %v4725_v44, %v4724_v52 }
0x13be   :  { %v4727_v24 = vrot.slane %v4674_v53, 2 }
0x13bf   :  { %v4641_v45 = vpop.permute.xlu0 %4640 }
0x13c0   :  { %v4675_v14 = vmul.f32 %v9333_v0, %v4641_v45  ;;  %v4728_v9 = vsel %vm757_vm5, %v4727_v24, %v4726_v7  ;;  %v9466_v0 = vpop.permute.xlu1 %4683 }
0x13c1   :  { %vm4688_vm14 = vcmp.eq.s32.totalorder %v9466_v0, 1  ;;  %v9991_v0 = vld [vmem:[#allocation8_spill] sm:$0xff] }
0x13c2   :  { %v4729_v41 = vrot.slane %v4675_v14, 1 }
0x13c3   :  { %v4645_v38 = vpop.permute.xlu0 %4644 }
0x13c4   :  { %v4677_v48 = vmul.f32 %v9337_v10, %v4645_v38  ;;  %v4730_v39 = vsel %vm760_vm6, %v4729_v41, %v4728_v9 }
0x13c6   :  { %v4732_v47 = vrot.slane %v4677_v48, 7 }
0x13c7   :  { %v4643_v23 = vpop.permute.xlu0 %4642 }
0x13c8   :  { %v4676_v11 = vmul.f32 %v9341_v62, %v4643_v23  ;;  %v9989_v23 = vld [vmem:[#allocation9_spill] sm:$0xff] }
0x13ca   :  { %v4731_v12 = vsel %vm763_vm7, %v4676_v11, %v4730_v39 }
0x13cb   :  { %v4733_v18 = vsel %vm766_vm8, %v4732_v47, %v4731_v12  ;;  %v9990_v47 = vld [vmem:[#allocation11_spill] sm:$0xff] }
0x13cc   :  { %4736 = vrot.lane.b32.xlu0 %v4733_v18, %s6850_s4 }
0x13d0   :  { %4788 = vrot.lane.b32.xlu0 %v9417_v59, %s6851_s26 }
0x13d4   :  { %v9473_v62 = vpop.permute.xlu0 %4686 }
0x13d5   :  { %vm4689_vm13 = vcmp.eq.s32.totalorder %v9473_v62, 1 }
0x1425   :  { %v4735_v10 = vpop.permute.xlu1 %4734 }
0x1426   :  { %v9471_v56 = vsel %vm4688_vm14, %v4735_v10, 0.0  ;;  %v9478_v25 = vsel %vm4688_vm14, %v4735_v10, %v9122_v4 }
0x1429   :  { %v4787_v14 = vpop.permute.xlu1 %4786 }
0x142a   :  { %v9563_v9 = vsel %vm4688_vm14, %v4787_v14, %v9203_v55  ;;  %vm5338_vm14 = vcmp.gt.s32.totalorder %v9425_v33, 7 }
0x142b   :  { %v5003_v39 = vrot.slane %v9563_v9, 1 }
0x143e   :  { %v4737_v8 = vpop.permute.xlu0 %4736 }
0x143f   :  { %v9484_v59 = vsel %vm4689_vm13, %v4737_v8, %v9128_v6  ;;  %v9488_v46 = vsel %vm4689_vm13, %v4737_v8, 0.0  ;;  %v5005_v8 = vrot.slane %v9563_v9, 3 }
0x1440   :  { %v4796_v54 = vpack.c.bf16 %v9484_v59, %v9478_v25 }
0x1442   :  { %5762 = vmatmul.mubr.msk.bf16.vlgmr.msra.gmra.mxu1 %vm103_vm1, %v4796_v54 }
0x1502   :  { %v4834_v28 = vpop.f32.mrf.mxu1 }
0x1503   :  { %v4843_v4 = vrot.slane %v4834_v28, 1  ;;  %v4844_v6 = vrot.slane %v4834_v28, 2  ;;  %v4845_v40 = vrot.slane %v4834_v28, 3  ;;  %v4846_v37 = vrot.slane %v4834_v28, 4 }
0x1504   :  { %v5763_v1 = vpop.f32.mrf.mxu1  ;;  %v4847_v20 = vrot.slane %v4834_v28, 5  ;;  %v4848_v13 = vrot.slane %v4834_v28, 6 }
0x1505   :  { %v9494_v5 = vadd.f32 %v4843_v4, %v6963_v21  ;;  %v9500_v15 = vadd.f32 %v4844_v6, %v6980_v30  ;;  %v9503_v60 = vadd.f32 %v4845_v40, %v6959_v17  ;;  %v9507_v21 = vadd.f32 %v4846_v37, %v6972_v26 }
0x1506   :  { %v9496_v36 = vpop.f32.mrf.mxu1  ;;  %v9511_v43 = vadd.f32 %v4847_v20, %v6988_v35  ;;  %v4849_v30 = vrot.slane %v4834_v28, 7  ;;  %v9516_v17 = vadd.f32 %v4848_v13, %v7000_v42  ;;  %v5007_v1 = vrot.slane %v9563_v9, 5 }
0x1507   :  { %6684 = vtanh.f32 %v9494_v5  ;;  %v4850_v35 = vrot.slane %v9496_v36, 1  ;;  %v4851_v53 = vrot.slane %v9496_v36, 2  ;;  %v9539_v52 = vadd.f32 %v9496_v36, %v9988_v51 }
0x1508   :  { %v5764_v61 = vpop.f32.mrf.mxu1  ;;  %6686 = vtanh.f32 %v9500_v15  ;;  %v9520_v26 = vadd.f32 %v4849_v30, %v7042_v2  ;;  %v9533_v2 = vadd.f32 %v4834_v28, %v9965_v50  ;;  %v4852_v44 = vrot.slane %v9496_v36, 3 }
0x1509   :  { %6688 = vtanh.f32 %v9503_v60  ;;  %v9529_v42 = vadd.f32 %v4850_v35, %v9963_v63  ;;  %v9545_v45 = vadd.f32 %v4851_v53, %v7030_v57  ;;  %v4853_v50 = vrot.slane %v9496_v36, 4 }
0x150a   :  { %6690 = vtanh.f32 %v9507_v21  ;;  %v9551_v7 = vadd.f32 %v4852_v44, %v9962_v3  ;;  %v4854_v24 = vrot.slane %v9496_v36, 5  ;;  %v4789_v3 = vpop.permute.xlu0 %4788  ;;  %v4855_v41 = vrot.slane %v9496_v36, 6 }
0x150b   :  { %6692 = vtanh.f32 %v9511_v43  ;;  %v9557_v57 = vadd.f32 %v4853_v50, %v9964_v58  ;;  %v9575_v11 = vsel %vm4689_vm13, %v4789_v3, %v9989_v23  ;;  %v4856_v55 = vrot.slane %v9496_v36, 7 }
0x150c   :  { %6694 = vtanh.f32 %v9516_v17  ;;  %v9568_v48 = vadd.f32 %v4854_v24, %v9984_v22  ;;  %v9581_v12 = vadd.f32 %v4855_v41, %v9990_v47  ;;  %v5010_v18 = vrot.slane %v9575_v11, 1 }
0x150d   :  { %6696 = vtanh.f32 %v9520_v26  ;;  %v9588_v10 = vadd.f32 %v4856_v55, %v9991_v0  ;;  %v5006_v28 = vrot.slane %v9563_v9, 4  ;;  %v5008_v6 = vrot.slane %v9563_v9, 6 }
0x150e   :  { %6698 = vtanh.f32 %v9529_v42  ;;  %v5009_v40 = vrot.slane %v9563_v9, 7  ;;  %v5004_v37 = vrot.slane %v9563_v9, 2  ;;  %v5011_v20 = vrot.slane %v9575_v11, 2 }
0x150f   :  { %6700 = vtanh.f32 %v9533_v2  ;;  %v5631_v13 = vmul.f32 -1.442695, %v9494_v5  ;;  %v5013_v30 = vrot.slane %v9575_v11, 4  ;;  %v5015_v35 = vrot.slane %v9575_v11, 6 }
0x1510   :  { %6702 = vtanh.f32 %v9539_v52  ;;  %v5016_v5 = vrot.slane %v9575_v11, 7  ;;  %v5635_v53 = vmul.f32 -1.442695, %v9511_v43  ;;  %v5637_v44 = vmul.f32 -1.442695, %v9520_v26 }
0x1511   :  { %6704 = vtanh.f32 %v9545_v45  ;;  %v5639_v24 = vmul.f32 -1.442695, %v9529_v42  ;;  %v5640_v42 = vmul.f32 -1.442695, %v9545_v45  ;;  %vm5337_vm13 = vcmp.gt.s32.totalorder %v9398_v19, 7 }
0x1512   :  { %6706 = vtanh.f32 %v9551_v7 }
0x1513   :  { %6708 = vtanh.f32 %v9557_v57 }
0x1514   :  { %v6685_v32 = vpop.eup %6684  ;;  %6710 = vtanh.f32 %v9568_v48 }
0x1515   :  { %5097 = vrot.lane.b32.xlu1 %v6685_v32, %s6849_s0  ;;  %v6687_v31 = vpop.eup %6686  ;;  %6712 = vtanh.f32 %v9581_v12  ;;  %v5012_v32 = vrot.slane %v9575_v11, 3 }
0x1516   :  { %v6689_v49 = vpop.eup %6688  ;;  %5099 = vrot.lane.b32.xlu0 %v6687_v31, %s6849_s0  ;;  %6714 = vtanh.f32 %v9588_v10  ;;  %v5014_v31 = vrot.slane %v9575_v11, 5 }
0x1517   :  { %v6691_v16 = vpop.eup %6690  ;;  %6716 = vpow2.f32 %v5631_v13 }
0x1518   :  { %v6693_v29 = vpop.eup %6692 }
0x1519   :  { %5101 = vrot.lane.b32.xlu1 %v6689_v49, %s6849_s0  ;;  %v6695_v27 = vpop.eup %6694  ;;  %v5632_v49 = vmul.f32 -1.442695, %v9500_v15  ;;  %v5636_v15 = vmul.f32 -1.442695, %v9516_v17 }
0x151a   :  { %v6697_v63 = vpop.eup %6696 }
0x151b   :  { %v6699_v51 = vpop.eup %6698  ;;  %6718 = vpow2.f32 %v5632_v49 }
0x151c   :  { %v6701_v38 = vpop.eup %6700 }
0x151d   :  { %5103 = vrot.lane.b32.xlu1 %v6691_v16, %s6849_s0  ;;  %v6703_v58 = vpop.eup %6702  ;;  %v5633_v16 = vmul.f32 -1.442695, %v9503_v60 }
0x151e   :  { %5127 = vrot.lane.b32.xlu0 %v6703_v58, %s6849_s0  ;;  %v6705_v22 = vpop.eup %6704 }
0x151f   :  { %v6707_v62 = vpop.eup %6706  ;;  %6720 = vpow2.f32 %v5633_v16 }
0x1520   :  { %v6709_v54 = vpop.eup %6708 }
0x1521   :  { %5105 = vrot.lane.b32.xlu1 %v6693_v29, %s6849_s0  ;;  %v6711_v4 = vpop.eup %6710  ;;  %v5634_v29 = vmul.f32 -1.442695, %v9507_v21 }
0x1522   :  { %5115 = vrot.lane.b32.xlu0 %v6705_v22, %s6849_s0  ;;  %v6713_v36 = vpop.eup %6712 }
0x1523   :  { %v6715_v61 = vpop.eup %6714  ;;  %6722 = vpow2.f32 %v5634_v29 }
0x1524   :  { %6724 = vpow2.f32 %v5635_v53 }
0x1525   :  { %5107 = vrot.lane.b32.xlu1 %v6695_v27, %s6849_s0  ;;  %v6717_v27 = vpop.eup %6716 }
0x1526   :  { %5117 = vrot.lane.b32.xlu0 %v6707_v62, %s6849_s0 }
0x1528   :  { %v6719_v60 = vpop.eup %6718 }
0x1529   :  { %5109 = vrot.lane.b32.xlu1 %v6697_v63, %s6849_s0  ;;  %v4937_v63 = vadd.f32 1.0, %v6717_v27 }
0x152a   :  { %5119 = vrot.lane.b32.xlu0 %v6709_v54, %s6849_s0  ;;  %v5641_v54 = vmul.f32 -1.442695, %v9551_v7 }
0x152b   :  { %6726 = vrcp.f32 %v4937_v63 }
0x152c   :  { %6728 = vpow2.f32 %v5636_v15  ;;  %v6721_v50 = vpop.eup %6720 }
0x152d   :  { %5113 = vrot.lane.b32.xlu1 %v6699_v51, %s6849_s0  ;;  %v4938_v51 = vadd.f32 1.0, %v6719_v60  ;;  %6730 = vpow2.f32 %v5637_v44  ;;  %v4939_v14 = vadd.f32 1.0, %v6721_v50 }
0x152e   :  { %5121 = vrot.lane.b32.xlu0 %v6711_v4, %s6849_s0 }
0x152f   :  { %6732 = vrcp.f32 %v4938_v51 }
0x1530   :  { %v6723_v21 = vpop.eup %6722  ;;  %6734 = vrcp.f32 %v4939_v14 }
0x1531   :  { %5111 = vrot.lane.b32.xlu1 %v6701_v38, %s6849_s0  ;;  %v4940_v38 = vadd.f32 1.0, %v6723_v21  ;;  %v6725_v43 = vpop.eup %6724  ;;  %6736 = vpow2.f32 %v5639_v24 }
0x1532   :  { %5123 = vrot.lane.b32.xlu0 %v6713_v36, %s6849_s0  ;;  %v4941_v41 = vadd.f32 1.0, %v6725_v43 }
0x1533   :  { %6738 = vrcp.f32 %v4940_v38 }
0x1534   :  { %6740 = vrcp.f32 %v4941_v41 }
0x1535   :  { %5017 = vrot.lane.b32.xlu1 %v5003_v39, %s6850_s4  ;;  %v5638_v39 = vmul.f32 -1.442695, %v9533_v2 }
0x1536   :  { %5125 = vrot.lane.b32.xlu0 %v6715_v61, %s6849_s0 }
0x1537   :  { %6742 = vpow2.f32 %v5638_v39 }
0x1538   :  { %v9629_v3 = vpop.eup %6726 }
0x1539   :  { %5033 = vrot.lane.b32.xlu1 %v5010_v18, %s6850_s4  ;;  %v6729_v26 = vpop.eup %6728 }
0x153a   :  { %5019 = vrot.lane.b32.xlu0 %v5004_v37, %s6850_s4  ;;  %v4942_v23 = vadd.f32 1.0, %v6729_v26  ;;  %v6731_v55 = vpop.eup %6730 }
0x153b   :  { %v4943_v22 = vadd.f32 1.0, %v6731_v55 }
0x153c   :  { %v9635_v47 = vpop.eup %6732  ;;  %6744 = vrcp.f32 %v4942_v23 }
0x153d   :  { %5021 = vrot.lane.b32.xlu1 %v5005_v8, %s6850_s4  ;;  %v9637_v0 = vpop.eup %6734  ;;  %6746 = vpow2.f32 %v5640_v42 }
0x153e   :  { %5035 = vrot.lane.b32.xlu0 %v5011_v20, %s6850_s4  ;;  %6748 = vrcp.f32 %v4943_v22 }
0x153f   :  { %6750 = vpow2.f32 %v5641_v54 }
0x1541   :  { %5023 = vrot.lane.b32.xlu1 %v5006_v28, %s6850_s4  ;;  %v6737_v28 = vpop.eup %6736 }
0x1542   :  { %5037 = vrot.lane.b32.xlu0 %v5012_v32, %s6850_s4  ;;  %v9644_v45 = vpop.eup %6738 }
0x1543   :  { %v9651_v7 = vpop.eup %6740 }
0x1544   :  { %v6743_v20 = vpop.eup %6742 }
0x1545   :  { %5025 = vrot.lane.b32.xlu1 %v5007_v1, %s6850_s4  ;;  %v5642_v1 = vmul.f32 -1.442695, %v9557_v57 }
0x1546   :  { %5039 = vrot.lane.b32.xlu0 %v5013_v30, %s6850_s4 }
0x1547   :  { %6752 = vpow2.f32 %v5642_v1 }
0x1549   :  { %5027 = vrot.lane.b32.xlu1 %v5008_v6, %s6850_s4  ;;  %v4945_v6 = vadd.f32 1.0, %v6737_v28  ;;  %v9656_v57 = vpop.eup %6744 }
0x154a   :  { %5041 = vrot.lane.b32.xlu0 %v5014_v31, %s6850_s4  ;;  %v6747_v30 = vpop.eup %6746  ;;  %v4944_v31 = vadd.f32 1.0, %v6743_v20 }
0x154b   :  { %6754 = vrcp.f32 %v4945_v6  ;;  %v9661_v49 = vpop.eup %6748  ;;  %v4946_v16 = vadd.f32 1.0, %v6747_v30 }
0x154c   :  { %v6751_v29 = vpop.eup %6750 }
0x154d   :  { %5029 = vrot.lane.b32.xlu1 %v5009_v40, %s6850_s4  ;;  %v5643_v40 = vmul.f32 -1.442695, %v9568_v48  ;;  %v5645_v48 = vmul.f32 -1.442695, %v9588_v10  ;;  %v4947_v27 = vadd.f32 1.0, %v6751_v29 }
0x154e   :  { %5043 = vrot.lane.b32.xlu0 %v5015_v35, %s6850_s4 }
0x154f   :  { %6756 = vpow2.f32 %v5643_v40 }
0x1552   :  { %5045 = vrot.lane.b32.xlu0 %v5016_v5, %s6850_s4 }
0x1554   :  { %v6753_v53 = vpop.eup %6752 }
0x1555   :  { %v4948_v60 = vadd.f32 1.0, %v6753_v53 }
0x1558   :  { %v9667_v63 = vpop.eup %6754 }
0x155c   :  { %v6757_v44 = vpop.eup %6756 }
0x155d   :  { %v4949_v50 = vadd.f32 1.0, %v6757_v44 }
0x1587   :  { %v5098_v17 = vpop.permute.xlu1 %5097 }
0x1588   :  { %v5145_v58 = vmul.f32 %v9629_v3, %v5098_v17  ;;  %v5100_v18 = vpop.permute.xlu0 %5099 }
0x1589   :  { %v5146_v62 = vmul.f32 %v9635_v47, %v5100_v18 }
0x158a   :  { %5177 = vrot.lane.b32.xlu1 %v5145_v58, %s6850_s4 }
0x158b   :  { %v5102_v8 = vpop.permute.xlu1 %5101  ;;  %5179 = vrot.lane.b32.xlu0 %v5146_v62, %s6850_s4 }
0x158c   :  { %v5147_v2 = vmul.f32 %v9637_v0, %v5102_v8 }
0x158e   :  { %5181 = vrot.lane.b32.xlu1 %v5147_v2, %s6850_s4 }
0x158f   :  { %v5104_v4 = vpop.permute.xlu1 %5103  ;;  %5047 = vrot.lane.b32.xlu0 %v9575_v11, %s6850_s4  ;;  %v5644_v11 = vmul.f32 -1.442695, %v9581_v12  ;;  %v5646_v12 = vmul.f32 -1.442695, %v9539_v52 }
0x1590   :  { %v5148_v36 = vmul.f32 %v9644_v45, %v5104_v4  ;;  %v5128_v21 = vpop.permute.xlu0 %5127 }
0x1591   :  { %6758 = vpow2.f32 %v5644_v11 }
0x1592   :  { %5183 = vrot.lane.b32.xlu1 %v5148_v36, %s6850_s4  ;;  %6760 = vrcp.f32 %v4944_v31 }
0x1593   :  { %v5106_v61 = vpop.permute.xlu1 %5105  ;;  %6762 = vpow2.f32 %v5645_v48 }
0x1594   :  { %v5149_v37 = vmul.f32 %v9651_v7, %v5106_v61  ;;  %6764 = vrcp.f32 %v4946_v16  ;;  %v5116_v41 = vpop.permute.xlu0 %5115 }
0x1595   :  { %6766 = vpow2.f32 %v5646_v12 }
0x1596   :  { %5185 = vrot.lane.b32.xlu1 %v5149_v37, %s6850_s4  ;;  %6768 = vrcp.f32 %v4947_v27 }
0x1597   :  { %v5108_v32 = vpop.permute.xlu1 %5107  ;;  %6770 = vrcp.f32 %v4948_v60 }
0x1598   :  { %v5150_v13 = vmul.f32 %v9656_v57, %v5108_v32  ;;  %6772 = vrcp.f32 %v4949_v50  ;;  %v5118_v23 = vpop.permute.xlu0 %5117 }
0x159a   :  { %5187 = vrot.lane.b32.xlu1 %v5150_v13, %s6850_s4 }
0x159b   :  { %v5110_v35 = vpop.permute.xlu1 %5109 }
0x159c   :  { %v5151_v5 = vmul.f32 %v9661_v49, %v5110_v35  ;;  %v5120_v18 = vpop.permute.xlu0 %5119 }
0x159e   :  { %5189 = vrot.lane.b32.xlu1 %v5151_v5, %s6850_s4  ;;  %v6759_v14 = vpop.eup %6758 }
0x159f   :  { %v5114_v15 = vpop.permute.xlu1 %5113  ;;  %v9673_v52 = vpop.eup %6760  ;;  %v4950_v43 = vadd.f32 1.0, %v6759_v14 }
0x15a0   :  { %v5153_v10 = vmul.f32 %v9667_v63, %v5114_v15  ;;  %v6763_v38 = vpop.eup %6762  ;;  %v5122_v54 = vpop.permute.xlu0 %5121 }
0x15a1   :  { %v9676_v17 = vpop.eup %6764  ;;  %v4951_v39 = vadd.f32 1.0, %v6763_v38  ;;  %6774 = vrcp.f32 %v4950_v43 }
0x15a2   :  { %5193 = vrot.lane.b32.xlu1 %v5153_v10, %s6850_s4  ;;  %v5154_v58 = vmul.f32 %v9676_v17, %v5116_v41  ;;  %v6767_v26 = vpop.eup %6766 }
0x15a3   :  { %v5112_v51 = vpop.permute.xlu1 %5111  ;;  %v4952_v42 = vadd.f32 1.0, %v6767_v26  ;;  %6776 = vrcp.f32 %v4951_v39 }
0x15a4   :  { %v5152_v24 = vmul.f32 %v9673_v52, %v5112_v51  ;;  %5195 = vrot.lane.b32.xlu0 %v5154_v58, %s6850_s4  ;;  %v5124_v4 = vpop.permute.xlu0 %5123 }
0x15a5   :  { %6778 = vrcp.f32 %v4952_v42 }
0x15a6   :  { %5031 = vrot.lane.b32.xlu1 %v9563_v9, %s6850_s4  ;;  %v9681_v9 = vpop.eup %6768 }
0x15a7   :  { %v5155_v55 = vmul.f32 %v9681_v9, %v5118_v23  ;;  %v9685_v22 = vpop.eup %6770  ;;  %v5018_v20 = vpop.permute.xlu1 %5017 }
0x15a8   :  { %v5156_v62 = vmul.f32 %v9685_v22, %v5120_v18  ;;  %v9689_v8 = vpop.eup %6772  ;;  %v5126_v6 = vpop.permute.xlu0 %5125  ;;  %v5065_v27 = vmul.f32 %v9629_v3, %v5018_v20 }
0x15a9   :  { %5197 = vrot.lane.b32.xlu0 %v5155_v55, %s6850_s4  ;;  %v5157_v2 = vmul.f32 %v9689_v8, %v5122_v54 }
0x15aa   :  { %5191 = vrot.lane.b32.xlu1 %v5152_v24, %s6850_s4 }
0x15ab   :  { %v5034_v32 = vpop.permute.xlu1 %5033 }
0x15ac   :  { %v5020_v11 = vpop.permute.xlu0 %5019 }
0x15ad   :  { %5199 = vrot.lane.b32.xlu0 %v5156_v62, %s6850_s4  ;;  %v5066_v44 = vmul.f32 %v9635_v47, %v5020_v11 }
0x15ae   :  { %v9693_v28 = vpop.eup %6774 }
0x15af   :  { %v5158_v1 = vmul.f32 %v9693_v28, %v5124_v4  ;;  %v5022_v13 = vpop.permute.xlu1 %5021 }
0x15b0   :  { %v9697_v36 = vpop.eup %6776  ;;  %v5036_v30 = vpop.permute.xlu0 %5035  ;;  %v5067_v50 = vmul.f32 %v9637_v0, %v5022_v13 }
0x15b1   :  { %5201 = vrot.lane.b32.xlu0 %v5157_v2, %s6850_s4  ;;  %v5159_v61 = vmul.f32 %v9697_v36, %v5126_v6 }
0x15b2   :  { %v9701_v40 = vpop.eup %6778 }
0x15b3   :  { %v5160_v37 = vmul.f32 %v9701_v40, %v5128_v21  ;;  %v5024_v31 = vpop.permute.xlu1 %5023 }
0x15b4   :  { %v5038_v48 = vpop.permute.xlu0 %5037  ;;  %v5068_v38 = vmul.f32 %v9644_v45, %v5024_v31 }
0x15b5   :  { %5203 = vrot.lane.b32.xlu0 %v5158_v1, %s6850_s4  ;;  %v5073_v1 = vmul.f32 %v9667_v63, %v5034_v32  ;;  %v5074_v32 = vmul.f32 %v9676_v17, %v5036_v30 }
0x15b7   :  { %v5026_v35 = vpop.permute.xlu1 %5025 }
0x15b8   :  { %v9705_v16 = vpop.permute.xlu0 %5039  ;;  %v5069_v26 = vmul.f32 %v9651_v7, %v5026_v35 }
0x15b9   :  { %5205 = vrot.lane.b32.xlu0 %v5159_v61, %s6850_s4 }
0x15bb   :  { %v5028_v5 = vpop.permute.xlu1 %5027 }
0x15bc   :  { %v9707_v29 = vpop.permute.xlu0 %5041  ;;  %v5070_v55 = vmul.f32 %v9656_v57, %v5028_v5 }
0x15bd   :  { %5207 = vrot.lane.b32.xlu0 %v5160_v37, %s6850_s4  ;;  %v5077_v30 = vmul.f32 %v9689_v8, %v9707_v29 }
0x15bf   :  { %v5030_v12 = vpop.permute.xlu1 %5029 }
0x15c0   :  { %v9710_v53 = vpop.permute.xlu0 %5043  ;;  %v5071_v37 = vmul.f32 %v9661_v49, %v5030_v12 }
0x15c4   :  { %v9712_v60 = vpop.permute.xlu0 %5045 }
0x15c5   :  { %v5079_v29 = vmul.f32 %v9697_v36, %v9712_v60 }
0x15fc   :  { %v5178_v15 = vpop.permute.xlu1 %5177 }
0x15fd   :  { %v5225_v10 = vadd.f32 %v5178_v15, %v5065_v27  ;;  %v5180_v51 = vpop.permute.xlu0 %5179 }
0x15fe   :  { %v5226_v14 = vadd.f32 %v5180_v51, %v5066_v44  ;;  %v5075_v44 = vmul.f32 %v9681_v9, %v5038_v48 }
0x15ff   :  { %6780 = vtanh.f32 %v5225_v10 }
0x1600   :  { %v5182_v21 = vpop.permute.xlu1 %5181  ;;  %6782 = vtanh.f32 %v5226_v14 }
0x1601   :  { %v5227_v24 = vadd.f32 %v5182_v21, %v5067_v50  ;;  %v5048_v35 = vpop.permute.xlu0 %5047  ;;  %v5076_v21 = vmul.f32 %v9685_v22, %v9705_v16  ;;  %v5078_v16 = vmul.f32 %v9693_v28, %v9710_v53 }
0x1602   :  { %v5080_v53 = vmul.f32 %v9701_v40, %v5048_v35 }
0x1603   :  { %6784 = vtanh.f32 %v5227_v24 }
0x1604   :  { %v5184_v43 = vpop.permute.xlu1 %5183 }
0x1605   :  { %v5228_v41 = vadd.f32 %v5184_v43, %v5068_v38 }
0x1607   :  { %6786 = vtanh.f32 %v5228_v41 }
0x1608   :  { %v5186_v39 = vpop.permute.xlu1 %5185 }
0x1609   :  { %v5229_v23 = vadd.f32 %v5186_v39, %v5069_v26  ;;  %v5339_v26 = vsel %vm5337_vm13, 1, %v9935_v34 }
0x160b   :  { %6788 = vtanh.f32 %v5229_v23 }
0x160c   :  { %v6781_v58 = vpop.eup %6780  ;;  %v5188_v42 = vpop.permute.xlu1 %5187 }
0x160d   :  { %5273 = vrot.lane.b32.xlu1 %v6781_v58, %s6849_s0  ;;  %v5230_v18 = vadd.f32 %v5188_v42, %v5070_v55  ;;  %v6783_v62 = vpop.eup %6782 }
0x160e   :  { %5275 = vrot.lane.b32.xlu0 %v6783_v62, %s6849_s0 }
0x160f   :  { %6790 = vtanh.f32 %v5230_v18 }
0x1610   :  { %v6785_v54 = vpop.eup %6784  ;;  %v5190_v2 = vpop.permute.xlu1 %5189 }
0x1611   :  { %5277 = vrot.lane.b32.xlu1 %v6785_v54, %s6849_s0  ;;  %v5231_v11 = vadd.f32 %v5190_v2, %v5071_v37 }
0x1614   :  { %v6787_v4 = vpop.eup %6786  ;;  %v5194_v6 = vpop.permute.xlu1 %5193 }
0x1615   :  { %5279 = vrot.lane.b32.xlu1 %v6787_v4, %s6849_s0  ;;  %v5233_v20 = vadd.f32 %v5194_v6, %v5073_v1 }
0x1616   :  { %v5196_v10 = vpop.permute.xlu0 %5195 }
0x1617   :  { %6792 = vtanh.f32 %v5233_v20  ;;  %v5234_v12 = vadd.f32 %v5196_v10, %v5074_v32 }
0x1618   :  { %v6789_v61 = vpop.eup %6788  ;;  %v5032_v13 = vpop.permute.xlu1 %5031  ;;  %6794 = vtanh.f32 %v5231_v11 }
0x1619   :  { %5281 = vrot.lane.b32.xlu1 %v6789_v61, %s6849_s0  ;;  %v5072_v5 = vmul.f32 %v9673_v52, %v5032_v13  ;;  %v5340_v61 = vsel %vm5338_vm14, 1, %v9935_v34 }
0x161b   :  { %v5198_v50 = vpop.permute.xlu0 %5197 }
0x161c   :  { %v6791_v31 = vpop.eup %6790  ;;  %v5192_v27 = vpop.permute.xlu1 %5191  ;;  %v5235_v14 = vadd.f32 %v5198_v50, %v5075_v44 }
0x161d   :  { %5283 = vrot.lane.b32.xlu1 %v6791_v31, %s6849_s0  ;;  %v5232_v15 = vadd.f32 %v5192_v27, %v5072_v5 }
0x161f   :  { %6796 = vtanh.f32 %v5232_v15  ;;  %v5200_v24 = vpop.permute.xlu0 %5199 }
0x1620   :  { %6798 = vtanh.f32 %v5234_v12  ;;  %v5236_v43 = vadd.f32 %v5200_v24, %v5076_v21 }
0x1621   :  { %6800 = vtanh.f32 %v5235_v14 }
0x1622   :  { %6802 = vtanh.f32 %v5236_v43 }
0x1623   :  { %v5202_v48 = vpop.permute.xlu0 %5201 }
0x1624   :  { %v6793_v51 = vpop.eup %6792  ;;  %v5237_v58 = vadd.f32 %v5202_v48, %v5077_v30 }
0x1625   :  { %5289 = vrot.lane.b32.xlu1 %v6793_v51, %s6849_s0  ;;  %v6795_v38 = vpop.eup %6794 }
0x1626   :  { %6804 = vtanh.f32 %v5237_v58 }
0x1627   :  { %v5204_v23 = vpop.permute.xlu0 %5203 }
0x1628   :  { %v5238_v55 = vadd.f32 %v5204_v23, %v5078_v16 }
0x1629   :  { %5285 = vrot.lane.b32.xlu1 %v6795_v38, %s6849_s0 }
0x162a   :  { %6806 = vtanh.f32 %v5238_v55 }
0x162b   :  { %v5206_v42 = vpop.permute.xlu0 %5205 }
0x162c   :  { %v6797_v41 = vpop.eup %6796  ;;  %v5239_v18 = vadd.f32 %v5206_v42, %v5079_v29 }
0x162d   :  { %5287 = vrot.lane.b32.xlu1 %v6797_v41, %s6849_s0  ;;  %v6799_v39 = vpop.eup %6798 }
0x162e   :  { %5291 = vrot.lane.b32.xlu0 %v6799_v39, %s6849_s0  ;;  %v6801_v19 = vpop.eup %6800  ;;  %6808 = vtanh.f32 %v5239_v18  ;;  %v9992_v39 = vld [vmem:[#allocation18_spill] sm:$0xff] }
0x162f   :  { %v6803_v62 = vpop.eup %6802  ;;  %v5208_v54 = vpop.permute.xlu0 %5207  ;;  %v1499_v55 = vsel %vm1393_vm15, %v9992_v39, 0.0  ;;  %v9994_v18 = vld [vmem:[#allocation30_spill] sm:$0xff] }
0x1630   :  { %v5240_v2 = vadd.f32 %v5208_v54, %v5080_v53 }
0x1631   :  { %5342 = vperm.xlu1 %5775, %v5339_v26  }
0x1632   :  { %5293 = vrot.lane.b32.xlu0 %v6801_v19, %s6849_s0  ;;  %6810 = vtanh.f32 %v5240_v2 }
0x1633   :  { %v6805_v4 = vpop.eup %6804 }
0x1636   :  { %5295 = vrot.lane.b32.xlu0 %v6803_v62, %s6849_s0  ;;  %v4135_v62 = vsel %vm4029_vm10, %v9994_v18, 0.0 }
0x1637   :  { %v6807_v1 = vpop.eup %6806 }
0x163a   :  { %5297 = vrot.lane.b32.xlu0 %v6805_v4, %s6849_s0  ;;  %v9996_v4 = vld [vmem:[#allocation22_spill] sm:$0xff] }
0x163b   :  { %v6809_v60 = vpop.eup %6808 }
0x163e   :  { %5299 = vrot.lane.b32.xlu0 %v6807_v1, %s6849_s0 }
0x163f   :  { %v6811_v6 = vpop.eup %6810 }
0x1642   :  { %5301 = vrot.lane.b32.xlu0 %v6809_v60, %s6849_s0  ;;  %v2158_v60 = vsel %vm2052_vm12, %v9996_v4, 0.0 }
0x1646   :  { %5303 = vrot.lane.b32.xlu0 %v6811_v6, %s6849_s0 }
0x164a   :  { %5345 = vperm.xlu0 %5774, %v5340_v61  }
0x167f   :  { %v5274_v37 = vpop.permute.xlu1 %5273 }
0x1680   :  { %v5276_v31 = vpop.permute.xlu0 %5275  ;;  %v5321_v35 = vmul.f32 %v9629_v3, %v5274_v37 }
0x1681   :  { %v5322_v5 = vmul.f32 %v9635_v47, %v5276_v31 }
0x1682   :  { %v5365_v10 = vrot.slane %v5321_v35, 7 }
0x1683   :  { %v5278_v20 = vpop.permute.xlu1 %5277  ;;  %v5366_v12 = vrot.slane %v5322_v5, 6  ;;  %v9998_v5 = vld [vmem:[#allocation26_spill] sm:$0xff] }
0x1684   :  { %v5323_v15 = vmul.f32 %v9637_v0, %v5278_v20 }
0x1685   :  { %v5367_v21 = vsel %vm748_vm2, %v5366_v12, %v5365_v10 }
0x1686   :  { %v5368_v50 = vrot.slane %v5323_v15, 5 }
0x1687   :  { %v5280_v11 = vpop.permute.xlu1 %5279 }
0x1688   :  { %v5324_v33 = vmul.f32 %v9644_v45, %v5280_v11  ;;  %v5369_v47 = vsel %vm751_vm3, %v5368_v50, %v5367_v21  ;;  %v10004_v21 = vld [vmem:[#allocation23_spill] sm:$0xff] }
0x168a   :  { %v5370_v51 = vrot.slane %v5324_v33, 4 }
0x168b   :  { %v5282_v13 = vpop.permute.xlu1 %5281 }
0x168c   :  { %v5325_v32 = vmul.f32 %v9651_v7, %v5282_v13  ;;  %v5371_v45 = vsel %vm754_vm4, %v5370_v51, %v5369_v47  ;;  %v10008_v47 = vld [vmem:[#allocation25_spill] sm:$0xff] }
0x168e   :  { %v5372_v14 = vrot.slane %v5325_v32, 3 }
0x168f   :  { %v5284_v27 = vpop.permute.xlu1 %5283 }
0x1690   :  { %v5326_v34 = vmul.f32 %v9656_v57, %v5284_v27  ;;  %v5373_v7 = vsel %vm757_vm5, %v5372_v14, %v5371_v45  ;;  %v2817_v27 = vsel %vm2711_vm11, %v9998_v5, 0.0 }
0x1692   :  { %v5374_v3 = vrot.slane %v5326_v34, 2  ;;  %v10000_v34 = vld [vmem:[#allocation19_spill] sm:$0xff] }
0x1693   :  { %v1500_v50 = vsel %vm1394_vm9, %v10000_v34, 0.0 }
0x1694   :  { %v5375_v43 = vsel %vm760_vm6, %v5374_v3, %v5373_v7  ;;  %v10005_v3 = vld [vmem:[#allocation21_spill] sm:$0xff] }
0x1697   :  { %v5290_v44 = vpop.permute.xlu1 %5289 }
0x1698   :  { %v5329_v16 = vmul.f32 %v9667_v63, %v5290_v44 }
0x169a   :  { %v5379_v29 = vrot.slane %v5329_v16, 7 }
0x169b   :  { %v5286_v24 = vpop.permute.xlu1 %5285 }
0x169c   :  { %v5327_v0 = vmul.f32 %v9661_v49, %v5286_v24  ;;  %v10007_v24 = vld [vmem:[#allocation27_spill] sm:$0xff] }
0x169e   :  { %v5376_v38 = vrot.slane %v5327_v0, 1 }
0x169f   :  { %v5288_v57 = vpop.permute.xlu1 %5287 }
0x16a0   :  { %v5377_v30 = vsel %vm763_vm7, %v5376_v38, %v5375_v43  ;;  %v5328_v48 = vmul.f32 %v9673_v52, %v5288_v57  ;;  %v5292_v41 = vpop.permute.xlu0 %5291 }
0x16a1   :  { %v5330_v49 = vmul.f32 %v9676_v17, %v5292_v41 }
0x16a2   :  { %v5378_v58 = vsel %vm766_vm8, %v5328_v48, %v5377_v30  ;;  %v10010_v30 = vld [vmem:[#allocation10_spill] sm:$0xff] }
0x16a3   :  { %5393 = vrot.lane.b32.xlu1 %v5378_v58, %s6850_s4  ;;  %v5380_v52 = vrot.slane %v5330_v49, 6  ;;  %v10011_v48 = vld [vmem:[#allocation6_spill] sm:$0xff] }
0x16a4   :  { %v5294_v26 = vpop.permute.xlu0 %5293 }
0x16a5   :  { %v5331_v19 = vmul.f32 %v9681_v9, %v5294_v26  ;;  %v5381_v17 = vsel %vm748_vm2, %v5380_v52, %v5379_v29  ;;  %vm10006_vm2 = vcmp.eq.s32.totalorder %v10005_v3, 1 }
0x16a7   :  { %5405 = vrot.lane.b32.xlu1 %v1499_v55, %s6850_s4  ;;  %v5382_v54 = vrot.slane %v5331_v19, 5 }
0x16a8   :  { %v5296_v42 = vpop.permute.xlu0 %5295 }
0x16a9   :  { %v5332_v63 = vmul.f32 %v9685_v22, %v5296_v42  ;;  %v5383_v6 = vsel %vm751_vm3, %v5382_v54, %v5381_v17  ;;  %vm10009_vm3 = vcmp.eq.s32.totalorder %v10008_v47, 1 }
0x16aa   :  { %v2818_v0 = vsel %vm10009_vm3, %v10007_v24, 0.0 }
0x16ab   :  { %5429 = vrot.lane.b32.xlu1 %v4135_v62, %s6850_s4  ;;  %v5384_v61 = vrot.slane %v5332_v63, 4 }
0x16ac   :  { %v5298_v2 = vpop.permute.xlu0 %5297  ;;  %v5343_v45 = vpop.permute.xlu1 %5342 }
0x16ad   :  { %v5333_v9 = vmul.f32 %v9689_v8, %v5298_v2  ;;  %v5385_v37 = vsel %vm754_vm4, %v5384_v61, %v5383_v6  ;;  %vm5347_vm4 = vcmp.eq.s32.totalorder %v5343_v45, 1 }
0x16af   :  { %5413 = vrot.lane.b32.xlu1 %v2158_v60, %s6849_s0  ;;  %v5386_v11 = vrot.slane %v5333_v9, 3 }
0x16b0   :  { %v5300_v20 = vpop.permute.xlu0 %5299 }
0x16b1   :  { %v5334_v22 = vmul.f32 %v9693_v28, %v5300_v20  ;;  %v5387_v13 = vsel %vm757_vm5, %v5386_v11, %v5385_v37  ;;  %vm10012_vm5 = vcmp.eq.s32.totalorder %v10011_v48, 1 }
0x16b3   :  { %5437 = vrot.lane.b32.xlu1 %v9471_v56, %s6849_s0  ;;  %v5388_v31 = vrot.slane %v5334_v22, 2 }
0x16b4   :  { %v5302_v35 = vpop.permute.xlu0 %5301 }
0x16b5   :  { %v5335_v15 = vmul.f32 %v9697_v36, %v5302_v35  ;;  %v5389_v33 = vsel %vm760_vm6, %v5388_v31, %v5387_v13  ;;  %v10002_v36 = vld [vmem:[#allocation31_spill] sm:$0xff]  ;;  %vm5453_vm6 = vcmask 523264  }
0x16b6   :  { %v4136_v14 = vsel %vm4030_vm0, %v10002_v36, 0.0 }
0x16b7   :  { %5421 = vrot.lane.b32.xlu1 %v2817_v27, %s6851_s26  ;;  %v5390_v32 = vrot.slane %v5335_v15, 1 }
0x16b8   :  { %v5304_v10 = vpop.permute.xlu0 %5303 }
0x16b9   :  { %v5391_v28 = vsel %vm763_vm7, %v5390_v32, %v5389_v33  ;;  %v5336_v56 = vmul.f32 %v9701_v40, %v5304_v10  ;;  %v2159_v40 = vsel %vm10006_vm2, %v10004_v21, 0.0  ;;  %vm5456_vm7 = vcmask 785408  }
0x16bb   :  { %v5392_v12 = vsel %vm766_vm8, %v5336_v56, %v5391_v28 }
0x16bc   :  { %5395 = vrot.lane.b32.xlu0 %v5392_v12, %s6850_s4 }
0x16c0   :  { %5407 = vrot.lane.b32.xlu0 %v1500_v50, %s6850_s4 }
0x16c4   :  { %5431 = vrot.lane.b32.xlu0 %v4136_v14, %s6850_s4  ;;  %s6852_s4 = smov [#allocation2]  }
0x16c5   :  { %v5346_v19 = vpop.permute.xlu0 %5345  ;;  %s5478_s25 = sshll.u32 %s6852_s4, 4  ;;  %s5479_s25 = int_to_ptr.vmem [resolvable:$true] %s5478_s25 }
0x16c6   :  { %vm5348_vm8 = vcmp.eq.s32.totalorder %v5346_v19, 1  ;;  %s6824_s27 = scalar_lea.vmem %s5479_s25, 256  ;;  %p6829_p1 = scmp.lt.s32.totalorder %s5479_s25, %s5479_s25 }
0x16c7   :  { %p6825_p0 = scmp.ne.s32.totalorder %s5479_s25, %s6824_s27  ;;  %p6830_p2 = scmp.lt.s32.totalorder %s6824_s27, %s6824_s27 }
0x16c8   :  { %5415 = vrot.lane.b32.xlu0 %v2159_v40, %s6849_s0 }
0x16c9   :  { %p6831_p3 = por %p6830_p2, %p6829_p1 }
0x16cb   :  { %p6832_p4 = pnand %p6831_p3, %p6825_p0 }
0x16cc   :  { %5439 = vrot.lane.b32.xlu0 %v9488_v46, %s6849_s0  ;;  %v3476_v46 = vsel %vm10012_vm5, %v10010_v30, 0.0 }
0x16d0   :  { %5423 = vrot.lane.b32.xlu0 %v2818_v0, %s6851_s26 }
0x1715   :  { %v5394_v7 = vpop.permute.xlu1 %5393 }
0x1716   :  { %v5399_v38 = vsel %vm5347_vm4, %v5394_v7, %v9478_v25  ;;  %v5401_v43 = vsel %vm5347_vm4, %v5394_v7, 0.0  ;;  %v10013_v25 = vld [vmem:[#allocation13_spill] sm:$0xff] }
0x1717   :  { %5469 = vst.msk [vmem:[#allocation2] sm:$0xff] %vm103_vm1, %v5399_v38  ;;  %5445 = vrot.lane.b32.xlu1 %v5401_v43, %s6851_s26 }
0x1719   :  { %v5406_v57 = vpop.permute.xlu1 %5405 }
0x171a   :  { %v5451_v39 = vsel %vm103_vm1, %v10013_v25, %v5406_v57 }
0x171d   :  { %v5430_v41 = vpop.permute.xlu1 %5429 }
0x171e   :  { %v5459_v58 = vsel %vm103_vm1, %v3476_v46, %v5430_v41 }
0x1721   :  { %v5414_v16 = vpop.permute.xlu1 %5413 }
0x1722   :  { %v5454_v23 = vsel %vm5453_vm6, %v5451_v39, %v5414_v16 }
0x1725   :  { %v5438_v49 = vpop.permute.xlu1 %5437 }
0x1726   :  { %v5461_v26 = vsel %vm5453_vm6, %v5459_v58, %v5438_v49 }
0x1729   :  { %v5422_v55 = vpop.permute.xlu1 %5421 }
0x172a   :  { %v5457_v29 = vsel %vm5456_vm7, %v5454_v23, %v5422_v55 }
0x172b   :  { %5465 = vst [vmem:[%s9867_s5] sm:$0xff] %v5457_v29 }
0x172e   :  { %v5396_v52 = vpop.permute.xlu0 %5395 }
0x172f   :  { %v5400_v42 = vsel %vm5348_vm8, %v5396_v52, %v9484_v59  ;;  %v5402_v18 = vsel %vm5348_vm8, %v5396_v52, 0.0 }
0x1730   :  { %5470 = vst.msk [vmem:[#allocation2 + $0x8] sm:$0xff] %vm103_vm1, %v5400_v42  ;;  %5447 = vrot.lane.b32.xlu0 %v5402_v18, %s6851_s26 }
0x1731   :  { %6835 = shalt.err (!%p6832_p4)
}
0x1732   :  { %s6853_s28 = smov 128   ;;  %s6854_s29 = smov 8   ;;  %v5408_v53 = vpop.permute.xlu0 %5407  ;;  %v10014_v59 = vld [vmem:[#allocation15_spill] sm:$0xff]  ;;  %v10017_v60 = vld [vmem:[#allocation14_spill] sm:$0xff] }
0x1733   :  { %5484 = dma.vmem_to_hbm [thread:$0]  %s5479_s25, 256, %s9868_s6, [#allocation3], %s6853_s28, %s6853_s28, %s6854_s29   ;;  %v10015_v62 = vld [vmem:[#allocation7_spill] sm:$0xff]  ;;  %v5452_v9 = vsel %vm103_vm1, %v10017_v60, %v5408_v53 }
0x1734   :  { %vm10016_vm15 = vcmp.eq.s32.totalorder %v10015_v62, 1 }
0x1735   :  { %v3477_v63 = vsel %vm10016_vm15, %v10014_v59, 0.0 }
0x1736   :  { %v5432_v17 = vpop.permute.xlu0 %5431 }
0x1737   :  { %v5460_v54 = vsel %vm103_vm1, %v3477_v63, %v5432_v17 }
0x173a   :  { %v5416_v2 = vpop.permute.xlu0 %5415 }
0x173b   :  { %v5455_v6 = vsel %vm5453_vm6, %v5452_v9, %v5416_v2 }
0x173e   :  { %v5440_v4 = vpop.permute.xlu0 %5439 }
0x173f   :  { %v5462_v1 = vsel %vm5453_vm6, %v5460_v54, %v5440_v4 }
0x1742   :  { %v5424_v61 = vpop.permute.xlu0 %5423 }
0x1743   :  { %v5458_v37 = vsel %vm5456_vm7, %v5455_v6, %v5424_v61 }
0x1744   :  { %5467 = vst [vmem:[%s9867_s5 + $0x10] sm:$0xff] %v5458_v37 }
0x1789   :  { %v5446_v20 = vpop.permute.xlu1 %5445 }
0x178a   :  { %v5463_v11 = vsel %vm5456_vm7, %v5461_v26, %v5446_v20 }
0x178b   :  { %5466 = vst [vmem:[%s9867_s5 + $0x8] sm:$0xff] %v5463_v11 }
0x17a2   :  { %v5448_v22 = vpop.permute.xlu0 %5447 }
0x17a3   :  { %v5464_v13 = vsel %vm5456_vm7, %v5462_v1, %v5448_v22 }
0x17a4   :  { %5468 = vst [vmem:[%s9867_s5 + $0x18] sm:$0xff] %v5464_v13 }
0x17a5   :  { %6844 = dma.done.wait [#allocation3], 256  }
0x17a6   :  { %6845 = vsyncadd [#allocation3], 4294967040 }
0x17a7   :  { %5490 = vsyncpa [#allocation3], 1 }

</bundles_post_ra>
